<compile_context>
chip_gen: v6e
topology: v6e:2x2x1
jax: 0.10.0
libtpu: 0.0.40
codegen_flags: <defaults>
</compile_context>

<pallas_src>
import functools

import jax
import jax.numpy as jnp
from jax import lax
from jax.experimental import pallas as pl
from jax.experimental.pallas import tpu as pltpu

BN_EPS = 1e-5
COMPUTE_DTYPE = jnp.float32      # set to jnp.bfloat16 to halve matmul-input DMA bytes
VMEM_LIMIT_BYTES = 32 * 1024 * 1024

# Compat shim (newer jax: CompilerParams, older: TPUCompilerParams).
_CompilerParams = getattr(pltpu, "CompilerParams", None)
if _CompilerParams is None:  # pragma: no cover
    _CompilerParams = getattr(pltpu, "TPUCompilerParams")


# --------------------------------------------------------------------------
# Pass A: 3x3 SAME conv on a haloed NHWC tile + per-tile BN partial statistics
# --------------------------------------------------------------------------
def _conv_stats_kernel(x_ref, w_ref, y_ref, psum_ref, psqs_ref):
    """x_ref: (1, th+2, W+2, Cin) haloed input tile (im2col done in-kernel)
    w_ref:  (9, Cin, Cout)        conv weights indexed by (dy*3+dx, cin, cout)
    y_ref:  (1, th*W, Cout)       raw conv output rows for this tile (f32)
    psum_ref / psqs_ref: (1, 1, Cout) per-tile sum / sum-of-squares over rows
    """
    _, thp2, wp2, cin = x_ref.shape
    cout = w_ref.shape[2]
    th, w = thp2 - 2, wp2 - 2

    x = x_ref[0]                                          # (th+2, W+2, Cin)
    acc = jnp.zeros((th * w, cout), jnp.float32)
    for k in range(9):                                    # unrolled 3x3 taps
        dy, dx = k // 3, k % 3
        xs = x[dy:dy + th, dx:dx + w, :].reshape(th * w, cin)
        acc = acc + jnp.dot(xs, w_ref[k], preferred_element_type=jnp.float32)

    y_ref[0] = acc
    psum_ref[0] = jnp.sum(acc, axis=0, keepdims=True)
    psqs_ref[0] = jnp.sum(acc * acc, axis=0, keepdims=True)


# --------------------------------------------------------------------------
# Pass B: lane-dense BatchNorm affine + ReLU
# --------------------------------------------------------------------------
def _bn_relu_kernel(y_ref, scale_ref, shift_ref, o_ref):
    """y_ref/o_ref: (1, th, W*Cout) lane-dense view of the conv output.
    scale/shift:   (1, W*Cout)     per-channel BN params tiled across W.
    """
    o_ref[0] = jnp.maximum(y_ref[0] * scale_ref[...] + shift_ref[...], 0.0)


def _pick_tile_h(H, W, cin, cout, budget_bytes=8 << 20):
    """Largest divisor of H whose double-buffered tile working set fits a
    conservative per-stage VMEM budget (sized for v7x's 64 MiB VMEM /
    32 MiB default scoped limit, so it is also safe on v5e/v6e)."""
    for th in range(H, 0, -1):
        if H % th:
            continue
        logical = 4 * (2 * (th + 2) * (W + 2) * cin      # haloed input, 2 bufs
                       + 2 * th * W * cout               # conv output, 2 bufs
                       + 2 * th * W * cout)              # pass-B in/out tiles
        if 2 * logical <= budget_bytes:                  # 2x fudge for tiling pad
            return th
    return 1


def _conv_bn_relu_stage(x_nhwc, w_oihw, gamma, beta, tile_h):
    """One Conv2d(3x3, pad=1, bias=False) + BatchNorm2d(train stats) + ReLU."""
    N, H, W, cin = x_nhwc.shape
    cout = w_oihw.shape[0]

    th = tile_h if (tile_h is not None and H % tile_h == 0) else _pick_tile_h(H, W, cin, cout)
    nt = H // th
    T = N * nt
    M = N * H * W
    WC = W * cout

    # Haloed spatial tiles (T, th+2, W+2, Cin): ~ (th+2)/th of the activation
    # bytes instead of the 9x im2col blow-up.
    xp = jnp.pad(x_nhwc, ((0, 0), (1, 1), (1, 1), (0, 0)))
    tiles = jnp.stack([xp[:, t * th:t * th + th + 2] for t in range(nt)], axis=1)
    x_tiles = tiles.reshape(T, th + 2, W + 2, cin).astype(COMPUTE_DTYPE)

    # (Cout, Cin, 3, 3) -> (3, 3, Cin, Cout) -> (9, Cin, Cout)   (dy, dx, cin)
    w9 = jnp.transpose(w_oihw, (2, 3, 1, 0)).reshape(9, cin, cout).astype(COMPUTE_DTYPE)

    compiler_params = _CompilerParams(
        dimension_semantics=("parallel",),
        vmem_limit_bytes=VMEM_LIMIT_BYTES)

    itemsize = jnp.dtype(COMPUTE_DTYPE).itemsize
    conv_cost = pl.CostEstimate(
        flops=2 * T * th * W * 9 * cin * cout,
        transcendentals=0,
        bytes_accessed=(x_tiles.size * itemsize + w9.size * itemsize
                        + (T * th * W * cout + 2 * T * cout) * 4))

    y, psum, psqs = pl.pallas_call(
        _conv_stats_kernel,
        grid_spec=pltpu.PrefetchScalarGridSpec(
            num_scalar_prefetch=0,
            grid=(T,),
            in_specs=[
                pl.BlockSpec((1, th + 2, W + 2, cin), lambda i: (i, 0, 0, 0)),
                pl.BlockSpec((9, cin, cout), lambda i: (0, 0, 0)),
            ],
            out_specs=[
                pl.BlockSpec((1, th * W, cout), lambda i: (i, 0, 0)),
                pl.BlockSpec((1, 1, cout), lambda i: (i, 0, 0)),
                pl.BlockSpec((1, 1, cout), lambda i: (i, 0, 0)),
            ]),
        out_shape=(
            jax.ShapeDtypeStruct((T, th * W, cout), jnp.float32),
            jax.ShapeDtypeStruct((T, 1, cout), jnp.float32),
            jax.ShapeDtypeStruct((T, 1, cout), jnp.float32),
        ),
        compiler_params=compiler_params,
        cost_estimate=conv_cost,
    )(x_tiles, w9)

    # Tiny cross-tile reduction + BN parameter math in f32 (XLA).
    # TODO(synk): running_mean/running_var are not tracked (single
    # training-mode forward only, matching the reference semantics here).
    total = jnp.sum(psum, axis=(0, 1))                     # (Cout,)
    total_sq = jnp.sum(psqs, axis=(0, 1))                  # (Cout,)
    mean = total / M
    var = jnp.maximum(total_sq / M - mean * mean, 0.0)     # biased var (train BN)
    inv_std = lax.rsqrt(var + BN_EPS)
    scale = gamma * inv_std
    shift = beta - mean * scale
    # Lane-dense per-channel vectors: lane index = w*Cout + c.
    scale_wc = jnp.tile(scale, W).reshape(1, WC)
    shift_wc = jnp.tile(shift, W).reshape(1, WC)

    # Free re-view (identical row-major bytes) to a lane-dense slab.
    y_dense = y.reshape(T, th, WC)

    bn_cost = pl.CostEstimate(
        flops=3 * T * th * WC,
        transcendentals=0,
        bytes_accessed=2 * T * th * WC * 4 + 2 * WC * 4)

    out = pl.pallas_call(
        _bn_relu_kernel,
        grid_spec=pltpu.PrefetchScalarGridSpec(
            num_scalar_prefetch=0,
            grid=(T,),
            in_specs=[
                pl.BlockSpec((1, th, WC), lambda i: (i, 0, 0)),
                pl.BlockSpec((1, WC), lambda i: (0, 0)),
                pl.BlockSpec((1, WC), lambda i: (0, 0)),
            ],
            out_specs=pl.BlockSpec((1, th, WC), lambda i: (i, 0, 0))),
        out_shape=jax.ShapeDtypeStruct((T, th, WC), jnp.float32),
        compiler_params=compiler_params,
        cost_estimate=bn_cost,
    )(y_dense, scale_wc, shift_wc)

    # (T, th, W*Cout) == (N, nt*th=H, W, Cout) under the same row-major order.
    return out.reshape(N, H, W, cout)


@functools.partial(jax.jit, static_argnames=("tile_h",))
def double_conv_forward(x_nchw, w1, g1, b1, w2, g2, b2, *, tile_h=None):
    """DoubleConv.forward.  x_nchw: (N, C_in, H, W) -> (N, C_mid, H, W)."""
    # TODO(synk): keep the surrounding model NHWC to drop these two transposes.
    x_nhwc = jnp.transpose(x_nchw, (0, 2, 3, 1))
    h = _conv_bn_relu_stage(x_nhwc, w1, g1, b1, tile_h)
    h = _conv_bn_relu_stage(h, w2, g2, b2, tile_h)
    return jnp.transpose(h, (0, 3, 1, 2))


def _reference(x_nchw, w1, g1, b1, w2, g2, b2):
    """Plain-JAX reference (lax conv + train-mode BN + ReLU) for validation."""
    def stage(x, w, g, b):
        y = lax.conv_general_dilated(
            x, w, window_strides=(1, 1), padding="SAME",
            dimension_numbers=("NCHW", "OIHW", "NCHW"))
        mean = y.mean(axis=(0, 2, 3), keepdims=True)
        var = y.var(axis=(0, 2, 3), keepdims=True)
        yh = (y - mean) * lax.rsqrt(var + BN_EPS)
        yh = yh * g.reshape(1, -1, 1, 1) + b.reshape(1, -1, 1, 1)
        return jnp.maximum(yh, 0.0)
    return stage(stage(x_nchw, w1, g1, b1), w2, g2, b2)


if __name__ == "__main__":
    # Module config: DoubleConv(c_in=4, c_out=8) -> c_mid = c_out = 8
    N, C_IN, H, W = 2, 4, 16, 16
    C_MID = 8

    key = jax.random.PRNGKey(0)
    kx, kw1, kw2 = jax.random.split(key, 3)

    x = jax.random.normal(kx, (N, C_IN, H, W), dtype=jnp.float32)

    # Deterministic parameter init (shapes per nn.Conv2d / nn.BatchNorm2d).
    w1 = 0.1 * jax.random.normal(kw1, (C_MID, C_IN, 3, 3), dtype=jnp.float32)
    w2 = 0.1 * jax.random.normal(kw2, (C_MID, C_MID, 3, 3), dtype=jnp.float32)
    g1 = jnp.ones((C_MID,), jnp.float32)   # BatchNorm2d default weight
    b1 = jnp.zeros((C_MID,), jnp.float32)  # BatchNorm2d default bias
    g2 = jnp.ones((C_MID,), jnp.float32)
    b2 = jnp.zeros((C_MID,), jnp.float32)

    # tile_h=8 -> 2 H-tiles per image (exercises interior halo tiles), grid T=4.
    out = double_conv_forward(x, w1, g1, b1, w2, g2, b2, tile_h=8)
    out = jax.block_until_ready(out)

    ref = _reference(x, w1, g1, b1, w2, g2, b2)
    assert out.shape == (N, C_MID, H, W)
    assert jnp.allclose(out, ref, rtol=1e-3, atol=1e-3), "mismatch vs reference"

    print("KERNEL_OK")
</pallas_src>

<mosaic_0001>
module attributes {stable_mosaic.version = 11 : i64} {
  func.func @_conv_stats_kernel(%arg0: i32, %arg1: memref<1x10x18x4xf32, #tpu.memory_space<vmem>>, %arg2: memref<9x4x8xf32, #tpu.memory_space<vmem>>, %arg3: memref<1x128x8xf32, #tpu.memory_space<vmem>>, %arg4: memref<1x1x8xf32, #tpu.memory_space<vmem>>, %arg5: memref<1x1x8xf32, #tpu.memory_space<vmem>>) attributes {dimension_semantics = [#tpu.dimension_semantics<parallel>], iteration_bounds = array<i64: 4>, scalar_prefetch = 0 : i64, scratch_operands = 0 : i64, tpu.core_type = #tpu.core_type<tc>, window_params = [{transform_indices = @transform_0, window_bounds = array<i64: 1, 10, 18, 4>}, {pipeline_mode = #tpu.pipeline_mode<synchronous>, transform_indices = @transform_1, window_bounds = array<i64: 9, 4, 8>}, {transform_indices = @transform_2, window_bounds = array<i64: 1, 128, 8>}, {transform_indices = @transform_3, window_bounds = array<i64: 1, 1, 8>}, {transform_indices = @transform_4, window_bounds = array<i64: 1, 1, 8>}]} {
    %c0 = arith.constant 0 : index
    %c0_0 = arith.constant 0 : index
    %c0_1 = arith.constant 0 : index
    %c0_2 = arith.constant 0 : index
    %0 = vector.load %arg1[%c0, %c0_0, %c0_1, %c0_2] : memref<1x10x18x4xf32, #tpu.memory_space<vmem>>, vector<1x10x18x4xf32>
    %1 = vector.shape_cast %0 : vector<1x10x18x4xf32> to vector<10x18x4xf32>
    %cst = arith.constant 0.000000e+00 : f32
    %2 = vector.broadcast %cst : f32 to vector<128x8xf32>
    %3 = vector.extract_strided_slice %1 {offsets = [0, 0, 0], sizes = [8, 16, 4], strides = [1, 1, 1]} : vector<10x18x4xf32> to vector<8x16x4xf32>
    %4 = vector.shape_cast %3 : vector<8x16x4xf32> to vector<128x4xf32>
    %c0_3 = arith.constant 0 : index
    %c0_4 = arith.constant 0 : index
    %c0_5 = arith.constant 0 : index
    %5 = vector.load %arg2[%c0_3, %c0_4, %c0_5] : memref<9x4x8xf32, #tpu.memory_space<vmem>>, vector<1x4x8xf32>
    %6 = vector.shape_cast %5 : vector<1x4x8xf32> to vector<4x8xf32>
    %cst_6 = arith.constant dense<0.000000e+00> : vector<128x8xf32>
    %7 = tpu.matmul %4, %6, %cst_6 {dimension_numbers = #tpu.dot_dimension_numbers<[1], [0], [0], [1], [0, 0, 1, 1], [], []>} : vector<128x4xf32>, vector<4x8xf32>, vector<128x8xf32> -> vector<128x8xf32>
    %8 = arith.addf %2, %7 : vector<128x8xf32>
    %9 = vector.extract_strided_slice %1 {offsets = [0, 1, 0], sizes = [8, 16, 4], strides = [1, 1, 1]} : vector<10x18x4xf32> to vector<8x16x4xf32>
    %10 = vector.shape_cast %9 : vector<8x16x4xf32> to vector<128x4xf32>
    %c1 = arith.constant 1 : index
    %c0_7 = arith.constant 0 : index
    %c0_8 = arith.constant 0 : index
    %11 = vector.load %arg2[%c1, %c0_7, %c0_8] : memref<9x4x8xf32, #tpu.memory_space<vmem>>, vector<1x4x8xf32>
    %12 = vector.shape_cast %11 : vector<1x4x8xf32> to vector<4x8xf32>
    %cst_9 = arith.constant dense<0.000000e+00> : vector<128x8xf32>
    %13 = tpu.matmul %10, %12, %cst_9 {dimension_numbers = #tpu.dot_dimension_numbers<[1], [0], [0], [1], [0, 0, 1, 1], [], []>} : vector<128x4xf32>, vector<4x8xf32>, vector<128x8xf32> -> vector<128x8xf32>
    %14 = arith.addf %8, %13 : vector<128x8xf32>
    %15 = vector.extract_strided_slice %1 {offsets = [0, 2, 0], sizes = [8, 16, 4], strides = [1, 1, 1]} : vector<10x18x4xf32> to vector<8x16x4xf32>
    %16 = vector.shape_cast %15 : vector<8x16x4xf32> to vector<128x4xf32>
    %c2 = arith.constant 2 : index
    %c0_10 = arith.constant 0 : index
    %c0_11 = arith.constant 0 : index
    %17 = vector.load %arg2[%c2, %c0_10, %c0_11] : memref<9x4x8xf32, #tpu.memory_space<vmem>>, vector<1x4x8xf32>
    %18 = vector.shape_cast %17 : vector<1x4x8xf32> to vector<4x8xf32>
    %cst_12 = arith.constant dense<0.000000e+00> : vector<128x8xf32>
    %19 = tpu.matmul %16, %18, %cst_12 {dimension_numbers = #tpu.dot_dimension_numbers<[1], [0], [0], [1], [0, 0, 1, 1], [], []>} : vector<128x4xf32>, vector<4x8xf32>, vector<128x8xf32> -> vector<128x8xf32>
    %20 = arith.addf %14, %19 : vector<128x8xf32>
    %21 = vector.extract_strided_slice %1 {offsets = [1, 0, 0], sizes = [8, 16, 4], strides = [1, 1, 1]} : vector<10x18x4xf32> to vector<8x16x4xf32>
    %22 = vector.shape_cast %21 : vector<8x16x4xf32> to vector<128x4xf32>
    %c3 = arith.constant 3 : index
    %c0_13 = arith.constant 0 : index
    %c0_14 = arith.constant 0 : index
    %23 = vector.load %arg2[%c3, %c0_13, %c0_14] : memref<9x4x8xf32, #tpu.memory_space<vmem>>, vector<1x4x8xf32>
    %24 = vector.shape_cast %23 : vector<1x4x8xf32> to vector<4x8xf32>
    %cst_15 = arith.constant dense<0.000000e+00> : vector<128x8xf32>
    %25 = tpu.matmul %22, %24, %cst_15 {dimension_numbers = #tpu.dot_dimension_numbers<[1], [0], [0], [1], [0, 0, 1, 1], [], []>} : vector<128x4xf32>, vector<4x8xf32>, vector<128x8xf32> -> vector<128x8xf32>
    %26 = arith.addf %20, %25 : vector<128x8xf32>
    %27 = vector.extract_strided_slice %1 {offsets = [1, 1, 0], sizes = [8, 16, 4], strides = [1, 1, 1]} : vector<10x18x4xf32> to vector<8x16x4xf32>
    %28 = vector.shape_cast %27 : vector<8x16x4xf32> to vector<128x4xf32>
    %c4 = arith.constant 4 : index
    %c0_16 = arith.constant 0 : index
    %c0_17 = arith.constant 0 : index
    %29 = vector.load %arg2[%c4, %c0_16, %c0_17] : memref<9x4x8xf32, #tpu.memory_space<vmem>>, vector<1x4x8xf32>
    %30 = vector.shape_cast %29 : vector<1x4x8xf32> to vector<4x8xf32>
    %cst_18 = arith.constant dense<0.000000e+00> : vector<128x8xf32>
    %31 = tpu.matmul %28, %30, %cst_18 {dimension_numbers = #tpu.dot_dimension_numbers<[1], [0], [0], [1], [0, 0, 1, 1], [], []>} : vector<128x4xf32>, vector<4x8xf32>, vector<128x8xf32> -> vector<128x8xf32>
    %32 = arith.addf %26, %31 : vector<128x8xf32>
    %33 = vector.extract_strided_slice %1 {offsets = [1, 2, 0], sizes = [8, 16, 4], strides = [1, 1, 1]} : vector<10x18x4xf32> to vector<8x16x4xf32>
    %34 = vector.shape_cast %33 : vector<8x16x4xf32> to vector<128x4xf32>
    %c5 = arith.constant 5 : index
    %c0_19 = arith.constant 0 : index
    %c0_20 = arith.constant 0 : index
    %35 = vector.load %arg2[%c5, %c0_19, %c0_20] : memref<9x4x8xf32, #tpu.memory_space<vmem>>, vector<1x4x8xf32>
    %36 = vector.shape_cast %35 : vector<1x4x8xf32> to vector<4x8xf32>
    %cst_21 = arith.constant dense<0.000000e+00> : vector<128x8xf32>
    %37 = tpu.matmul %34, %36, %cst_21 {dimension_numbers = #tpu.dot_dimension_numbers<[1], [0], [0], [1], [0, 0, 1, 1], [], []>} : vector<128x4xf32>, vector<4x8xf32>, vector<128x8xf32> -> vector<128x8xf32>
    %38 = arith.addf %32, %37 : vector<128x8xf32>
    %39 = vector.extract_strided_slice %1 {offsets = [2, 0, 0], sizes = [8, 16, 4], strides = [1, 1, 1]} : vector<10x18x4xf32> to vector<8x16x4xf32>
    %40 = vector.shape_cast %39 : vector<8x16x4xf32> to vector<128x4xf32>
    %c6 = arith.constant 6 : index
    %c0_22 = arith.constant 0 : index
    %c0_23 = arith.constant 0 : index
    %41 = vector.load %arg2[%c6, %c0_22, %c0_23] : memref<9x4x8xf32, #tpu.memory_space<vmem>>, vector<1x4x8xf32>
    %42 = vector.shape_cast %41 : vector<1x4x8xf32> to vector<4x8xf32>
    %cst_24 = arith.constant dense<0.000000e+00> : vector<128x8xf32>
    %43 = tpu.matmul %40, %42, %cst_24 {dimension_numbers = #tpu.dot_dimension_numbers<[1], [0], [0], [1], [0, 0, 1, 1], [], []>} : vector<128x4xf32>, vector<4x8xf32>, vector<128x8xf32> -> vector<128x8xf32>
    %44 = arith.addf %38, %43 : vector<128x8xf32>
    %45 = vector.extract_strided_slice %1 {offsets = [2, 1, 0], sizes = [8, 16, 4], strides = [1, 1, 1]} : vector<10x18x4xf32> to vector<8x16x4xf32>
    %46 = vector.shape_cast %45 : vector<8x16x4xf32> to vector<128x4xf32>
    %c7 = arith.constant 7 : index
    %c0_25 = arith.constant 0 : index
    %c0_26 = arith.constant 0 : index
    %47 = vector.load %arg2[%c7, %c0_25, %c0_26] : memref<9x4x8xf32, #tpu.memory_space<vmem>>, vector<1x4x8xf32>
    %48 = vector.shape_cast %47 : vector<1x4x8xf32> to vector<4x8xf32>
    %cst_27 = arith.constant dense<0.000000e+00> : vector<128x8xf32>
    %49 = tpu.matmul %46, %48, %cst_27 {dimension_numbers = #tpu.dot_dimension_numbers<[1], [0], [0], [1], [0, 0, 1, 1], [], []>} : vector<128x4xf32>, vector<4x8xf32>, vector<128x8xf32> -> vector<128x8xf32>
    %50 = arith.addf %44, %49 : vector<128x8xf32>
    %51 = vector.extract_strided_slice %1 {offsets = [2, 2, 0], sizes = [8, 16, 4], strides = [1, 1, 1]} : vector<10x18x4xf32> to vector<8x16x4xf32>
    %52 = vector.shape_cast %51 : vector<8x16x4xf32> to vector<128x4xf32>
    %c8 = arith.constant 8 : index
    %c0_28 = arith.constant 0 : index
    %c0_29 = arith.constant 0 : index
    %53 = vector.load %arg2[%c8, %c0_28, %c0_29] : memref<9x4x8xf32, #tpu.memory_space<vmem>>, vector<1x4x8xf32>
    %54 = vector.shape_cast %53 : vector<1x4x8xf32> to vector<4x8xf32>
    %cst_30 = arith.constant dense<0.000000e+00> : vector<128x8xf32>
    %55 = tpu.matmul %52, %54, %cst_30 {dimension_numbers = #tpu.dot_dimension_numbers<[1], [0], [0], [1], [0, 0, 1, 1], [], []>} : vector<128x4xf32>, vector<4x8xf32>, vector<128x8xf32> -> vector<128x8xf32>
    %56 = arith.addf %50, %55 : vector<128x8xf32>
    %c0_31 = arith.constant 0 : index
    %c0_32 = arith.constant 0 : index
    %c0_33 = arith.constant 0 : index
    %57 = vector.load %arg3[%c0_31, %c0_32, %c0_33] : memref<1x128x8xf32, #tpu.memory_space<vmem>>, vector<1x128x8xf32>
    %58 = vector.shape_cast %57 : vector<1x128x8xf32> to vector<128x8xf32>
    %59 = vector.shape_cast %56 : vector<128x8xf32> to vector<1x128x8xf32>
    tpu.vector_store %arg3[%c0_31, %c0_32, %c0_33], %59 {strides = array<i32>} : memref<1x128x8xf32, #tpu.memory_space<vmem>>, vector<1x128x8xf32>,
    %cst_34 = arith.constant dense<0.000000e+00> : vector<8xf32>
    %60 = vector.multi_reduction <add>, %56, %cst_34 [0] : vector<128x8xf32> to vector<8xf32>
    %61 = vector.shape_cast %60 : vector<8xf32> to vector<1x8xf32>
    %c0_35 = arith.constant 0 : index
    %c0_36 = arith.constant 0 : index
    %c0_37 = arith.constant 0 : index
    %62 = vector.load %arg4[%c0_35, %c0_36, %c0_37] : memref<1x1x8xf32, #tpu.memory_space<vmem>>, vector<1x1x8xf32>
    %63 = vector.shape_cast %62 : vector<1x1x8xf32> to vector<1x8xf32>
    %64 = vector.shape_cast %61 : vector<1x8xf32> to vector<1x1x8xf32>
    tpu.vector_store %arg4[%c0_35, %c0_36, %c0_37], %64 {strides = array<i32>} : memref<1x1x8xf32, #tpu.memory_space<vmem>>, vector<1x1x8xf32>,
    %65 = arith.mulf %56, %56 : vector<128x8xf32>
    %cst_38 = arith.constant dense<0.000000e+00> : vector<8xf32>
    %66 = vector.multi_reduction <add>, %65, %cst_38 [0] : vector<128x8xf32> to vector<8xf32>
    %67 = vector.shape_cast %66 : vector<8xf32> to vector<1x8xf32>
    %c0_39 = arith.constant 0 : index
    %c0_40 = arith.constant 0 : index
    %c0_41 = arith.constant 0 : index
    %68 = vector.load %arg5[%c0_39, %c0_40, %c0_41] : memref<1x1x8xf32, #tpu.memory_space<vmem>>, vector<1x1x8xf32>
    %69 = vector.shape_cast %68 : vector<1x1x8xf32> to vector<1x8xf32>
    %70 = vector.shape_cast %67 : vector<1x8xf32> to vector<1x1x8xf32>
    tpu.vector_store %arg5[%c0_39, %c0_40, %c0_41], %70 {strides = array<i32>} : memref<1x1x8xf32, #tpu.memory_space<vmem>>, vector<1x1x8xf32>,
    return
  }
  func.func @transform_0(%arg0: i32) -> (i32, i32, i32, i32) {
    %c0_i32 = arith.constant 0 : i32
    %c0_i32_0 = arith.constant 0 : i32
    %c0_i32_1 = arith.constant 0 : i32
    %c0_i32_2 = arith.constant 0 : i32
    return %arg0, %c0_i32, %c0_i32_0, %c0_i32_1 : i32, i32, i32, i32
  }
  func.func @transform_1(%arg0: i32) -> (i32, i32, i32) {
    %c0_i32 = arith.constant 0 : i32
    %c0_i32_0 = arith.constant 0 : i32
    %c0_i32_1 = arith.constant 0 : i32
    %c0_i32_2 = arith.constant 0 : i32
    return %c0_i32, %c0_i32_0, %c0_i32_1 : i32, i32, i32
  }
  func.func @transform_2(%arg0: i32) -> (i32, i32, i32) {
    %c0_i32 = arith.constant 0 : i32
    %c0_i32_0 = arith.constant 0 : i32
    %c0_i32_1 = arith.constant 0 : i32
    return %arg0, %c0_i32, %c0_i32_0 : i32, i32, i32
  }
  func.func @transform_3(%arg0: i32) -> (i32, i32, i32) {
    %c0_i32 = arith.constant 0 : i32
    %c0_i32_0 = arith.constant 0 : i32
    %c0_i32_1 = arith.constant 0 : i32
    return %arg0, %c0_i32, %c0_i32_0 : i32, i32, i32
  }
  func.func @transform_4(%arg0: i32) -> (i32, i32, i32) {
    %c0_i32 = arith.constant 0 : i32
    %c0_i32_0 = arith.constant 0 : i32
    %c0_i32_1 = arith.constant 0 : i32
    return %arg0, %c0_i32, %c0_i32_0 : i32, i32, i32
  }
}

module attributes {stable_mosaic.version = 11 : i64} {
  func.func @_bn_relu_kernel(%arg0: i32, %arg1: memref<1x8x128xf32, #tpu.memory_space<vmem>>, %arg2: memref<1x128xf32, #tpu.memory_space<vmem>>, %arg3: memref<1x128xf32, #tpu.memory_space<vmem>>, %arg4: memref<1x8x128xf32, #tpu.memory_space<vmem>>) attributes {dimension_semantics = [#tpu.dimension_semantics<parallel>], iteration_bounds = array<i64: 4>, scalar_prefetch = 0 : i64, scratch_operands = 0 : i64, tpu.core_type = #tpu.core_type<tc>, window_params = [{transform_indices = @transform_0, window_bounds = array<i64: 1, 8, 128>}, {pipeline_mode = #tpu.pipeline_mode<synchronous>, transform_indices = @transform_1, window_bounds = array<i64: 1, 128>}, {pipeline_mode = #tpu.pipeline_mode<synchronous>, transform_indices = @transform_2, window_bounds = array<i64: 1, 128>}, {transform_indices = @transform_3, window_bounds = array<i64: 1, 8, 128>}]} {
    %c0 = arith.constant 0 : index
    %c0_0 = arith.constant 0 : index
    %c0_1 = arith.constant 0 : index
    %0 = vector.load %arg1[%c0, %c0_0, %c0_1] : memref<1x8x128xf32, #tpu.memory_space<vmem>>, vector<1x8x128xf32>
    %1 = vector.shape_cast %0 : vector<1x8x128xf32> to vector<8x128xf32>
    %c0_2 = arith.constant 0 : index
    %c0_3 = arith.constant 0 : index
    %2 = vector.load %arg2[%c0_2, %c0_3] : memref<1x128xf32, #tpu.memory_space<vmem>>, vector<1x128xf32>
    %3 = vector.broadcast %2 : vector<1x128xf32> to vector<8x128xf32>
    %4 = arith.mulf %1, %3 : vector<8x128xf32>
    %c0_4 = arith.constant 0 : index
    %c0_5 = arith.constant 0 : index
    %5 = vector.load %arg3[%c0_4, %c0_5] : memref<1x128xf32, #tpu.memory_space<vmem>>, vector<1x128xf32>
    %6 = vector.broadcast %5 : vector<1x128xf32> to vector<8x128xf32>
    %7 = arith.addf %4, %6 : vector<8x128xf32>
    %cst = arith.constant 0.000000e+00 : f32
    %8 = vector.broadcast %cst : f32 to vector<8x128xf32>
    %9 = arith.maximumf %7, %8 : vector<8x128xf32>
    %c0_6 = arith.constant 0 : index
    %c0_7 = arith.constant 0 : index
    %c0_8 = arith.constant 0 : index
    %10 = vector.load %arg4[%c0_6, %c0_7, %c0_8] : memref<1x8x128xf32, #tpu.memory_space<vmem>>, vector<1x8x128xf32>
    %11 = vector.shape_cast %10 : vector<1x8x128xf32> to vector<8x128xf32>
    %12 = vector.shape_cast %9 : vector<8x128xf32> to vector<1x8x128xf32>
    tpu.vector_store %arg4[%c0_6, %c0_7, %c0_8], %12 {strides = array<i32>} : memref<1x8x128xf32, #tpu.memory_space<vmem>>, vector<1x8x128xf32>,
    return
  }
  func.func @transform_0(%arg0: i32) -> (i32, i32, i32) {
    %c0_i32 = arith.constant 0 : i32
    %c0_i32_0 = arith.constant 0 : i32
    %c0_i32_1 = arith.constant 0 : i32
    return %arg0, %c0_i32, %c0_i32_0 : i32, i32, i32
  }
  func.func @transform_1(%arg0: i32) -> (i32, i32) {
    %c0_i32 = arith.constant 0 : i32
    %c0_i32_0 = arith.constant 0 : i32
    %c0_i32_1 = arith.constant 0 : i32
    return %c0_i32, %c0_i32_0 : i32, i32
  }
  func.func @transform_2(%arg0: i32) -> (i32, i32) {
    %c0_i32 = arith.constant 0 : i32
    %c0_i32_0 = arith.constant 0 : i32
    %c0_i32_1 = arith.constant 0 : i32
    return %c0_i32, %c0_i32_0 : i32, i32
  }
  func.func @transform_3(%arg0: i32) -> (i32, i32, i32) {
    %c0_i32 = arith.constant 0 : i32
    %c0_i32_0 = arith.constant 0 : i32
    %c0_i32_1 = arith.constant 0 : i32
    return %arg0, %c0_i32, %c0_i32_0 : i32, i32, i32
  }
}

module attributes {stable_mosaic.version = 11 : i64} {
  func.func @_conv_stats_kernel(%arg0: i32, %arg1: memref<1x10x18x8xf32, #tpu.memory_space<vmem>>, %arg2: memref<9x8x8xf32, #tpu.memory_space<vmem>>, %arg3: memref<1x128x8xf32, #tpu.memory_space<vmem>>, %arg4: memref<1x1x8xf32, #tpu.memory_space<vmem>>, %arg5: memref<1x1x8xf32, #tpu.memory_space<vmem>>) attributes {dimension_semantics = [#tpu.dimension_semantics<parallel>], iteration_bounds = array<i64: 4>, scalar_prefetch = 0 : i64, scratch_operands = 0 : i64, tpu.core_type = #tpu.core_type<tc>, window_params = [{transform_indices = @transform_0, window_bounds = array<i64: 1, 10, 18, 8>}, {pipeline_mode = #tpu.pipeline_mode<synchronous>, transform_indices = @transform_1, window_bounds = array<i64: 9, 8, 8>}, {transform_indices = @transform_2, window_bounds = array<i64: 1, 128, 8>}, {transform_indices = @transform_3, window_bounds = array<i64: 1, 1, 8>}, {transform_indices = @transform_4, window_bounds = array<i64: 1, 1, 8>}]} {
    %c0 = arith.constant 0 : index
    %c0_0 = arith.constant 0 : index
    %c0_1 = arith.constant 0 : index
    %c0_2 = arith.constant 0 : index
    %0 = vector.load %arg1[%c0, %c0_0, %c0_1, %c0_2] : memref<1x10x18x8xf32, #tpu.memory_space<vmem>>, vector<1x10x18x8xf32>
    %1 = vector.shape_cast %0 : vector<1x10x18x8xf32> to vector<10x18x8xf32>
    %cst = arith.constant 0.000000e+00 : f32
    %2 = vector.broadcast %cst : f32 to vector<128x8xf32>
    %3 = vector.extract_strided_slice %1 {offsets = [0, 0, 0], sizes = [8, 16, 8], strides = [1, 1, 1]} : vector<10x18x8xf32> to vector<8x16x8xf32>
    %4 = vector.shape_cast %3 : vector<8x16x8xf32> to vector<128x8xf32>
    %c0_3 = arith.constant 0 : index
    %c0_4 = arith.constant 0 : index
    %c0_5 = arith.constant 0 : index
    %5 = vector.load %arg2[%c0_3, %c0_4, %c0_5] : memref<9x8x8xf32, #tpu.memory_space<vmem>>, vector<1x8x8xf32>
    %6 = vector.shape_cast %5 : vector<1x8x8xf32> to vector<8x8xf32>
    %cst_6 = arith.constant dense<0.000000e+00> : vector<128x8xf32>
    %7 = tpu.matmul %4, %6, %cst_6 {dimension_numbers = #tpu.dot_dimension_numbers<[1], [0], [0], [1], [0, 0, 1, 1], [], []>} : vector<128x8xf32>, vector<8x8xf32>, vector<128x8xf32> -> vector<128x8xf32>
    %8 = arith.addf %2, %7 : vector<128x8xf32>
    %9 = vector.extract_strided_slice %1 {offsets = [0, 1, 0], sizes = [8, 16, 8], strides = [1, 1, 1]} : vector<10x18x8xf32> to vector<8x16x8xf32>
    %10 = vector.shape_cast %9 : vector<8x16x8xf32> to vector<128x8xf32>
    %c1 = arith.constant 1 : index
    %c0_7 = arith.constant 0 : index
    %c0_8 = arith.constant 0 : index
    %11 = vector.load %arg2[%c1, %c0_7, %c0_8] : memref<9x8x8xf32, #tpu.memory_space<vmem>>, vector<1x8x8xf32>
    %12 = vector.shape_cast %11 : vector<1x8x8xf32> to vector<8x8xf32>
    %cst_9 = arith.constant dense<0.000000e+00> : vector<128x8xf32>
    %13 = tpu.matmul %10, %12, %cst_9 {dimension_numbers = #tpu.dot_dimension_numbers<[1], [0], [0], [1], [0, 0, 1, 1], [], []>} : vector<128x8xf32>, vector<8x8xf32>, vector<128x8xf32> -> vector<128x8xf32>
    %14 = arith.addf %8, %13 : vector<128x8xf32>
    %15 = vector.extract_strided_slice %1 {offsets = [0, 2, 0], sizes = [8, 16, 8], strides = [1, 1, 1]} : vector<10x18x8xf32> to vector<8x16x8xf32>
    %16 = vector.shape_cast %15 : vector<8x16x8xf32> to vector<128x8xf32>
    %c2 = arith.constant 2 : index
    %c0_10 = arith.constant 0 : index
    %c0_11 = arith.constant 0 : index
    %17 = vector.load %arg2[%c2, %c0_10, %c0_11] : memref<9x8x8xf32, #tpu.memory_space<vmem>>, vector<1x8x8xf32>
    %18 = vector.shape_cast %17 : vector<1x8x8xf32> to vector<8x8xf32>
    %cst_12 = arith.constant dense<0.000000e+00> : vector<128x8xf32>
    %19 = tpu.matmul %16, %18, %cst_12 {dimension_numbers = #tpu.dot_dimension_numbers<[1], [0], [0], [1], [0, 0, 1, 1], [], []>} : vector<128x8xf32>, vector<8x8xf32>, vector<128x8xf32> -> vector<128x8xf32>
    %20 = arith.addf %14, %19 : vector<128x8xf32>
    %21 = vector.extract_strided_slice %1 {offsets = [1, 0, 0], sizes = [8, 16, 8], strides = [1, 1, 1]} : vector<10x18x8xf32> to vector<8x16x8xf32>
    %22 = vector.shape_cast %21 : vector<8x16x8xf32> to vector<128x8xf32>
    %c3 = arith.constant 3 : index
    %c0_13 = arith.constant 0 : index
    %c0_14 = arith.constant 0 : index
    %23 = vector.load %arg2[%c3, %c0_13, %c0_14] : memref<9x8x8xf32, #tpu.memory_space<vmem>>, vector<1x8x8xf32>
    %24 = vector.shape_cast %23 : vector<1x8x8xf32> to vector<8x8xf32>
    %cst_15 = arith.constant dense<0.000000e+00> : vector<128x8xf32>
    %25 = tpu.matmul %22, %24, %cst_15 {dimension_numbers = #tpu.dot_dimension_numbers<[1], [0], [0], [1], [0, 0, 1, 1], [], []>} : vector<128x8xf32>, vector<8x8xf32>, vector<128x8xf32> -> vector<128x8xf32>
    %26 = arith.addf %20, %25 : vector<128x8xf32>
    %27 = vector.extract_strided_slice %1 {offsets = [1, 1, 0], sizes = [8, 16, 8], strides = [1, 1, 1]} : vector<10x18x8xf32> to vector<8x16x8xf32>
    %28 = vector.shape_cast %27 : vector<8x16x8xf32> to vector<128x8xf32>
    %c4 = arith.constant 4 : index
    %c0_16 = arith.constant 0 : index
    %c0_17 = arith.constant 0 : index
    %29 = vector.load %arg2[%c4, %c0_16, %c0_17] : memref<9x8x8xf32, #tpu.memory_space<vmem>>, vector<1x8x8xf32>
    %30 = vector.shape_cast %29 : vector<1x8x8xf32> to vector<8x8xf32>
    %cst_18 = arith.constant dense<0.000000e+00> : vector<128x8xf32>
    %31 = tpu.matmul %28, %30, %cst_18 {dimension_numbers = #tpu.dot_dimension_numbers<[1], [0], [0], [1], [0, 0, 1, 1], [], []>} : vector<128x8xf32>, vector<8x8xf32>, vector<128x8xf32> -> vector<128x8xf32>
    %32 = arith.addf %26, %31 : vector<128x8xf32>
    %33 = vector.extract_strided_slice %1 {offsets = [1, 2, 0], sizes = [8, 16, 8], strides = [1, 1, 1]} : vector<10x18x8xf32> to vector<8x16x8xf32>
    %34 = vector.shape_cast %33 : vector<8x16x8xf32> to vector<128x8xf32>
    %c5 = arith.constant 5 : index
    %c0_19 = arith.constant 0 : index
    %c0_20 = arith.constant 0 : index
    %35 = vector.load %arg2[%c5, %c0_19, %c0_20] : memref<9x8x8xf32, #tpu.memory_space<vmem>>, vector<1x8x8xf32>
    %36 = vector.shape_cast %35 : vector<1x8x8xf32> to vector<8x8xf32>
    %cst_21 = arith.constant dense<0.000000e+00> : vector<128x8xf32>
    %37 = tpu.matmul %34, %36, %cst_21 {dimension_numbers = #tpu.dot_dimension_numbers<[1], [0], [0], [1], [0, 0, 1, 1], [], []>} : vector<128x8xf32>, vector<8x8xf32>, vector<128x8xf32> -> vector<128x8xf32>
    %38 = arith.addf %32, %37 : vector<128x8xf32>
    %39 = vector.extract_strided_slice %1 {offsets = [2, 0, 0], sizes = [8, 16, 8], strides = [1, 1, 1]} : vector<10x18x8xf32> to vector<8x16x8xf32>
    %40 = vector.shape_cast %39 : vector<8x16x8xf32> to vector<128x8xf32>
    %c6 = arith.constant 6 : index
    %c0_22 = arith.constant 0 : index
    %c0_23 = arith.constant 0 : index
    %41 = vector.load %arg2[%c6, %c0_22, %c0_23] : memref<9x8x8xf32, #tpu.memory_space<vmem>>, vector<1x8x8xf32>
    %42 = vector.shape_cast %41 : vector<1x8x8xf32> to vector<8x8xf32>
    %cst_24 = arith.constant dense<0.000000e+00> : vector<128x8xf32>
    %43 = tpu.matmul %40, %42, %cst_24 {dimension_numbers = #tpu.dot_dimension_numbers<[1], [0], [0], [1], [0, 0, 1, 1], [], []>} : vector<128x8xf32>, vector<8x8xf32>, vector<128x8xf32> -> vector<128x8xf32>
    %44 = arith.addf %38, %43 : vector<128x8xf32>
    %45 = vector.extract_strided_slice %1 {offsets = [2, 1, 0], sizes = [8, 16, 8], strides = [1, 1, 1]} : vector<10x18x8xf32> to vector<8x16x8xf32>
    %46 = vector.shape_cast %45 : vector<8x16x8xf32> to vector<128x8xf32>
    %c7 = arith.constant 7 : index
    %c0_25 = arith.constant 0 : index
    %c0_26 = arith.constant 0 : index
    %47 = vector.load %arg2[%c7, %c0_25, %c0_26] : memref<9x8x8xf32, #tpu.memory_space<vmem>>, vector<1x8x8xf32>
    %48 = vector.shape_cast %47 : vector<1x8x8xf32> to vector<8x8xf32>
    %cst_27 = arith.constant dense<0.000000e+00> : vector<128x8xf32>
    %49 = tpu.matmul %46, %48, %cst_27 {dimension_numbers = #tpu.dot_dimension_numbers<[1], [0], [0], [1], [0, 0, 1, 1], [], []>} : vector<128x8xf32>, vector<8x8xf32>, vector<128x8xf32> -> vector<128x8xf32>
    %50 = arith.addf %44, %49 : vector<128x8xf32>
    %51 = vector.extract_strided_slice %1 {offsets = [2, 2, 0], sizes = [8, 16, 8], strides = [1, 1, 1]} : vector<10x18x8xf32> to vector<8x16x8xf32>
    %52 = vector.shape_cast %51 : vector<8x16x8xf32> to vector<128x8xf32>
    %c8 = arith.constant 8 : index
    %c0_28 = arith.constant 0 : index
    %c0_29 = arith.constant 0 : index
    %53 = vector.load %arg2[%c8, %c0_28, %c0_29] : memref<9x8x8xf32, #tpu.memory_space<vmem>>, vector<1x8x8xf32>
    %54 = vector.shape_cast %53 : vector<1x8x8xf32> to vector<8x8xf32>
    %cst_30 = arith.constant dense<0.000000e+00> : vector<128x8xf32>
    %55 = tpu.matmul %52, %54, %cst_30 {dimension_numbers = #tpu.dot_dimension_numbers<[1], [0], [0], [1], [0, 0, 1, 1], [], []>} : vector<128x8xf32>, vector<8x8xf32>, vector<128x8xf32> -> vector<128x8xf32>
    %56 = arith.addf %50, %55 : vector<128x8xf32>
    %c0_31 = arith.constant 0 : index
    %c0_32 = arith.constant 0 : index
    %c0_33 = arith.constant 0 : index
    %57 = vector.load %arg3[%c0_31, %c0_32, %c0_33] : memref<1x128x8xf32, #tpu.memory_space<vmem>>, vector<1x128x8xf32>
    %58 = vector.shape_cast %57 : vector<1x128x8xf32> to vector<128x8xf32>
    %59 = vector.shape_cast %56 : vector<128x8xf32> to vector<1x128x8xf32>
    tpu.vector_store %arg3[%c0_31, %c0_32, %c0_33], %59 {strides = array<i32>} : memref<1x128x8xf32, #tpu.memory_space<vmem>>, vector<1x128x8xf32>,
    %cst_34 = arith.constant dense<0.000000e+00> : vector<8xf32>
    %60 = vector.multi_reduction <add>, %56, %cst_34 [0] : vector<128x8xf32> to vector<8xf32>
    %61 = vector.shape_cast %60 : vector<8xf32> to vector<1x8xf32>
    %c0_35 = arith.constant 0 : index
    %c0_36 = arith.constant 0 : index
    %c0_37 = arith.constant 0 : index
    %62 = vector.load %arg4[%c0_35, %c0_36, %c0_37] : memref<1x1x8xf32, #tpu.memory_space<vmem>>, vector<1x1x8xf32>
    %63 = vector.shape_cast %62 : vector<1x1x8xf32> to vector<1x8xf32>
    %64 = vector.shape_cast %61 : vector<1x8xf32> to vector<1x1x8xf32>
    tpu.vector_store %arg4[%c0_35, %c0_36, %c0_37], %64 {strides = array<i32>} : memref<1x1x8xf32, #tpu.memory_space<vmem>>, vector<1x1x8xf32>,
    %65 = arith.mulf %56, %56 : vector<128x8xf32>
    %cst_38 = arith.constant dense<0.000000e+00> : vector<8xf32>
    %66 = vector.multi_reduction <add>, %65, %cst_38 [0] : vector<128x8xf32> to vector<8xf32>
    %67 = vector.shape_cast %66 : vector<8xf32> to vector<1x8xf32>
    %c0_39 = arith.constant 0 : index
    %c0_40 = arith.constant 0 : index
    %c0_41 = arith.constant 0 : index
    %68 = vector.load %arg5[%c0_39, %c0_40, %c0_41] : memref<1x1x8xf32, #tpu.memory_space<vmem>>, vector<1x1x8xf32>
    %69 = vector.shape_cast %68 : vector<1x1x8xf32> to vector<1x8xf32>
    %70 = vector.shape_cast %67 : vector<1x8xf32> to vector<1x1x8xf32>
    tpu.vector_store %arg5[%c0_39, %c0_40, %c0_41], %70 {strides = array<i32>} : memref<1x1x8xf32, #tpu.memory_space<vmem>>, vector<1x1x8xf32>,
    return
  }
  func.func @transform_0(%arg0: i32) -> (i32, i32, i32, i32) {
    %c0_i32 = arith.constant 0 : i32
    %c0_i32_0 = arith.constant 0 : i32
    %c0_i32_1 = arith.constant 0 : i32
    %c0_i32_2 = arith.constant 0 : i32
    return %arg0, %c0_i32, %c0_i32_0, %c0_i32_1 : i32, i32, i32, i32
  }
  func.func @transform_1(%arg0: i32) -> (i32, i32, i32) {
    %c0_i32 = arith.constant 0 : i32
    %c0_i32_0 = arith.constant 0 : i32
    %c0_i32_1 = arith.constant 0 : i32
    %c0_i32_2 = arith.constant 0 : i32
    return %c0_i32, %c0_i32_0, %c0_i32_1 : i32, i32, i32
  }
  func.func @transform_2(%arg0: i32) -> (i32, i32, i32) {
    %c0_i32 = arith.constant 0 : i32
    %c0_i32_0 = arith.constant 0 : i32
    %c0_i32_1 = arith.constant 0 : i32
    return %arg0, %c0_i32, %c0_i32_0 : i32, i32, i32
  }
  func.func @transform_3(%arg0: i32) -> (i32, i32, i32) {
    %c0_i32 = arith.constant 0 : i32
    %c0_i32_0 = arith.constant 0 : i32
    %c0_i32_1 = arith.constant 0 : i32
    return %arg0, %c0_i32, %c0_i32_0 : i32, i32, i32
  }
  func.func @transform_4(%arg0: i32) -> (i32, i32, i32) {
    %c0_i32 = arith.constant 0 : i32
    %c0_i32_0 = arith.constant 0 : i32
    %c0_i32_1 = arith.constant 0 : i32
    return %arg0, %c0_i32, %c0_i32_0 : i32, i32, i32
  }
}

</mosaic_0001>

<bundles_post_ra>
// kernel: tile.23
= control target key start
LH: loop header
LB: loop body
LE: loop exit
PB: predicated region body
PF: predicated region fallthrough
CT: control target
= control target key end

     0   :  { %s28_s0 = inlined_call_operand.vmem [shape: f32[8], index: 0, kind: input, shape index: {}]   ;;  %s29_s1 = inlined_call_operand.vmem [shape: f32[16,8], index: 1, kind: output, shape index: {}]  }
   0x1   :  { %v4_v0 = vld [vmem:[%s28_s0] ss:$0 sm:$0xff] }
   0x2   :  { %5 = vst [vmem:[%s29_s1] sm:$0xff] %v4_v0  ;;  %8 = vst [vmem:[%s29_s1 + $0x8] sm:$0xff] %v4_v0 }

// kernel: tile.24
= control target key start
LH: loop header
LB: loop body
LE: loop exit
PB: predicated region body
PF: predicated region fallthrough
CT: control target
= control target key end

     0   :  { %s133_s10 = smov 120   ;;  %s134_s11 = smov 104   ;;  %vm3_vm0 = vcmask 64512   ;;  %vm9_vm1 = vcmask 1048512   ;;  %vm15_vm2 = vcmask 982912   ;;  %vm21_vm3 = vcmask 917312   ;;  %s209_s0 = inlined_call_operand.vmem [shape: f32[16,8], index: 0, kind: input, shape index: {}]   ;;  %s210_s1 = inlined_call_operand.vmem [shape: f32[1,128], index: 1, kind: output, shape index: {}]  }
   0x1   :  { %v103_v0 = vld [vmem:[%s209_s0 + $0xf] sm:$0x1]   ;;  %v105_v1 = vld [vmem:[%s209_s0 + $0xd] sm:$0x1]   ;;  %v104_v2 = vld [vmem:[%s209_s0 + $0xe] sm:$0x1]  }
   0x2   :  { %7 = vrot.lane.b32.xlu0 %v103_v0, %s133_s10  ;;  %19 = vrot.lane.b32.xlu1 %v105_v1, %s134_s11  ;;  %v106_v3 = vld [vmem:[%s209_s0 + $0xc] sm:$0x1]   ;;  %s135_s16 = smov 112   ;;  %s136_s17 = smov 96   ;;  %v107_v4 = vld [vmem:[%s209_s0 + $0xb] sm:$0x1]  }
   0x3   :  { %v108_v5 = vld [vmem:[%s209_s0 + $0xa] sm:$0x1]   ;;  %v2_v6 = vld [vmem:[%s209_s0] sm:$0x1]   ;;  %s137_s24 = smov 88   ;;  %s138_s25 = smov 80  }
   0x4   :  { %4 = vst.msk [vmem:[#allocation0] sm:$0x1] %vm3_vm0, %v2_v6   ;;  %v109_v7 = vld [vmem:[%s209_s0 + $0x9] sm:$0x1]   ;;  %v110_v8 = vld [vmem:[%s209_s0 + $0x8] sm:$0x1]  }
   0x5   :  { %s139_s30 = smov 72   ;;  %s140_s2 = smov 64   ;;  %v111_v9 = vld [vmem:[%s209_s0 + $0x7] sm:$0x1]   ;;  %v112_v10 = vld [vmem:[%s209_s0 + $0x6] sm:$0x1]  }
   0x6   :  { %13 = vrot.lane.b32.xlu0 %v104_v2, %s135_s16  ;;  %25 = vrot.lane.b32.xlu1 %v106_v3, %s136_s17  ;;  %s141_s7 = smov 56   ;;  %s142_s8 = smov 48   ;;  %v113_v11 = vld [vmem:[%s209_s0 + $0x5] sm:$0x1]   ;;  %v114_v12 = vld [vmem:[%s209_s0 + $0x4] sm:$0x1]  }
   0x7   :  { %s143_s13 = smov 40   ;;  %s144_s14 = smov 32   ;;  %v115_v13 = vld [vmem:[%s209_s0 + $0x3] sm:$0x1]   ;;  %v116_v14 = vld [vmem:[%s209_s0 + $0x2] sm:$0x1]  }
   0x8   :  { %s145_s19 = smov 24   ;;  %s146_s20 = smov 16   ;;  %v117_v15 = vld [vmem:[%s209_s0 + $0x1] sm:$0x1]   ;;  %vm27_vm4 = vcmask 851712   ;;  %vm33_vm5 = vcmask 786112  }
   0x9   :  { %s147_s0 = smov 8   ;;  %vm39_vm6 = vcmask 720512   ;;  %vm45_vm7 = vcmask 654912   ;;  %vm51_vm8 = vcmask 589312   ;;  %vm57_vm9 = vcmask 523712  }
   0xa   :  { %31 = vrot.lane.b32.xlu0 %v107_v4, %s137_s24  ;;  %37 = vrot.lane.b32.xlu1 %v108_v5, %s138_s25  ;;  %vm63_vm10 = vcmask 458112   ;;  %vm69_vm11 = vcmask 392512   ;;  %vm75_vm12 = vcmask 326912   ;;  %vm81_vm13 = vcmask 261312  }
   0xb   :  { %vm87_vm14 = vcmask 195712   ;;  %vm93_vm15 = vcmask 130112  }
   0xe   :  { %43 = vrot.lane.b32.xlu0 %v109_v7, %s139_s30  ;;  %49 = vrot.lane.b32.xlu1 %v110_v8, %s140_s2 }
  0x12   :  { %55 = vrot.lane.b32.xlu0 %v111_v9, %s141_s7  ;;  %61 = vrot.lane.b32.xlu1 %v112_v10, %s142_s8 }
  0x16   :  { %67 = vrot.lane.b32.xlu0 %v113_v11, %s143_s13  ;;  %73 = vrot.lane.b32.xlu1 %v114_v12, %s144_s14 }
  0x1a   :  { %79 = vrot.lane.b32.xlu0 %v115_v13, %s145_s19  ;;  %85 = vrot.lane.b32.xlu1 %v116_v14, %s146_s20 }
  0x1e   :  { %91 = vrot.lane.b32.xlu0 %v117_v15, %s147_s0 }
  0x74   :  { %v8_v16 = vpop.permute.xlu0 %7   ;;  %v20_v17 = vpop.permute.xlu1 %19  }
  0x75   :  { %10 = vst.msk [vmem:[#allocation0] sm:$0x1] %vm9_vm1, %v8_v16  }
  0x78   :  { %v14_v18 = vpop.permute.xlu0 %13   ;;  %v26_v19 = vpop.permute.xlu1 %25  }
  0x79   :  { %16 = vst.msk [vmem:[#allocation0] sm:$0x1] %vm15_vm2, %v14_v18  }
  0x7a   :  { %22 = vst.msk [vmem:[#allocation0] sm:$0x1] %vm21_vm3, %v20_v17  }
  0x7b   :  { %28 = vst.msk [vmem:[#allocation0] sm:$0x1] %vm27_vm4, %v26_v19  }
  0x7c   :  { %v32_v20 = vpop.permute.xlu0 %31   ;;  %v38_v21 = vpop.permute.xlu1 %37  }
  0x7d   :  { %34 = vst.msk [vmem:[#allocation0] sm:$0x1] %vm33_vm5, %v32_v20  }
  0x7e   :  { %40 = vst.msk [vmem:[#allocation0] sm:$0x1] %vm39_vm6, %v38_v21  }
  0x80   :  { %v44_v22 = vpop.permute.xlu0 %43   ;;  %v50_v23 = vpop.permute.xlu1 %49  }
  0x81   :  { %46 = vst.msk [vmem:[#allocation0] sm:$0x1] %vm45_vm7, %v44_v22  }
  0x82   :  { %52 = vst.msk [vmem:[#allocation0] sm:$0x1] %vm51_vm8, %v50_v23  }
  0x84   :  { %v56_v24 = vpop.permute.xlu0 %55   ;;  %v62_v25 = vpop.permute.xlu1 %61  }
  0x85   :  { %58 = vst.msk [vmem:[#allocation0] sm:$0x1] %vm57_vm9, %v56_v24  }
  0x86   :  { %64 = vst.msk [vmem:[#allocation0] sm:$0x1] %vm63_vm10, %v62_v25  }
  0x88   :  { %v68_v26 = vpop.permute.xlu0 %67   ;;  %v74_v27 = vpop.permute.xlu1 %73  }
  0x89   :  { %70 = vst.msk [vmem:[#allocation0] sm:$0x1] %vm69_vm11, %v68_v26  }
  0x8a   :  { %76 = vst.msk [vmem:[#allocation0] sm:$0x1] %vm75_vm12, %v74_v27  }
  0x8c   :  { %v80_v28 = vpop.permute.xlu0 %79   ;;  %v86_v29 = vpop.permute.xlu1 %85  }
  0x8d   :  { %82 = vst.msk [vmem:[#allocation0] sm:$0x1] %vm81_vm13, %v80_v28  }
  0x8e   :  { %88 = vst.msk [vmem:[#allocation0] sm:$0x1] %vm87_vm14, %v86_v29  }
  0x90   :  { %v92_v30 = vpop.permute.xlu0 %91  }
  0x91   :  { %94 = vst.msk [vmem:[#allocation0] sm:$0x1] %vm93_vm15, %v92_v30  }
  0x98   :  { %v99_v31 = vld [vmem:[#allocation0] sm:$0x1] }
  0x99   :  { %102 = vst [vmem:[%s210_s1] sm:$0x1] %v99_v31 }

// kernel: double_conv_forward.5
= control target key start
LH: loop header
LB: loop body
LE: loop exit
PB: predicated region body
PF: predicated region fallthrough
CT: control target
= control target key end

     0   :  { %s261_s12 = smov 0   ;;  %s297_s0 = inlined_call_operand.vmem [shape: f32[4,8,128], index: 0, kind: input, shape index: {}]   ;;  %s298_s1 = inlined_call_operand.vmem [shape: f32[1,128], index: 1, kind: input, shape index: {}]   ;;  %s299_s2 = inlined_call_operand.vmem [shape: f32[1,128], index: 2, kind: input, shape index: {}]   ;;  %s300_s3 = inlined_call_operand.vmem [shape: f32[4,8,128], index: 3, kind: output, shape index: {}]  }
   0x1 LB: > { %s238_s13 = sadd.s32 4294967295, %s263_s12   ;;  %p242_p0 = scmp.ge.s32.totalorder %s263_s12, 1  ;;  %s263_s12 = sphi %s261_s12, %s13_s12  }
   0x2   : > { %p136_p1 = scmp.lt.s32.totalorder %s263_s12, 5 }
   0x4   : > { %p137_p2 = pnand %p242_p0, %p136_p1 }
   0x5   : > { %p158_p3 = scmp.lt.s32.totalorder (!%p137_p2), %s238_s13, 3 }
   0x6   : > { %140 = sbr.rel (%p137_p2) target bundleno = 22 (0x16), region = 32 }
   0xb   : > { %s302_s13 = smov (!%p158_p3, %s238_s13), 3  ;;  %v245_v0 = vld [vmem:[%s298_s1] ss:$0 sm:$0xff] }
   0xc   : > { %s243_s14 = sshll.u32 %s302_s13, 3  ;;  %v246_v2 = vld [vmem:[%s299_s2] ss:$0 sm:$0xff] }
   0xd   : > { %s161_s19 = scalar_lea.vmem %s297_s0, %s243_s14  ;;  %s165_s24 = scalar_lea.vmem %s300_s3, %s243_s14 }
   0xe   : > { %v166_v1 = vld [vmem:[%s161_s19] sm:$0xff] }
   0xf   : > { %v174_v3 = vmul.f32 %v245_v0, %v166_v1 }
  0x11   : > { %v182_v4 = vadd.f32 %v246_v2, %v174_v3 }
  0x13   : > { %v183_v5 = vmax.f32 %v182_v4, 0.0 }
  0x15   : > { %184 = vst [vmem:[%s165_s24] sm:$0xff] %v183_v5 }
  0x16 PF: > { %s13_s12 = sadd.s32 1, %s263_s12  }
  0x17   : > { %p10_p4 = scmp.ge.s32.totalorder %s13_s12, 6  }
  0x19   :  { %12 = sbr.rel (!%p10_p4) target bundleno = 1 (0x1), region = 62 }

// kernel: double_conv_forward.4
= control target key start
LH: loop header
LB: loop body
LE: loop exit
PB: predicated region body
PF: predicated region fallthrough
CT: control target
= control target key end

     0   :  { %s2778_s15 = smov 0   ;;  %s3668_s0 = inlined_call_operand.vmem [shape: f32[4,10,18,4], index: 0, kind: input, shape index: {}]   ;;  %s3669_s1 = inlined_call_operand.vmem [shape: f32[9,4,8], index: 1, kind: input, shape index: {}]   ;;  %s3670_s2 = inlined_call_operand.vmem [shape: f32[4,128,8], index: 2, kind: output, shape index: {0}]   ;;  %s3671_s3 = inlined_call_operand.vmem [shape: f32[4,1,8], index: 3, kind: output, shape index: {1}]   ;;  %s3672_s4 = inlined_call_operand.vmem [shape: f32[4,1,8], index: 4, kind: output, shape index: {2}]  }
   0x1 LB: > { %s2175_s16 = sadd.s32 4294967295, %s2751_s15   ;;  %p2179_p0 = scmp.ge.s32.totalorder %s2751_s15, 1  ;;  %s2751_s15 = sphi %s2778_s15, %s15_s15  }
   0x2   : > { %p167_p1 = scmp.lt.s32.totalorder %s2751_s15, 5 }
   0x4   : > { %p168_p2 = pnand %p2179_p0, %p167_p1 }
   0x6   : > { %171 = sbr.rel (%p168_p2) target bundleno = 382 (0x17e), region = 28 }
   0xb   : > { %v2183_v0 = vld [vmem:[%s3669_s1 + $0x4] sm:$0xf]  ;;  %vm346_vm0 = vcmask 1043456   ;;  %p199_p3 = scmp.lt.s32.totalorder %s2175_s16, 3  ;;  %v245_v1 = vld [vmem:[%s3669_s1] sm:$0xf] }
   0xc   : > { %2734 = vmatprep.subr.msk.mxu1 %vm346_vm0, %v2183_v0  ;;  %2500 = vmatprep.subr.msk.mxu0 %vm346_vm0, %v2183_v0  ;;  %v2218_v2 = vld [vmem:[%s3669_s1 + $0x8] sm:$0xf]  ;;  %vm270_vm1 = vcmask 1046528   ;;  %vm313_vm2 = vcmask 31744   ;;  %v2850_v21 = vld [vmem:[%s3669_s1 + $0xc] sm:$0xf] }
   0xd   : > { %2735 = vmatpush3.msk.msra.mxu1 %vm346_vm0, %v2183_v0  ;;  %2501 = vmatpush3.msk.msra.mxu0 %vm346_vm0, %v2183_v0  ;;  %s3710_s16 = smov (!%p199_p3, %s2175_s16), 3  ;;  %v2868_v28 = vld [vmem:[%s3669_s1 + $0x10] sm:$0xf]  ;;  %vm675_vm3 = vcmask 1045504   ;;  %vm1960_vm4 = vcmask 64512   ;;  %vm2014_vm5 = vcmask 57344  }
   0xe   : > { %2526 = vmatprep.subr.msk.mxu1 %vm346_vm0, %v245_v1  ;;  %2552 = vmatprep.subr.msk.mxu0 %vm346_vm0, %v2218_v2  ;;  %s2736_s23 = smul.u32 240, %s3710_s16  ;;  %s2346_s13 = sshll.u32 %s3710_s16, 7 }
   0xf   : > { %s3557_s18 = scalar_lea.vmem %s3670_s2, %s2346_s13  ;;  %s211_s21 = scalar_lea.vmem %s3671_s3, %s3710_s16 }
  0x10   : > { %s2807_s26 = scalar_lea.vmem %s3668_s0, %s2736_s23  ;;  %s214_s24 = scalar_lea.vmem %s3672_s4, %s3710_s16 }
  0x11   : > { %v2810_v3 = vld [vmem:[%s2807_s26] sm:$0xff]  ;;  %v2813_v4 = vld [vmem:[%s2807_s26 + $0x8] sm:$0xff]  ;;  %v2825_v10 = vld [vmem:[%s2807_s26 + $0x10] sm:$0x3] }
  0x12   : > { %v2816_v5 = vld [vmem:[%s2807_s26 + $0x60] sm:$0xff]  ;;  %v271_v6 = vrot.slane %v2810_v3, 1  ;;  %v272_v7 = vrot.slane %v2813_v4, 1  ;;  %v2821_v8 = vld [vmem:[%s2807_s26 + $0x68] sm:$0xff]  ;;  %v274_v12 = vrot.slane %v2825_v10, 1  ;;  %v2833_v14 = vld [vmem:[%s2807_s26 + $0x18] sm:$0xff] }
  0x13   : > { %v291_v9 = vrot.slane %v2816_v5, 1  ;;  %v292_v11 = vrot.slane %v2821_v8, 1  ;;  %v2830_v13 = vld [vmem:[%s2807_s26 + $0x70] sm:$0x3]  ;;  %v2838_v17 = vld [vmem:[%s2807_s26 + $0x20] sm:$0xff]  ;;  %v276_v18 = vrot.slane %v2833_v14, 1 }
  0x14   : > { %v273_v15 = vsel %vm270_vm1, %v271_v6, %v272_v7  ;;  %v294_v16 = vrot.slane %v2830_v13, 1  ;;  %v2842_v19 = vld [vmem:[%s2807_s26 + $0x78] sm:$0xff]  ;;  %v2845_v20 = vld [vmem:[%s2807_s26 + $0x80] sm:$0xff]  ;;  %v275_v23 = vsel %vm270_vm1, %v272_v7, %v274_v12  ;;  %v277_v24 = vrot.slane %v2838_v17, 1  ;;  %v2860_v26 = vld [vmem:[%s2807_s26 + $0x28] sm:$0x3] }
  0x15   : > { %2502 = vmatprep.mubr.msk.f32.mxu0 %vm313_vm2, %v273_v15  ;;  %v2854_v22 = vsel %vm270_vm1, %v291_v9, %v292_v11  ;;  %v296_v25 = vrot.slane %v2842_v19, 1  ;;  %v2863_v27 = vld [vmem:[%s2807_s26 + $0x88] sm:$0x3]  ;;  %v297_v30 = vrot.slane %v2845_v20, 1  ;;  %v279_v31 = vrot.slane %v2860_v26, 1  ;;  %v2880_v33 = vld [vmem:[%s2807_s26 + $0x30] sm:$0xff] }
  0x16   : > { %2514 = vmatprep.mubr.msk.f32.mxu1 %vm313_vm2, %v2854_v22  ;;  %2503 = vmatmul.mubr.msk.f32.vlgmr.msra.gmra.mxu0 %vm313_vm2, %v275_v23  ;;  %v2874_v29 = vsel %vm270_vm1, %v292_v11, %v294_v16  ;;  %v299_v32 = vrot.slane %v2863_v27, 1  ;;  %v2883_v34 = vld [vmem:[%s2807_s26 + $0x38] sm:$0xff]  ;;  %v2886_v35 = vld [vmem:[%s2807_s26 + $0x90] sm:$0xff]  ;;  %v2892_v36 = vsel %vm270_vm1, %v276_v18, %v277_v24  ;;  %v281_v37 = vrot.slane %v2880_v33, 1  ;;  %v2901_v41 = vld [vmem:[%s2807_s26 + $0x40] sm:$0x3] }
  0x17   : > { %2515 = vmatmul.mubr.msk.f32.vlgmr.msra.gmra.mxu1 %vm313_vm2, %v2874_v29  ;;  %2553 = vmatpush3.msk.msra.mxu0 %vm346_vm0, %v2218_v2  ;;  %v282_v38 = vrot.slane %v2883_v34, 1  ;;  %v2897_v39 = vld [vmem:[%s2807_s26 + $0x98] sm:$0xff]  ;;  %v301_v40 = vrot.slane %v2886_v35, 1  ;;  %v2907_v42 = vsel %vm270_vm1, %v296_v25, %v297_v30  ;;  %v2910_v43 = vsel %vm270_vm1, %v277_v24, %v279_v31  ;;  %v2917_v46 = vld [vmem:[%s2807_s26 + $0xa0] sm:$0x3]  ;;  %v2920_v47 = vld [vmem:[%s2807_s26 + $0x48] sm:$0xff] }
  0x18   : > { %2527 = vmatpush3.msk.msra.mxu1 %vm346_vm0, %v245_v1  ;;  %2505 = vmatprep.mubr.msk.f32.mxu0 %vm313_vm2, %v2892_v36  ;;  %v2913_v44 = vsel %vm270_vm1, %v297_v30, %v299_v32  ;;  %v302_v45 = vrot.slane %v2897_v39, 1  ;;  %v2923_v48 = vld [vmem:[%s2807_s26 + $0x50] sm:$0xff]  ;;  %v284_v50 = vrot.slane %v2901_v41, 1  ;;  %v304_v51 = vrot.slane %v2917_v46, 1  ;;  %v2934_v53 = vld [vmem:[%s2807_s26 + $0xa8] sm:$0xff]  ;;  %v3000_v18 = vld [vmem:[%s2807_s26 + $0xc0] sm:$0xff] }
  0x19   : > { %2517 = vmatprep.mubr.msk.f32.mxu1 %vm313_vm2, %v2907_v42  ;;  %v2928_v49 = vsel %vm270_vm1, %v281_v37, %v282_v38  ;;  %v286_v52 = vrot.slane %v2920_v47, 1  ;;  %v2937_v54 = vld [vmem:[%s2807_s26 + $0xb0] sm:$0xff]  ;;  %2578 = vmatprep.subr.msk.mxu1 %vm346_vm0, %v2850_v21  ;;  %v287_v56 = vrot.slane %v2923_v48, 1  ;;  %v306_v57 = vrot.slane %v2934_v53, 1  ;;  %v2950_v59 = vld [vmem:[%s2807_s26 + $0x58] sm:$0x3] }
  0x1a   : > { %2506 = vmatmul.mubr.msk.f32.gmra.mxu0 %vm313_vm2, %v2910_v43  ;;  %v2944_v55 = vsel %vm270_vm1, %v301_v40, %v302_v45  ;;  %v307_v58 = vrot.slane %v2937_v54, 1  ;;  %2604 = vmatprep.subr.msk.mxu0 %vm346_vm0, %v2868_v28  ;;  %v2959_v60 = vsel %vm270_vm1, %v282_v38, %v284_v50  ;;  %v289_v61 = vrot.slane %v2950_v59, 1  ;;  %v2963_v62 = vld [vmem:[%s2807_s26 + $0xb8] sm:$0x3]  ;;  %v3010_v31 = vld [vmem:[%s2807_s26 + $0xc8] sm:$0xff] }
  0x1b   : > { %2518 = vmatmul.mubr.msk.f32.gmra.mxu1 %vm313_vm2, %v2913_v44  ;;  %2508 = vmatprep.mubr.msk.f32.mxu0 %vm313_vm2, %v2928_v49  ;;  %v676_v63 = vrot.slane %v2810_v3, 2  ;;  %v2969_v0 = vsel %vm270_vm1, %v302_v45, %v304_v51  ;;  %v2972_v1 = vsel %vm270_vm1, %v286_v52, %v287_v56  ;;  %v309_v2 = vrot.slane %v2963_v62, 1  ;;  %v241_v32 = vld [vmem:[%s2807_s26 + $0xd0] sm:$0x3]  ;;  %v3027_v50 = vld [vmem:[%s2807_s26 + $0xd8] sm:$0xff] }
  0x1c   : > { %2520 = vmatprep.mubr.msk.f32.mxu1 %vm313_vm2, %v2944_v55  ;;  %v677_v6 = vrot.slane %v2813_v4, 2  ;;  %v2977_v7 = vsel %vm270_vm1, %v306_v57, %v307_v58  ;;  %v679_v9 = vrot.slane %v2825_v10, 2  ;;  %v2987_v11 = vsel %vm270_vm1, %v287_v56, %v289_v61  ;;  %v244_v56 = vld [vmem:[%s2807_s26 + $0xe8] sm:$0x3]  ;;  %v3047_v61 = vld [vmem:[%s3669_s1 + $0x18] sm:$0xf] }
  0x1d   : > { %v2992_v12 = vsel %vm270_vm1, %v307_v58, %v309_v2  ;;  %v681_v10 = vrot.slane %v2833_v14, 2  ;;  %v682_v16 = vrot.slane %v2838_v17, 2  ;;  %v684_v24 = vrot.slane %v2860_v26, 2  ;;  %v3023_v26 = vld [vmem:[%s3669_s1 + $0x14] sm:$0xf] }
  0x1e   : > { %2509 = vmatmul.mubr.msk.f32.gmra.mxu0 %vm313_vm2, %v2959_v60  ;;  %v678_v15 = vsel %vm675_vm3, %v676_v63, %v677_v6  ;;  %v680_v23 = vsel %vm675_vm3, %v677_v6, %v679_v9  ;;  %v686_v25 = vrot.slane %v2880_v33, 2  ;;  %v687_v30 = vrot.slane %v2883_v34, 2 }
  0x1f   : > { %2521 = vmatmul.mubr.msk.f32.gmra.mxu1 %vm313_vm2, %v2969_v0  ;;  %2511 = vmatprep.mubr.msk.f32.mxu0 %vm313_vm2, %v2972_v1  ;;  %v3016_v37 = vsel %vm675_vm3, %v681_v10, %v682_v16  ;;  %v689_v38 = vrot.slane %v2901_v41, 2  ;;  %v691_v40 = vrot.slane %v2920_v47, 2  ;;  %v1087_v45 = vrot.slane %v3000_v18, 1 }
  0x20   : > { %2523 = vmatprep.mubr.msk.f32.mxu1 %vm313_vm2, %v2977_v7  ;;  %v1262_v51 = vrot.slane %v3000_v18, 2  ;;  %v1088_v52 = vrot.slane %v3010_v31, 1  ;;  %v1090_v41 = vrot.slane %v241_v32, 1  ;;  %v3039_v57 = vsel %vm675_vm3, %v682_v16, %v684_v24 }
  0x21   : > { %v3042_v58 = vsel %vm675_vm3, %v686_v25, %v687_v30  ;;  %v1263_v63 = vrot.slane %v3010_v31, 2  ;;  %v1610_v2 = vrot.slane %v3027_v50, 1  ;;  %v1785_v6 = vrot.slane %v3027_v50, 2 }
  0x22   : > { %2512 = vmatmul.mubr.msk.f32.gmra.mxu0 %vm313_vm2, %v2987_v11  ;;  %v1265_v9 = vrot.slane %v241_v32, 2  ;;  %v3077_v24 = vsel %vm675_vm3, %v687_v30, %v689_v38  ;;  %v1788_v32 = vrot.slane %v244_v56, 2 }
  0x23   : > { %2524 = vmatmul.mubr.msk.f32.gmra.mxu1 %vm313_vm2, %v2992_v12  ;;  %2554 = vmatprep.mubr.msk.f32.mxu0 %vm313_vm2, %v678_v15  ;;  %v3063_v15 = vld [vmem:[%s2807_s26 + $0xe0] sm:$0xff] }
  0x24   : > { %2528 = vmatprep.mubr.msk.f32.mxu1 %vm313_vm2, %v2810_v3  ;;  %v692_v3 = vrot.slane %v2923_v48, 2  ;;  %v1611_v10 = vrot.slane %v3063_v15, 1  ;;  %v1786_v16 = vrot.slane %v3063_v15, 2  ;;  %v3082_v25 = vsel %vm675_vm3, %v1263_v63, %v1265_v9 }
  0x25   : > { %v702_v9 = vrot.slane %v2845_v20, 2 }
  0x26   : > { %2555 = vmatmul.mubr.msk.f32.vlgmr.msra.gmra.mxu0 %vm313_vm2, %v680_v23  ;;  %v1613_v23 = vrot.slane %v244_v56, 1  ;;  %v3093_v30 = vsel %vm675_vm3, %v1785_v6, %v1786_v16  ;;  %v697_v56 = vrot.slane %v2821_v8, 2  ;;  %v701_v6 = vrot.slane %v2842_v19, 2 }
  0x27   : > { %2529 = vmatmul.mubr.msk.f32.vlgmr.msra.gmra.mxu1 %vm313_vm2, %v2813_v4  ;;  %2605 = vmatpush3.msk.msra.mxu0 %vm346_vm0, %v2868_v28  ;;  %v3056_v4 = vsel %vm270_vm1, %v1087_v45, %v1088_v52  ;;  %v3059_v28 = vsel %vm270_vm1, %v1088_v52, %v1090_v41  ;;  %v694_v45 = vrot.slane %v2950_v59, 2  ;;  %v3101_v52 = vsel %vm675_vm3, %v691_v40, %v692_v3 }
  0x28   : > { %2579 = vmatpush3.msk.msra.mxu1 %vm346_vm0, %v2850_v21  ;;  %2531 = vmatprep.mubr.msk.f32.mxu1 %vm313_vm2, %v2833_v14  ;;  %v3070_v21 = vsel %vm675_vm3, %v1262_v51, %v1263_v63  ;;  %v3090_v51 = vsel %vm270_vm1, %v1610_v2, %v1611_v10  ;;  %v3096_v38 = vsel %vm270_vm1, %v1611_v10, %v1613_v23  ;;  %v696_v41 = vrot.slane %v2816_v5, 2 }
  0x29   : > { %2557 = vmatprep.mubr.msk.f32.mxu0 %vm313_vm2, %v3016_v37  ;;  %2630 = vmatprep.subr.msk.mxu1 %vm346_vm0, %v3023_v26  ;;  %v3106_v59 = vsel %vm675_vm3, %v1786_v16, %v1788_v32  ;;  %v3115_v63 = vsel %vm675_vm3, %v692_v3, %v694_v45  ;;  %v699_v40 = vrot.slane %v2830_v13, 2  ;;  %v704_v3 = vrot.slane %v2863_v27, 2 }
  0x2a   : > { %2558 = vmatmul.mubr.msk.f32.gmra.mxu0 %vm313_vm2, %v3039_v57  ;;  %2656 = vmatprep.subr.msk.mxu0 %vm346_vm0, %v3047_v61  ;;  %v3121_v2 = vsel %vm675_vm3, %v696_v41, %v697_v56  ;;  %v3138_v10 = vsel %vm675_vm3, %v701_v6, %v702_v9  ;;  %v706_v16 = vrot.slane %v2886_v35, 2  ;;  %v707_v23 = vrot.slane %v2897_v39, 2 }
  0x2b   : > { %2532 = vmatmul.mubr.msk.f32.gmra.mxu1 %vm313_vm2, %v2838_v17  ;;  %2560 = vmatprep.mubr.msk.f32.mxu0 %vm313_vm2, %v3042_v58  ;;  %v3132_v13 = vsel %vm675_vm3, %v697_v56, %v699_v40  ;;  %v3149_v27 = vsel %vm675_vm3, %v702_v9, %v704_v3  ;;  %v709_v32 = vrot.slane %v2917_v46, 2  ;;  %v711_v41 = vrot.slane %v2934_v53, 2 }
  0x2c   : > { %2534 = vmatprep.mubr.msk.f32.mxu1 %vm313_vm2, %v2880_v33  ;;  %v3155_v45 = vsel %vm675_vm3, %v706_v16, %v707_v23  ;;  %v712_v56 = vrot.slane %v2937_v54, 2  ;;  %v714_v40 = vrot.slane %v2963_v62, 2  ;;  %v2308_v62 = vld [vmem:[%s3669_s1 + $0x1c] sm:$0xf] }
  0x2d   : > { %v3166_v46 = vsel %vm675_vm3, %v707_v23, %v709_v32 }
  0x2e   : > { %2561 = vmatmul.mubr.msk.f32.gmra.mxu0 %vm313_vm2, %v3077_v24  ;;  %v3172_v6 = vsel %vm675_vm3, %v711_v41, %v712_v56  ;;  %v3181_v9 = vsel %vm675_vm3, %v712_v56, %v714_v40 }
  0x2f   : > { %2535 = vmatmul.mubr.msk.f32.gmra.mxu1 %vm313_vm2, %v2883_v34  ;;  %2563 = vmatprep.mubr.msk.f32.mxu0 %vm313_vm2, %v3101_v52 }
  0x30   : > { %2537 = vmatprep.mubr.msk.f32.mxu1 %vm313_vm2, %v2920_v47 }
  0x32   : > { %2564 = vmatmul.mubr.msk.f32.gmra.mxu0 %vm313_vm2, %v3115_v63 }
  0x33   : > { %2538 = vmatmul.mubr.msk.f32.gmra.mxu1 %vm313_vm2, %v2923_v48  ;;  %2566 = vmatprep.mubr.msk.f32.mxu0 %vm313_vm2, %v3121_v2 }
  0x34   : > { %2540 = vmatprep.mubr.msk.f32.mxu1 %vm313_vm2, %v2816_v5 }
  0x36   : > { %2567 = vmatmul.mubr.msk.f32.gmra.mxu0 %vm313_vm2, %v3132_v13 }
  0x37   : > { %2541 = vmatmul.mubr.msk.f32.gmra.mxu1 %vm313_vm2, %v2821_v8  ;;  %2569 = vmatprep.mubr.msk.f32.mxu0 %vm313_vm2, %v3138_v10 }
  0x38   : > { %2543 = vmatprep.mubr.msk.f32.mxu1 %vm313_vm2, %v2842_v19 }
  0x3a   : > { %2570 = vmatmul.mubr.msk.f32.gmra.mxu0 %vm313_vm2, %v3149_v27 }
  0x3b   : > { %2544 = vmatmul.mubr.msk.f32.gmra.mxu1 %vm313_vm2, %v2845_v20  ;;  %2572 = vmatprep.mubr.msk.f32.mxu0 %vm313_vm2, %v3155_v45 }
  0x3c   : > { %2546 = vmatprep.mubr.msk.f32.mxu1 %vm313_vm2, %v2886_v35 }
  0x3e   : > { %2573 = vmatmul.mubr.msk.f32.gmra.mxu0 %vm313_vm2, %v3166_v46 }
  0x3f   : > { %2547 = vmatmul.mubr.msk.f32.gmra.mxu1 %vm313_vm2, %v2897_v39  ;;  %2575 = vmatprep.mubr.msk.f32.mxu0 %vm313_vm2, %v3172_v6 }
  0x40   : > { %2549 = vmatprep.mubr.msk.f32.mxu1 %vm313_vm2, %v2934_v53 }
  0x42   : > { %2576 = vmatmul.mubr.msk.f32.gmra.mxu0 %vm313_vm2, %v3181_v9 }
  0x43   : > { %2550 = vmatmul.mubr.msk.f32.gmra.mxu1 %vm313_vm2, %v2937_v54  ;;  %2606 = vmatprep.mubr.msk.f32.mxu0 %vm313_vm2, %v2892_v36  ;;  %v2326_v36 = vld [vmem:[%s3669_s1 + $0x20] sm:$0xf] }
  0x44   : > { %2580 = vmatprep.mubr.msk.f32.mxu1 %vm313_vm2, %v2833_v14 }
  0x46   : > { %2607 = vmatmul.mubr.msk.f32.vlgmr.msra.gmra.mxu0 %vm313_vm2, %v2910_v43 }
  0x47   : > { %2581 = vmatmul.mubr.msk.f32.vlgmr.msra.gmra.mxu1 %vm313_vm2, %v2838_v17  ;;  %2657 = vmatpush3.msk.msra.mxu0 %vm346_vm0, %v3047_v61 }
  0x48   : > { %2631 = vmatpush3.msk.msra.mxu1 %vm346_vm0, %v3023_v26  ;;  %2583 = vmatprep.mubr.msk.f32.mxu1 %vm313_vm2, %v2880_v33 }
  0x49   : > { %2609 = vmatprep.mubr.msk.f32.mxu0 %vm313_vm2, %v2928_v49  ;;  %2682 = vmatprep.subr.msk.mxu1 %vm346_vm0, %v2308_v62 }
  0x4a   : > { %2610 = vmatmul.mubr.msk.f32.gmra.mxu0 %vm313_vm2, %v2959_v60  ;;  %2708 = vmatprep.subr.msk.mxu0 %vm346_vm0, %v2326_v36 }
  0x4b   : > { %2584 = vmatmul.mubr.msk.f32.gmra.mxu1 %vm313_vm2, %v2883_v34  ;;  %2612 = vmatprep.mubr.msk.f32.mxu0 %vm313_vm2, %v2972_v1 }
  0x4c   : > { %2586 = vmatprep.mubr.msk.f32.mxu1 %vm313_vm2, %v2920_v47 }
  0x4e   : > { %2613 = vmatmul.mubr.msk.f32.gmra.mxu0 %vm313_vm2, %v2987_v11 }
  0x4f   : > { %2587 = vmatmul.mubr.msk.f32.gmra.mxu1 %vm313_vm2, %v2923_v48  ;;  %2615 = vmatprep.mubr.msk.f32.mxu0 %vm313_vm2, %v2854_v22 }
  0x50   : > { %2589 = vmatprep.mubr.msk.f32.mxu1 %vm313_vm2, %v2816_v5 }
  0x52   : > { %2616 = vmatmul.mubr.msk.f32.gmra.mxu0 %vm313_vm2, %v2874_v29 }
  0x53   : > { %2590 = vmatmul.mubr.msk.f32.gmra.mxu1 %vm313_vm2, %v2821_v8  ;;  %2618 = vmatprep.mubr.msk.f32.mxu0 %vm313_vm2, %v2907_v42 }
  0x54   : > { %2592 = vmatprep.mubr.msk.f32.mxu1 %vm313_vm2, %v2842_v19 }
  0x56   : > { %2619 = vmatmul.mubr.msk.f32.gmra.mxu0 %vm313_vm2, %v2913_v44 }
  0x57   : > { %2593 = vmatmul.mubr.msk.f32.gmra.mxu1 %vm313_vm2, %v2845_v20  ;;  %2621 = vmatprep.mubr.msk.f32.mxu0 %vm313_vm2, %v2944_v55 }
  0x58   : > { %2595 = vmatprep.mubr.msk.f32.mxu1 %vm313_vm2, %v2886_v35 }
  0x5a   : > { %2622 = vmatmul.mubr.msk.f32.gmra.mxu0 %vm313_vm2, %v2969_v0 }
  0x5b   : > { %2596 = vmatmul.mubr.msk.f32.gmra.mxu1 %vm313_vm2, %v2897_v39  ;;  %2624 = vmatprep.mubr.msk.f32.mxu0 %vm313_vm2, %v2977_v7 }
  0x5c   : > { %2598 = vmatprep.mubr.msk.f32.mxu1 %vm313_vm2, %v2934_v53 }
  0x5e   : > { %2625 = vmatmul.mubr.msk.f32.gmra.mxu0 %vm313_vm2, %v2992_v12 }
  0x5f   : > { %2599 = vmatmul.mubr.msk.f32.gmra.mxu1 %vm313_vm2, %v2937_v54  ;;  %2627 = vmatprep.mubr.msk.f32.mxu0 %vm313_vm2, %v3056_v4 }
  0x60   : > { %2601 = vmatprep.mubr.msk.f32.mxu1 %vm313_vm2, %v3000_v18 }
  0x62   : > { %2628 = vmatmul.mubr.msk.f32.gmra.mxu0 %vm313_vm2, %v3059_v28 }
  0x63   : > { %2602 = vmatmul.mubr.msk.f32.gmra.mxu1 %vm313_vm2, %v3010_v31  ;;  %2658 = vmatprep.mubr.msk.f32.mxu0 %vm313_vm2, %v2880_v33 }
  0x64   : > { %2632 = vmatprep.mubr.msk.f32.mxu1 %vm313_vm2, %v3016_v37 }
  0x66   : > { %2659 = vmatmul.mubr.msk.f32.vlgmr.msra.gmra.mxu0 %vm313_vm2, %v2883_v34 }
  0x67   : > { %2633 = vmatmul.mubr.msk.f32.vlgmr.msra.gmra.mxu1 %vm313_vm2, %v3039_v57  ;;  %2709 = vmatpush3.msk.msra.mxu0 %vm346_vm0, %v2326_v36 }
  0x68   : > { %2683 = vmatpush3.msk.msra.mxu1 %vm346_vm0, %v2308_v62  ;;  %2635 = vmatprep.mubr.msk.f32.mxu1 %vm313_vm2, %v3042_v58 }
  0x69   : > { %2661 = vmatprep.mubr.msk.f32.mxu0 %vm313_vm2, %v2920_v47 }
  0x6a   : > { %2662 = vmatmul.mubr.msk.f32.gmra.mxu0 %vm313_vm2, %v2923_v48 }
  0x6b   : > { %2636 = vmatmul.mubr.msk.f32.gmra.mxu1 %vm313_vm2, %v3077_v24  ;;  %2664 = vmatprep.mubr.msk.f32.mxu0 %vm313_vm2, %v2816_v5 }
  0x6c   : > { %2638 = vmatprep.mubr.msk.f32.mxu1 %vm313_vm2, %v3101_v52 }
  0x6e   : > { %2665 = vmatmul.mubr.msk.f32.gmra.mxu0 %vm313_vm2, %v2821_v8 }
  0x6f   : > { %2639 = vmatmul.mubr.msk.f32.gmra.mxu1 %vm313_vm2, %v3115_v63  ;;  %2667 = vmatprep.mubr.msk.f32.mxu0 %vm313_vm2, %v2842_v19 }
  0x70   : > { %2641 = vmatprep.mubr.msk.f32.mxu1 %vm313_vm2, %v3121_v2 }
  0x72   : > { %2668 = vmatmul.mubr.msk.f32.gmra.mxu0 %vm313_vm2, %v2845_v20 }
  0x73   : > { %2642 = vmatmul.mubr.msk.f32.gmra.mxu1 %vm313_vm2, %v3132_v13  ;;  %2670 = vmatprep.mubr.msk.f32.mxu0 %vm313_vm2, %v2886_v35 }
  0x74   : > { %2644 = vmatprep.mubr.msk.f32.mxu1 %vm313_vm2, %v3138_v10 }
  0x76   : > { %2671 = vmatmul.mubr.msk.f32.gmra.mxu0 %vm313_vm2, %v2897_v39 }
  0x77   : > { %2645 = vmatmul.mubr.msk.f32.gmra.mxu1 %vm313_vm2, %v3149_v27  ;;  %2673 = vmatprep.mubr.msk.f32.mxu0 %vm313_vm2, %v2934_v53 }
  0x78   : > { %2647 = vmatprep.mubr.msk.f32.mxu1 %vm313_vm2, %v3155_v45 }
  0x7a   : > { %2674 = vmatmul.mubr.msk.f32.gmra.mxu0 %vm313_vm2, %v2937_v54 }
  0x7b   : > { %2648 = vmatmul.mubr.msk.f32.gmra.mxu1 %vm313_vm2, %v3166_v46  ;;  %2676 = vmatprep.mubr.msk.f32.mxu0 %vm313_vm2, %v3000_v18 }
  0x7c   : > { %2650 = vmatprep.mubr.msk.f32.mxu1 %vm313_vm2, %v3172_v6 }
  0x7e   : > { %2677 = vmatmul.mubr.msk.f32.gmra.mxu0 %vm313_vm2, %v3010_v31 }
  0x7f   : > { %2651 = vmatmul.mubr.msk.f32.gmra.mxu1 %vm313_vm2, %v3181_v9  ;;  %2679 = vmatprep.mubr.msk.f32.mxu0 %vm313_vm2, %v3027_v50 }
  0x80   : > { %2653 = vmatprep.mubr.msk.f32.mxu1 %vm313_vm2, %v3070_v21 }
  0x82   : > { %2680 = vmatmul.mubr.msk.f32.gmra.mxu0 %vm313_vm2, %v3063_v15 }
  0x83   : > { %2654 = vmatmul.mubr.msk.f32.gmra.mxu1 %vm313_vm2, %v3082_v25  ;;  %2710 = vmatprep.mubr.msk.f32.mxu0 %vm313_vm2, %v3042_v58 }
  0x84   : > { %2684 = vmatprep.mubr.msk.f32.mxu1 %vm313_vm2, %v2928_v49 }
  0x86   : > { %2711 = vmatmul.mubr.msk.f32.vlgmr.msra.gmra.mxu0 %vm313_vm2, %v3077_v24 }
  0x87   : > { %2685 = vmatmul.mubr.msk.f32.vlgmr.msra.gmra.mxu1 %vm313_vm2, %v2959_v60  ;;  %2713 = vmatprep.mubr.msk.f32.mxu0 %vm313_vm2, %v3101_v52 }
  0x88   : > { %2687 = vmatprep.mubr.msk.f32.mxu1 %vm313_vm2, %v2972_v1 }
  0x8a   : > { %2714 = vmatmul.mubr.msk.f32.gmra.mxu0 %vm313_vm2, %v3115_v63 }
  0x8b   : > { %2688 = vmatmul.mubr.msk.f32.gmra.mxu1 %vm313_vm2, %v2987_v11  ;;  %2716 = vmatprep.mubr.msk.f32.mxu0 %vm313_vm2, %v3121_v2 }
  0x8c   : > { %2690 = vmatprep.mubr.msk.f32.mxu1 %vm313_vm2, %v2854_v22 }
  0x8e   : > { %2717 = vmatmul.mubr.msk.f32.gmra.mxu0 %vm313_vm2, %v3132_v13 }
  0x8f   : > { %2691 = vmatmul.mubr.msk.f32.gmra.mxu1 %vm313_vm2, %v2874_v29  ;;  %2719 = vmatprep.mubr.msk.f32.mxu0 %vm313_vm2, %v3138_v10 }
  0x90   : > { %2693 = vmatprep.mubr.msk.f32.mxu1 %vm313_vm2, %v2907_v42 }
  0x92   : > { %2720 = vmatmul.mubr.msk.f32.gmra.mxu0 %vm313_vm2, %v3149_v27 }
  0x93   : > { %2694 = vmatmul.mubr.msk.f32.gmra.mxu1 %vm313_vm2, %v2913_v44  ;;  %2722 = vmatprep.mubr.msk.f32.mxu0 %vm313_vm2, %v3155_v45 }
  0x94   : > { %2696 = vmatprep.mubr.msk.f32.mxu1 %vm313_vm2, %v2944_v55 }
  0x96   : > { %2723 = vmatmul.mubr.msk.f32.gmra.mxu0 %vm313_vm2, %v3166_v46 }
  0x97   : > { %2697 = vmatmul.mubr.msk.f32.gmra.mxu1 %vm313_vm2, %v2969_v0  ;;  %2725 = vmatprep.mubr.msk.f32.mxu0 %vm313_vm2, %v3172_v6 }
  0x98   : > { %2699 = vmatprep.mubr.msk.f32.mxu1 %vm313_vm2, %v2977_v7 }
  0x9a   : > { %2726 = vmatmul.mubr.msk.f32.gmra.mxu0 %vm313_vm2, %v3181_v9 }
  0x9b   : > { %2700 = vmatmul.mubr.msk.f32.gmra.mxu1 %vm313_vm2, %v2992_v12  ;;  %2728 = vmatprep.mubr.msk.f32.mxu0 %vm313_vm2, %v3070_v21 }
  0x9c   : > { %2702 = vmatprep.mubr.msk.f32.mxu1 %vm313_vm2, %v3056_v4 }
  0x9e   : > { %2729 = vmatmul.mubr.msk.f32.gmra.mxu0 %vm313_vm2, %v3082_v25 }
  0x9f   : > { %2703 = vmatmul.mubr.msk.f32.gmra.mxu1 %vm313_vm2, %v3059_v28  ;;  %2731 = vmatprep.mubr.msk.f32.mxu0 %vm313_vm2, %v3093_v30 }
  0xa0   : > { %2705 = vmatprep.mubr.msk.f32.mxu1 %vm313_vm2, %v3090_v51 }
  0xa2   : > { %2732 = vmatmul.mubr.msk.f32.gmra.mxu0 %vm313_vm2, %v3106_v59 }
  0xa3   : > { %2706 = vmatmul.mubr.msk.f32.gmra.mxu1 %vm313_vm2, %v3096_v38 }
  0xd6   : > { %v2504_v5 = vpop.f32.mrf.mxu0 }
  0xd7   : > { %v2516_v8 = vpop.f32.mrf.mxu1 }
  0xd8   : > { %v416_v14 = vpop.f32.mrf.mxu0 }
  0xd9   : > { %v456_v17 = vpop.f32.mrf.mxu1 }
  0xda   : > { %v2507_v19 = vpop.f32.mrf.mxu0 }
  0xdb   : > { %v2519_v20 = vpop.f32.mrf.mxu1 }
  0xdc   : > { %v426_v22 = vpop.f32.mrf.mxu0 }
  0xdd   : > { %v466_v29 = vpop.f32.mrf.mxu1 }
  0xde   : > { %v2510_v33 = vpop.f32.mrf.mxu0 }
  0xdf   : > { %v2522_v34 = vpop.f32.mrf.mxu1 }
  0xe0   : > { %v436_v35 = vpop.f32.mrf.mxu0 }
  0xe1   : > { %v476_v39 = vpop.f32.mrf.mxu1 }
  0xe2   : > { %v2513_v42 = vpop.f32.mrf.mxu0 }
  0xe3   : > { %v2525_v43 = vpop.f32.mrf.mxu1 }
  0xe4   : > { %v446_v44 = vpop.f32.mrf.mxu0 }
  0xe5   : > { %v3395_v47 = vpop.f32.mrf.mxu1 }
  0xe6   : > { %v2556_v48 = vpop.f32.mrf.mxu0 }
  0xe7   : > { %v2530_v49 = vpop.f32.mrf.mxu1 }
  0xe8   : > { %v602_v53 = vadd.f32 %v2530_v49, %v2504_v5  ;;  %v819_v54 = vpop.f32.mrf.mxu0 }
  0xe9   : > { %v596_v55 = vpop.f32.mrf.mxu1 }
  0xea   : > { %v3397_v60 = vadd.f32 %v2556_v48, %v602_v53  ;;  %v597_v0 = vadd.f32 %v596_v55, %v416_v14  ;;  %v2559_v1 = vpop.f32.mrf.mxu0 }
  0xeb   : > { %v2533_v7 = vpop.f32.mrf.mxu1 }
  0xec   : > { %v3399_v11 = vadd.f32 %v819_v54, %v597_v0  ;;  %v612_v12 = vadd.f32 %v2533_v7, %v2507_v19  ;;  %v829_v18 = vpop.f32.mrf.mxu0 }
  0xed   : > { %v606_v31 = vpop.f32.mrf.mxu1 }
  0xee   : > { %v3401_v37 = vadd.f32 %v2559_v1, %v612_v12  ;;  %v607_v26 = vadd.f32 %v606_v31, %v426_v22  ;;  %v2562_v50 = vpop.f32.mrf.mxu0 }
  0xef   : > { %v2536_v57 = vpop.f32.mrf.mxu1 }
  0xf0   : > { %v3403_v58 = vadd.f32 %v829_v18, %v607_v26  ;;  %v622_v61 = vadd.f32 %v2536_v57, %v2510_v33  ;;  %v839_v4 = vpop.f32.mrf.mxu0 }
  0xf1   : > { %v616_v28 = vpop.f32.mrf.mxu1 }
  0xf2   : > { %v3405_v15 = vadd.f32 %v2562_v50, %v622_v61  ;;  %v617_v21 = vadd.f32 %v616_v28, %v436_v35  ;;  %v2565_v24 = vpop.f32.mrf.mxu0 }
  0xf3   : > { %v2539_v25 = vpop.f32.mrf.mxu1 }
  0xf4   : > { %v3407_v51 = vadd.f32 %v839_v4, %v617_v21  ;;  %v632_v30 = vadd.f32 %v2539_v25, %v2513_v42  ;;  %v849_v38 = vpop.f32.mrf.mxu0 }
  0xf5   : > { %v626_v52 = vpop.f32.mrf.mxu1 }
  0xf6   : > { %v3409_v59 = vadd.f32 %v2565_v24, %v632_v30  ;;  %v627_v63 = vadd.f32 %v626_v52, %v446_v44  ;;  %v2568_v2 = vpop.f32.mrf.mxu0 }
  0xf7   : > { %v2542_v13 = vpop.f32.mrf.mxu1 }
  0xf8   : > { %v3411_v3 = vadd.f32 %v849_v38, %v627_v63  ;;  %v642_v10 = vadd.f32 %v2542_v13, %v2516_v8  ;;  %v859_v16 = vpop.f32.mrf.mxu0 }
  0xf9   : > { %v636_v23 = vpop.f32.mrf.mxu1 }
  0xfa   : > { %v3413_v27 = vadd.f32 %v2568_v2, %v642_v10  ;;  %v637_v32 = vadd.f32 %v636_v23, %v456_v17  ;;  %v2571_v45 = vpop.f32.mrf.mxu0 }
  0xfb   : > { %v2545_v41 = vpop.f32.mrf.mxu1 }
  0xfc   : > { %v3415_v56 = vadd.f32 %v859_v16, %v637_v32  ;;  %v652_v46 = vadd.f32 %v2545_v41, %v2519_v20  ;;  %v869_v40 = vpop.f32.mrf.mxu0 }
  0xfd   : > { %v646_v6 = vpop.f32.mrf.mxu1 }
  0xfe   : > { %v3417_v9 = vadd.f32 %v2571_v45, %v652_v46  ;;  %v647_v62 = vadd.f32 %v646_v6, %v466_v29  ;;  %v2574_v36 = vpop.f32.mrf.mxu0 }
  0xff   : > { %v2548_v5 = vpop.f32.mrf.mxu1 }
 0x100   : > { %v3419_v14 = vadd.f32 %v869_v40, %v647_v62  ;;  %v662_v8 = vadd.f32 %v2548_v5, %v2522_v34  ;;  %v879_v19 = vpop.f32.mrf.mxu0 }
 0x101   : > { %v656_v22 = vpop.f32.mrf.mxu1 }
 0x102   : > { %v3421_v33 = vadd.f32 %v2574_v36, %v662_v8  ;;  %v657_v17 = vadd.f32 %v656_v22, %v476_v39  ;;  %v2577_v35 = vpop.f32.mrf.mxu0 }
 0x103   : > { %v2551_v42 = vpop.f32.mrf.mxu1 }
 0x104   : > { %v3423_v44 = vadd.f32 %v879_v19, %v657_v17  ;;  %v672_v20 = vadd.f32 %v2551_v42, %v2525_v43  ;;  %v889_v48 = vpop.f32.mrf.mxu0 }
 0x105   : > { %v666_v49 = vpop.f32.mrf.mxu1 }
 0x106   : > { %v3425_v53 = vadd.f32 %v2577_v35, %v672_v20  ;;  %v667_v29 = vadd.f32 %v666_v49, %v3395_v47  ;;  %v3428_v54 = vpop.f32.mrf.mxu0 }
 0x107   : > { %v2582_v55 = vpop.f32.mrf.mxu1 }
 0x108   : > { %v3430_v34 = vadd.f32 %v889_v48, %v667_v29  ;;  %v3432_v0 = vpop.f32.mrf.mxu0 }
 0x109   : > { %v991_v1 = vpop.f32.mrf.mxu1 }
 0x10a   : > { %v3434_v39 = vpop.f32.mrf.mxu0 }
 0x10b   : > { %v2585_v7 = vpop.f32.mrf.mxu1 }
 0x10c   : > { %v3436_v12 = vpop.f32.mrf.mxu0 }
 0x10d   : > { %v1001_v43 = vpop.f32.mrf.mxu1 }
 0x10e   : > { %v3438_v18 = vpop.f32.mrf.mxu0 }
 0x10f   : > { %v2588_v31 = vpop.f32.mrf.mxu1 }
 0x110   : > { %v3440_v26 = vpop.f32.mrf.mxu0 }
 0x111   : > { %v1011_v47 = vpop.f32.mrf.mxu1 }
 0x112   : > { %v3442_v50 = vpop.f32.mrf.mxu0 }
 0x113   : > { %v2591_v57 = vpop.f32.mrf.mxu1 }
 0x114   : > { %v3444_v61 = vpop.f32.mrf.mxu0 }
 0x115   : > { %v1021_v4 = vpop.f32.mrf.mxu1 }
 0x116   : > { %v3446_v28 = vpop.f32.mrf.mxu0 }
 0x117   : > { %v2594_v21 = vpop.f32.mrf.mxu1 }
 0x118   : > { %v3448_v24 = vpop.f32.mrf.mxu0 }
 0x119   : > { %v3450_v25 = vpop.f32.mrf.mxu1 }
 0x11a   : > { %v3452_v30 = vpop.f32.mrf.mxu0 }
 0x11b   : > { %v2597_v38 = vpop.f32.mrf.mxu1 }
 0x11c   : > { %v3454_v52 = vpop.f32.mrf.mxu0 }
 0x11d   : > { %v1041_v63 = vpop.f32.mrf.mxu1 }
 0x11e   : > { %v3456_v2 = vpop.f32.mrf.mxu0 }
 0x11f   : > { %v2600_v13 = vpop.f32.mrf.mxu1 }
 0x120   : > { %v3458_v10 = vpop.f32.mrf.mxu0 }
 0x121   : > { %3673 = vst [vmem:[#allocation2_spill] sm:$0xff] %v3458_v10  ;;  %v3460_v16 = vpop.f32.mrf.mxu1 }
 0x122   : > { %v3462_v23 = vpop.f32.mrf.mxu0 }
 0x123   : > { %3674 = vst [vmem:[#allocation3_spill] sm:$0xff] %v3462_v23  ;;  %v3464_v32 = vpop.f32.mrf.mxu1 }
 0x124   : > { %v3466_v45 = vpop.f32.mrf.mxu0 }
 0x125   : > { %3675 = vst [vmem:[#allocation4_spill] sm:$0xff] %v3466_v45  ;;  %v3468_v41 = vpop.f32.mrf.mxu1 }
 0x126   : > { %v2660_v46 = vpop.f32.mrf.mxu0 }
 0x127   : > { %v2634_v40 = vpop.f32.mrf.mxu1 }
 0x128   : > { %v3470_v6 = vpop.f32.mrf.mxu0 }
 0x129   : > { %v1342_v62 = vpop.f32.mrf.mxu1 }
 0x12a   : > { %v3472_v36 = vpop.f32.mrf.mxu0 }
 0x12b   : > { %3676 = vst [vmem:[#allocation5_spill] sm:$0xff] %v3472_v36  ;;  %v2637_v5 = vpop.f32.mrf.mxu1 }
 0x12c   : > { %v3474_v8 = vpop.f32.mrf.mxu0 }
 0x12d   : > { %3677 = vst [vmem:[#allocation6_spill] sm:$0xff] %v3474_v8  ;;  %v1352_v19 = vpop.f32.mrf.mxu1 }
 0x12e   : > { %v3476_v22 = vpop.f32.mrf.mxu0 }
 0x12f   : > { %3678 = vst [vmem:[#allocation7_spill] sm:$0xff] %v3476_v22  ;;  %v2640_v17 = vpop.f32.mrf.mxu1 }
 0x130   : > { %v3478_v35 = vpop.f32.mrf.mxu0 }
 0x131   : > { %3679 = vst [vmem:[#allocation8_spill] sm:$0xff] %v3478_v35  ;;  %v1362_v42 = vpop.f32.mrf.mxu1 }
 0x132   : > { %v3480_v20 = vpop.f32.mrf.mxu0 }
 0x133   : > { %3680 = vst [vmem:[#allocation9_spill] sm:$0xff] %v3480_v20  ;;  %v3482_v48 = vpop.f32.mrf.mxu1  ;;  %v1071_v20 = vadd.f32 %v2582_v55, %v3397_v60  ;;  %v1074_v60 = vadd.f32 %v1011_v47, %v3407_v51  ;;  %v1080_v47 = vadd.f32 %v1041_v63, %v3419_v14 }
 0x134   : > { %3681 = vst [vmem:[#allocation10_spill] sm:$0xff] %v3482_v48  ;;  %v3484_v49 = vpop.f32.mrf.mxu0 }
 0x135   : > { %3682 = vst [vmem:[#allocation11_spill] sm:$0xff] %v3484_v49  ;;  %v3486_v29 = vpop.f32.mrf.mxu1  ;;  %v1070_v49 = vadd.f32 %v991_v1, %v3399_v11 }
 0x136   : > { %3683 = vst [vmem:[#allocation12_spill] sm:$0xff] %v3486_v29  ;;  %v3488_v45 = vpop.f32.mrf.mxu0 }
 0x137   : > { %3684 = vst [vmem:[#allocation13_spill] sm:$0xff] %v3488_v45  ;;  %v3490_v23 = vpop.f32.mrf.mxu1  ;;  %v1073_v45 = vadd.f32 %v2585_v7, %v3401_v37  ;;  %v1246_v11 = vadd.f32 %v3432_v0, %v1070_v49  ;;  %v1076_v37 = vadd.f32 %v1021_v4, %v3411_v3 }
 0x138   : > { %3685 = vst [vmem:[#allocation14_spill] sm:$0xff] %v3490_v23  ;;  %v3492_v8 = vpop.f32.mrf.mxu0 }
 0x139   : > { %3686 = vst [vmem:[#allocation15_spill] sm:$0xff] %v3492_v8  ;;  %v3494_v10 = vpop.f32.mrf.mxu1  ;;  %v1072_v8 = vadd.f32 %v1001_v43, %v3403_v58  ;;  %v1249_v7 = vadd.f32 %v3434_v39, %v1073_v45  ;;  %v1079_v43 = vadd.f32 %v2594_v21, %v3413_v27  ;;  %v1421_v0 = vadd.f32 %v1342_v62, %v1246_v11 }
 0x13a   : > { %v3496_v22 = vpop.f32.mrf.mxu0  ;;  %v1078_v39 = vadd.f32 %v3450_v25, %v3415_v56  ;;  %v1085_v56 = vadd.f32 %v3464_v32, %v3425_v53 }
 0x13b   : > { %3687 = vst [vmem:[#allocation16_spill] sm:$0xff] %v3496_v22  ;;  %v3498_v35 = vpop.f32.mrf.mxu1  ;;  %v1247_v22 = vadd.f32 %v3428_v54, %v1071_v20  ;;  %v1248_v54 = vadd.f32 %v3436_v12, %v1072_v8  ;;  %v1081_v12 = vadd.f32 %v2597_v38, %v3417_v9  ;;  %v1424_v27 = vadd.f32 %v2637_v5, %v1249_v7  ;;  %v3695_v8 = vld [vmem:[#allocation6_spill] sm:$0xff] }
 0x13c   : > { %3688 = vst [vmem:[#allocation17_spill] sm:$0xff] %v3498_v35  ;;  %v3501_v36 = vpop.f32.mrf.mxu0  ;;  %v1075_v35 = vadd.f32 %v2588_v31, %v3405_v15  ;;  %v1084_v9 = vadd.f32 %v3468_v41, %v3430_v34  ;;  %v1255_v38 = vadd.f32 %v3446_v28, %v1079_v43  ;;  %v1254_v45 = vadd.f32 %v3448_v24, %v1078_v39  ;;  %v3691_v28 = vld [vmem:[#allocation5_spill] sm:$0xff]  ;;  %v3692_v24 = vld [vmem:[#allocation2_spill] sm:$0xff] }
 0x13d   : > { %3689 = vst [vmem:[#allocation18_spill] sm:$0xff] %v3501_v36  ;;  %v3503_v48 = vpop.f32.mrf.mxu1  ;;  %v1077_v36 = vadd.f32 %v2591_v57, %v3409_v59  ;;  %v1422_v1 = vadd.f32 %v2634_v40, %v1247_v22  ;;  %v1250_v59 = vadd.f32 %v3440_v26, %v1074_v60  ;;  %v1083_v26 = vadd.f32 %v2600_v13, %v3421_v33  ;;  %v3697_v60 = vld [vmem:[#allocation8_spill] sm:$0xff] }
 0x13e   : > { %3690 = vst [vmem:[#allocation19_spill] sm:$0xff] %v3503_v48  ;;  %v3506_v29 = vpop.f32.mrf.mxu0  ;;  %v1251_v51 = vadd.f32 %v3438_v18, %v1075_v35  ;;  %v1252_v18 = vadd.f32 %v3444_v61, %v1076_v37  ;;  %v1423_v14 = vadd.f32 %v1352_v19, %v1248_v54  ;;  %v1593_v61 = vadd.f32 %v3470_v6, %v1421_v0  ;;  %v3698_v37 = vld [vmem:[#allocation10_spill] sm:$0xff]  ;;  %v3699_v7 = vld [vmem:[#allocation12_spill] sm:$0xff] }
 0x13f   : > { %v3510_v23 = vpop.f32.mrf.mxu1  ;;  %v1253_v3 = vadd.f32 %v3442_v50, %v1077_v36  ;;  %v1594_v4 = vadd.f32 %v2660_v46, %v1422_v1  ;;  %v1082_v50 = vadd.f32 %v3460_v16, %v3423_v44  ;;  %v1257_v46 = vadd.f32 %v3452_v30, %v1081_v12  ;;  %v3693_v30 = vld [vmem:[#allocation3_spill] sm:$0xff] }
 0x140   : > { %v3515_v55 = vpop.f32.mrf.mxu0  ;;  %v1426_v33 = vadd.f32 %v2640_v17, %v1251_v51  ;;  %v1256_v44 = vadd.f32 %v3454_v52, %v1080_v47  ;;  %v1425_v16 = vadd.f32 %v1362_v42, %v1250_v59  ;;  %v1259_v34 = vadd.f32 %v3456_v2, %v1083_v26  ;;  %v3694_v52 = vld [vmem:[#allocation4_spill] sm:$0xff]  ;;  %v3696_v17 = vld [vmem:[#allocation7_spill] sm:$0xff]  ;;  %v3700_v51 = vld [vmem:[#allocation14_spill] sm:$0xff] }
 0x141   : > { %v3518_v48 = vpop.f32.mrf.mxu1  ;;  %v1596_v32 = vadd.f32 %v3691_v28, %v1424_v27  ;;  %v1258_v62 = vadd.f32 %v3692_v24, %v1082_v50  ;;  %v3563_v36 = vadd.f32 %v3693_v30, %v1085_v56  ;;  %v3566_v5 = vadd.f32 %v3694_v52, %v1084_v9 }
 0x142   : > { %v3522_v58 = vpop.f32.mrf.mxu0  ;;  %v1595_v19 = vadd.f32 %v3695_v8, %v1423_v14  ;;  %v1598_v35 = vadd.f32 %v3696_v17, %v1426_v33  ;;  %v1597_v11 = vadd.f32 %v3697_v60, %v1425_v16  ;;  %v1428_v1 = vadd.f32 %v3698_v37, %v1253_v3  ;;  %v3703_v33 = vld [vmem:[#allocation9_spill] sm:$0xff]  ;;  %v3707_v30 = vld [vmem:[#allocation16_spill] sm:$0xff] }
 0x143   : > { %v3526_v15 = vpop.f32.mrf.mxu1  ;;  %v1427_v54 = vadd.f32 %v3699_v7, %v1252_v18  ;;  %v1430_v59 = vadd.f32 %v3700_v51, %v1255_v38  ;;  %v3701_v27 = vld [vmem:[#allocation17_spill] sm:$0xff]  ;;  %v1433_v60 = vadd.f32 %v3518_v48, %v1258_v62 }
 0x144   : > { %v3531_v31 = vpop.f32.mrf.mxu0  ;;  %v3708_v17 = vld [vmem:[#allocation18_spill] sm:$0xff] }
 0x145   : > { %v3538_v57 = vpop.f32.mrf.mxu1  ;;  %v3702_v56 = vld [vmem:[#allocation19_spill] sm:$0xff] }
 0x146   : > { %v2712_v21 = vpop.f32.mrf.mxu0  ;;  %v1431_v9 = vadd.f32 %v3702_v56, %v1256_v44 }
 0x147   : > { %v2686_v25 = vpop.f32.mrf.mxu1 }
 0x148   : > { %v1770_v63 = vadd.f32 %v2686_v25, %v1594_v4  ;;  %v1865_v13 = vpop.f32.mrf.mxu0  ;;  %v1429_v4 = vadd.f32 %v3494_v10, %v1254_v45 }
 0x149   : > { %v1690_v53 = vpop.f32.mrf.mxu1 }
 0x14a   : > { %v1945_v41 = vadd.f32 %v2712_v21, %v1770_v63  ;;  %v1769_v40 = vadd.f32 %v1690_v53, %v1593_v61  ;;  %v2715_v6 = vpop.f32.mrf.mxu0  ;;  %v1432_v21 = vadd.f32 %v3701_v27, %v1257_v46  ;;  %v1600_v63 = vadd.f32 %v3703_v33, %v1428_v1  ;;  %v3705_v53 = vld [vmem:[#allocation13_spill] sm:$0xff] }
 0x14b   : > { %v2689_v22 = vpop.f32.mrf.mxu1  ;;  %v1602_v28 = vadd.f32 %v3705_v53, %v1430_v59 }
 0x14c   : > { %1962 = vst.msk [vmem:[%s3557_s18 + $0x8] sm:$0xff] %vm1960_vm4, %v1945_v41  ;;  %v2017_v2 = vmul.f32 %v1945_v41, %v1945_v41  ;;  %v1944_v42 = vadd.f32 %v1865_v13, %v1769_v40  ;;  %v1772_v20 = vadd.f32 %v2689_v22, %v1596_v32  ;;  %v1875_v49 = vpop.f32.mrf.mxu0  ;;  %v1978_v0 = vsel %vm1960_vm4, %v1945_v41, 0.0  ;;  %v3704_v13 = vld [vmem:[#allocation11_spill] sm:$0xff] }
 0x14d   : > { %v1700_v43 = vpop.f32.mrf.mxu1  ;;  %v1599_v10 = vadd.f32 %v3704_v13, %v1427_v54  ;;  %v1604_v52 = vadd.f32 %v3707_v30, %v1432_v21 }
 0x14e   : > { %1961 = vst.msk [vmem:[%s3557_s18] sm:$0xff] %vm1960_vm4, %v1944_v42  ;;  %v1977_v39 = vsel %vm1960_vm4, %v1944_v42, 0.0  ;;  %v2016_v12 = vmul.f32 %v1944_v42, %v1944_v42  ;;  %v1947_v47 = vadd.f32 %v2715_v6, %v1772_v20  ;;  %v2718_v26 = vpop.f32.mrf.mxu0  ;;  %v1771_v50 = vadd.f32 %v1700_v43, %v1595_v19  ;;  %v3706_v6 = vld [vmem:[#allocation15_spill] sm:$0xff] }
 0x14f   : > { %v1979_v3 = vadd.f32 %v1978_v0, %v1977_v39  ;;  %v2692_v18 = vpop.f32.mrf.mxu1  ;;  %v2033_v14 = vsel %vm1960_vm4, %v2017_v2, 0.0  ;;  %v1601_v24 = vadd.f32 %v3706_v6, %v1429_v4  ;;  %v1434_v2 = vadd.f32 %v3510_v23, %v1259_v34 }
 0x150   : > { %v2032_v25 = vsel %vm1960_vm4, %v2016_v12, 0.0  ;;  %1964 = vst.msk [vmem:[%s3557_s18 + $0x18] sm:$0xff] %vm1960_vm4, %v1947_v47  ;;  %v1774_v38 = vadd.f32 %v2692_v18, %v1598_v35  ;;  %v1885_v61 = vpop.f32.mrf.mxu0  ;;  %v1946_v46 = vadd.f32 %v1875_v49, %v1771_v50  ;;  %v2019_v44 = vmul.f32 %v1947_v47, %v1947_v47 }
 0x151   : > { %v2034_v45 = vadd.f32 %v2033_v14, %v2032_v25  ;;  %v1710_v16 = vpop.f32.mrf.mxu1  ;;  %v1603_v35 = vadd.f32 %v3708_v17, %v1431_v9  ;;  %v1606_v12 = vadd.f32 %v3506_v29, %v1434_v2 }
 0x152   : > { %v1949_v32 = vadd.f32 %v2718_v26, %v1774_v38  ;;  %v1773_v41 = vadd.f32 %v1710_v16, %v1597_v11  ;;  %v2721_v40 = vpop.f32.mrf.mxu0  ;;  %1963 = vst.msk [vmem:[%s3557_s18 + $0x10] sm:$0xff] %vm1960_vm4, %v1946_v46  ;;  %v1980_v8 = vsel %vm1960_vm4, %v1946_v46, 0.0  ;;  %v2018_v19 = vmul.f32 %v1946_v46, %v1946_v46 }
 0x153   : > { %v2695_v22 = vpop.f32.mrf.mxu1  ;;  %v1981_v42 = vadd.f32 %v1980_v8, %v1979_v3  ;;  %v1982_v11 = vsel %vm1960_vm4, %v1947_v47, 0.0  ;;  %v2037_v54 = vsel %vm1960_vm4, %v2019_v44, 0.0  ;;  %v1435_v46 = vadd.f32 %v3538_v57, %v3566_v5 }
 0x154   : > { %1966 = vst.msk [vmem:[%s3557_s18 + $0x28] sm:$0xff] %vm1960_vm4, %v1949_v32  ;;  %v1948_v20 = vadd.f32 %v1885_v61, %v1773_v41  ;;  %v1895_v49 = vpop.f32.mrf.mxu0  ;;  %v2035_v37 = vsel %vm1960_vm4, %v2018_v19, 0.0  ;;  %v1776_v1 = vadd.f32 %v2695_v22, %v1600_v63  ;;  %v2021_v43 = vmul.f32 %v1949_v32, %v1949_v32 }
 0x155   : > { %v1720_v7 = vpop.f32.mrf.mxu1  ;;  %v2036_v51 = vadd.f32 %v2035_v37, %v2034_v45  ;;  %v1983_v23 = vadd.f32 %v1982_v11, %v1981_v42  ;;  %v1986_v21 = vsel %vm1960_vm4, %v1949_v32, 0.0  ;;  %v1605_v61 = vadd.f32 %v3515_v55, %v1433_v60 }
 0x156   : > { %1965 = vst.msk [vmem:[%s3557_s18 + $0x20] sm:$0xff] %vm1960_vm4, %v1948_v20  ;;  %v1984_v34 = vsel %vm1960_vm4, %v1948_v20, 0.0  ;;  %v2724_v59 = vpop.f32.mrf.mxu0  ;;  %v2020_v0 = vmul.f32 %v1948_v20, %v1948_v20  ;;  %v1951_v39 = vadd.f32 %v2721_v40, %v1776_v1  ;;  %v1775_v48 = vadd.f32 %v1720_v7, %v1599_v10 }
 0x157   : > { %v2698_v62 = vpop.f32.mrf.mxu1  ;;  %v1985_v47 = vadd.f32 %v1984_v34, %v1983_v23  ;;  %v2038_v26 = vadd.f32 %v2037_v54, %v2036_v51  ;;  %v2041_v33 = vsel %vm1960_vm4, %v2021_v43, 0.0  ;;  %v1436_v45 = vadd.f32 %v3526_v15, %v3563_v36 }
 0x158   : > { %v1778_v4 = vadd.f32 %v2698_v62, %v1602_v28  ;;  %v1905_v27 = vpop.f32.mrf.mxu0  ;;  %v2039_v3 = vsel %vm1960_vm4, %v2020_v0, 0.0  ;;  %1968 = vst.msk [vmem:[%s3557_s18 + $0x38] sm:$0xff] %vm1960_vm4, %v1951_v39  ;;  %v2023_v50 = vmul.f32 %v1951_v39, %v1951_v39  ;;  %v1950_v18 = vadd.f32 %v1895_v49, %v1775_v48 }
 0x159   : > { %v1730_v56 = vpop.f32.mrf.mxu1  ;;  %v2040_v9 = vadd.f32 %v2039_v3, %v2038_v26  ;;  %v1987_v14 = vadd.f32 %v1986_v21, %v1985_v47  ;;  %v1990_v28 = vsel %vm1960_vm4, %v1951_v39, 0.0  ;;  %v1608_v49 = vadd.f32 %v3522_v58, %v1436_v45 }
 0x15a   : > { %v1953_v25 = vadd.f32 %v2724_v59, %v1778_v4  ;;  %v1777_v38 = vadd.f32 %v1730_v56, %v1601_v24  ;;  %v2727_v29 = vpop.f32.mrf.mxu0  ;;  %1967 = vst.msk [vmem:[%s3557_s18 + $0x30] sm:$0xff] %vm1960_vm4, %v1950_v18  ;;  %v1988_v63 = vsel %vm1960_vm4, %v1950_v18, 0.0  ;;  %v2022_v13 = vmul.f32 %v1950_v18, %v1950_v18 }
 0x15b   : > { %v2701_v10 = vpop.f32.mrf.mxu1  ;;  %v1989_v16 = vadd.f32 %v1988_v63, %v1987_v14  ;;  %v2042_v53 = vadd.f32 %v2041_v33, %v2040_v9  ;;  %v2045_v6 = vsel %vm1960_vm4, %v2023_v50, 0.0 }
 0x15c   : > { %1970 = vst.msk [vmem:[%s3557_s18 + $0x48] sm:$0xff] %vm1960_vm4, %v1953_v25  ;;  %v1915_v55 = vpop.f32.mrf.mxu0  ;;  %v2043_v44 = vsel %vm1960_vm4, %v2022_v13, 0.0  ;;  %v1952_v32 = vadd.f32 %v1905_v27, %v1777_v38  ;;  %v1780_v41 = vadd.f32 %v2701_v10, %v1604_v52  ;;  %v2025_v57 = vmul.f32 %v1953_v25, %v1953_v25 }
 0x15d   : > { %v1740_v40 = vpop.f32.mrf.mxu1  ;;  %v2044_v24 = vadd.f32 %v2043_v44, %v2042_v53  ;;  %v1991_v15 = vadd.f32 %v1990_v28, %v1989_v16  ;;  %v1994_v60 = vsel %vm1960_vm4, %v1953_v25, 0.0 }
 0x15e   : > { %v1779_v36 = vadd.f32 %v1740_v40, %v1603_v35  ;;  %v2730_v30 = vpop.f32.mrf.mxu0  ;;  %1969 = vst.msk [vmem:[%s3557_s18 + $0x40] sm:$0xff] %vm1960_vm4, %v1952_v32  ;;  %v1992_v5 = vsel %vm1960_vm4, %v1952_v32, 0.0  ;;  %v2024_v8 = vmul.f32 %v1952_v32, %v1952_v32  ;;  %v1955_v19 = vadd.f32 %v2727_v29, %v1780_v41 }
 0x15f   : > { %v2704_v22 = vpop.f32.mrf.mxu1  ;;  %v1993_v17 = vadd.f32 %v1992_v5, %v1991_v15  ;;  %v2046_v2 = vadd.f32 %v2045_v6, %v2044_v24  ;;  %v1607_v35 = vadd.f32 %v3531_v31, %v1435_v46  ;;  %v2049_v23 = vsel %vm1960_vm4, %v2025_v57, 0.0 }
 0x160   : > { %v1954_v52 = vadd.f32 %v1915_v55, %v1779_v36  ;;  %v1782_v42 = vadd.f32 %v2704_v22, %v1606_v12  ;;  %v1925_v20 = vpop.f32.mrf.mxu0  ;;  %v2047_v11 = vsel %vm1960_vm4, %v2024_v8, 0.0  ;;  %1972 = vst.msk [vmem:[%s3557_s18 + $0x58] sm:$0xff] %vm1960_vm4, %v1955_v19  ;;  %v2027_v58 = vmul.f32 %v1955_v19, %v1955_v19 }
 0x161   : > { %v1750_v37 = vpop.f32.mrf.mxu1  ;;  %v2048_v1 = vadd.f32 %v2047_v11, %v2046_v2  ;;  %v1995_v7 = vadd.f32 %v1994_v60, %v1993_v17  ;;  %v1998_v12 = vsel %vm1960_vm4, %v1955_v19, 0.0 }
 0x162   : > { %1971 = vst.msk [vmem:[%s3557_s18 + $0x50] sm:$0xff] %vm1960_vm4, %v1954_v52  ;;  %v1996_v54 = vsel %vm1960_vm4, %v1954_v52, 0.0  ;;  %v2026_v51 = vmul.f32 %v1954_v52, %v1954_v52  ;;  %v1957_v34 = vadd.f32 %v2730_v30, %v1782_v42  ;;  %v1781_v31 = vadd.f32 %v1750_v37, %v1605_v61  ;;  %v2733_v62 = vpop.f32.mrf.mxu0 }
 0x163   : > { %v2707_v59 = vpop.f32.mrf.mxu1  ;;  %v1997_v43 = vadd.f32 %v1996_v54, %v1995_v7  ;;  %v2050_v0 = vadd.f32 %v2049_v23, %v2048_v1  ;;  %v2053_v50 = vsel %vm1960_vm4, %v2027_v58, 0.0 }
 0x164   : > { %v2051_v39 = vsel %vm1960_vm4, %v2026_v51, 0.0  ;;  %v1784_v48 = vadd.f32 %v2707_v59, %v1608_v49  ;;  %1974 = vst.msk [vmem:[%s3557_s18 + $0x68] sm:$0xff] %vm1960_vm4, %v1957_v34  ;;  %v1956_v47 = vadd.f32 %v1925_v20, %v1781_v31  ;;  %v2029_v18 = vmul.f32 %v1957_v34, %v1957_v34  ;;  %v1935_v38 = vpop.f32.mrf.mxu0 }
 0x165   : > { %v1760_v26 = vpop.f32.mrf.mxu1  ;;  %v2052_v4 = vadd.f32 %v2051_v39, %v2050_v0  ;;  %v1999_v27 = vadd.f32 %v1998_v12, %v1997_v43  ;;  %v2002_v29 = vsel %vm1960_vm4, %v1957_v34, 0.0 }
 0x166   : > { %v1959_v21 = vadd.f32 %v2733_v62, %v1784_v48  ;;  %v1783_v3 = vadd.f32 %v1760_v26, %v1607_v35  ;;  %1973 = vst.msk [vmem:[%s3557_s18 + $0x60] sm:$0xff] %vm1960_vm4, %v1956_v47  ;;  %v2000_v56 = vsel %vm1960_vm4, %v1956_v47, 0.0  ;;  %v2028_v9 = vmul.f32 %v1956_v47, %v1956_v47 }
 0x167   : > { %v2001_v14 = vadd.f32 %v2000_v56, %v1999_v27  ;;  %v2054_v25 = vadd.f32 %v2053_v50, %v2052_v4  ;;  %v2057_v10 = vsel %vm1960_vm4, %v2029_v18, 0.0 }
 0x168   : > { %1976 = vst.msk [vmem:[%s3557_s18 + $0x78] sm:$0xff] %vm1960_vm4, %v1959_v21  ;;  %v2055_v61 = vsel %vm1960_vm4, %v2028_v9, 0.0  ;;  %v1958_v33 = vadd.f32 %v1935_v38, %v1783_v3  ;;  %v2031_v45 = vmul.f32 %v1959_v21, %v1959_v21  ;;  %v2006_v28 = vsel %vm1960_vm4, %v1959_v21, 0.0 }
 0x169   : > { %v2056_v63 = vadd.f32 %v2055_v61, %v2054_v25  ;;  %v2003_v13 = vadd.f32 %v2002_v29, %v2001_v14 }
 0x16a   : > { %1975 = vst.msk [vmem:[%s3557_s18 + $0x70] sm:$0xff] %vm1960_vm4, %v1958_v33  ;;  %v2004_v46 = vsel %vm1960_vm4, %v1958_v33, 0.0  ;;  %v2030_v16 = vmul.f32 %v1958_v33, %v1958_v33  ;;  %v2061_v40 = vsel %vm1960_vm4, %v2031_v45, 0.0 }
 0x16b   : > { %v2005_v53 = vadd.f32 %v2004_v46, %v2003_v13  ;;  %v2058_v55 = vadd.f32 %v2057_v10, %v2056_v63 }
 0x16c   : > { %v2059_v44 = vsel %vm1960_vm4, %v2030_v16, 0.0 }
 0x16d   : > { %v2007_v32 = vadd.f32 %v2006_v28, %v2005_v53  ;;  %v2060_v41 = vadd.f32 %v2059_v44, %v2058_v55 }
 0x16f   : > { %v2008_v6 = vrot.slane %v2007_v32, 4  ;;  %v2062_v24 = vadd.f32 %v2061_v40, %v2060_v41 }
 0x171   : > { %v2009_v15 = vadd.f32 %v2008_v6, %v2007_v32  ;;  %v2063_v36 = vrot.slane %v2062_v24, 4 }
 0x173   : > { %v2010_v30 = vrot.slane %v2009_v15, 2  ;;  %v2064_v57 = vadd.f32 %v2063_v36, %v2062_v24 }
 0x175   : > { %v2011_v5 = vadd.f32 %v2010_v30, %v2009_v15  ;;  %v2065_v8 = vrot.slane %v2064_v57, 2 }
 0x177   : > { %v2012_v19 = vrot.slane %v2011_v5, 1  ;;  %v2066_v22 = vadd.f32 %v2065_v8, %v2064_v57 }
 0x179   : > { %v2013_v17 = vadd.f32 %v2012_v19, %v2011_v5  ;;  %v2067_v2 = vrot.slane %v2066_v22, 1 }
 0x17b   : > { %2015 = vst.msk [vmem:[%s211_s21] sm:$0x1] %vm2014_vm5, %v2013_v17  ;;  %v2068_v52 = vadd.f32 %v2067_v2, %v2066_v22 }
 0x17d   : > { %2069 = vst.msk [vmem:[%s214_s24] sm:$0x1] %vm2014_vm5, %v2068_v52 }
 0x17e PF: > { %s15_s15 = sadd.s32 1, %s2751_s15  }
 0x17f   : > { %p12_p4 = scmp.ge.s32.totalorder %s15_s15, 6  }
 0x181   :  { %14 = sbr.rel (!%p12_p4) target bundleno = 1 (0x1), region = 90 }

// kernel: double_conv_forward.6
= control target key start
LH: loop header
LB: loop body
LE: loop exit
PB: predicated region body
PF: predicated region fallthrough
CT: control target
= control target key end

     0   :  { %s2740_s15 = smov 0   ;;  %s3604_s0 = inlined_call_operand.vmem [shape: f32[4,10,18,8], index: 0, kind: input, shape index: {}]   ;;  %s3605_s1 = inlined_call_operand.vmem [shape: f32[9,8,8], index: 1, kind: input, shape index: {}]   ;;  %s3606_s2 = inlined_call_operand.vmem [shape: f32[4,128,8], index: 2, kind: output, shape index: {0}]   ;;  %s3607_s3 = inlined_call_operand.vmem [shape: f32[4,1,8], index: 3, kind: output, shape index: {1}]   ;;  %s3608_s4 = inlined_call_operand.vmem [shape: f32[4,1,8], index: 4, kind: output, shape index: {2}]  }
   0x1 LB: > { %s2146_s16 = sadd.s32 4294967295, %s2713_s15   ;;  %p2150_p0 = scmp.ge.s32.totalorder %s2713_s15, 1  ;;  %s2713_s15 = sphi %s2740_s15, %s15_s15  }
   0x2   : > { %p167_p1 = scmp.lt.s32.totalorder %s2713_s15, 5 }
   0x4   : > { %p168_p2 = pnand %p2150_p0, %p167_p1 }
   0x6   : > { %171 = sbr.rel (%p168_p2) target bundleno = 382 (0x17e), region = 28 }
   0xb   : > { %v2154_v0 = vld [vmem:[%s3605_s1 + $0x8] sm:$0xff]  ;;  %p199_p3 = scmp.lt.s32.totalorder %s2146_s16, 3  ;;  %v245_v1 = vld [vmem:[%s3605_s1] sm:$0xff]  ;;  %v2187_v2 = vld [vmem:[%s3605_s1 + $0x10] sm:$0xff]  ;;  %vm270_vm0 = vcmask 1046528   ;;  %vm313_vm1 = vcmask 64512  }
   0xc   : > { %2696 = vmatprep.subr.mxu1 %v2154_v0  ;;  %2462 = vmatprep.subr.mxu0 %v2154_v0  ;;  %v2806_v21 = vld [vmem:[%s3605_s1 + $0x18] sm:$0xff]  ;;  %v2824_v28 = vld [vmem:[%s3605_s1 + $0x20] sm:$0xff]  ;;  %vm668_vm2 = vcmask 1045504   ;;  %vm1985_vm3 = vcmask 57344  }
   0xd   : > { %2697 = vmatpush3.msra.mxu1 %v2154_v0  ;;  %2463 = vmatpush3.msra.mxu0 %v2154_v0  ;;  %s3646_s16 = smov (!%p199_p3, %s2146_s16), 3 }
   0xe   : > { %2488 = vmatprep.subr.mxu1 %v245_v1  ;;  %2514 = vmatprep.subr.mxu0 %v2187_v2  ;;  %s2698_s23 = smul.u32 240, %s3646_s16  ;;  %s2308_s13 = sshll.u32 %s3646_s16, 7 }
   0xf   : > { %s3493_s18 = scalar_lea.vmem %s3606_s2, %s2308_s13  ;;  %s211_s21 = scalar_lea.vmem %s3607_s3, %s3646_s16 }
  0x10   : > { %s2763_s26 = scalar_lea.vmem %s3604_s0, %s2698_s23  ;;  %s214_s24 = scalar_lea.vmem %s3608_s4, %s3646_s16 }
  0x11   : > { %v2766_v3 = vld [vmem:[%s2763_s26] sm:$0xff]  ;;  %v2769_v4 = vld [vmem:[%s2763_s26 + $0x8] sm:$0xff]  ;;  %v2781_v10 = vld [vmem:[%s2763_s26 + $0x10] sm:$0x3] }
  0x12   : > { %v2772_v5 = vld [vmem:[%s2763_s26 + $0x60] sm:$0xff]  ;;  %v271_v6 = vrot.slane %v2766_v3, 1  ;;  %v272_v7 = vrot.slane %v2769_v4, 1  ;;  %v2777_v8 = vld [vmem:[%s2763_s26 + $0x68] sm:$0xff]  ;;  %v274_v12 = vrot.slane %v2781_v10, 1  ;;  %v2789_v14 = vld [vmem:[%s2763_s26 + $0x18] sm:$0xff] }
  0x13   : > { %v291_v9 = vrot.slane %v2772_v5, 1  ;;  %v292_v11 = vrot.slane %v2777_v8, 1  ;;  %v2786_v13 = vld [vmem:[%s2763_s26 + $0x70] sm:$0x3]  ;;  %v2794_v17 = vld [vmem:[%s2763_s26 + $0x20] sm:$0xff]  ;;  %v276_v18 = vrot.slane %v2789_v14, 1 }
  0x14   : > { %v273_v15 = vsel %vm270_vm0, %v271_v6, %v272_v7  ;;  %v294_v16 = vrot.slane %v2786_v13, 1  ;;  %v2798_v19 = vld [vmem:[%s2763_s26 + $0x78] sm:$0xff]  ;;  %v2801_v20 = vld [vmem:[%s2763_s26 + $0x80] sm:$0xff]  ;;  %v275_v23 = vsel %vm270_vm0, %v272_v7, %v274_v12  ;;  %v277_v24 = vrot.slane %v2794_v17, 1  ;;  %v2816_v26 = vld [vmem:[%s2763_s26 + $0x28] sm:$0x3] }
  0x15   : > { %2464 = vmatprep.mubr.msk.f32.mxu0 %vm313_vm1, %v273_v15  ;;  %v2810_v22 = vsel %vm270_vm0, %v291_v9, %v292_v11  ;;  %v296_v25 = vrot.slane %v2798_v19, 1  ;;  %v2819_v27 = vld [vmem:[%s2763_s26 + $0x88] sm:$0x3]  ;;  %v297_v30 = vrot.slane %v2801_v20, 1  ;;  %v279_v31 = vrot.slane %v2816_v26, 1  ;;  %v2836_v33 = vld [vmem:[%s2763_s26 + $0x30] sm:$0xff] }
  0x16   : > { %2476 = vmatprep.mubr.msk.f32.mxu1 %vm313_vm1, %v2810_v22  ;;  %2465 = vmatmul.mubr.msk.f32.vlgmr.msra.gmra.mxu0 %vm313_vm1, %v275_v23  ;;  %v2830_v29 = vsel %vm270_vm0, %v292_v11, %v294_v16  ;;  %v299_v32 = vrot.slane %v2819_v27, 1  ;;  %v2839_v34 = vld [vmem:[%s2763_s26 + $0x38] sm:$0xff]  ;;  %v2842_v35 = vld [vmem:[%s2763_s26 + $0x90] sm:$0xff]  ;;  %v2847_v36 = vsel %vm270_vm0, %v276_v18, %v277_v24  ;;  %v281_v37 = vrot.slane %v2836_v33, 1  ;;  %v2856_v41 = vld [vmem:[%s2763_s26 + $0x40] sm:$0x3] }
  0x17   : > { %2477 = vmatmul.mubr.msk.f32.vlgmr.msra.gmra.mxu1 %vm313_vm1, %v2830_v29  ;;  %2515 = vmatpush3.msra.mxu0 %v2187_v2  ;;  %v282_v38 = vrot.slane %v2839_v34, 1  ;;  %v2852_v39 = vld [vmem:[%s2763_s26 + $0x98] sm:$0xff]  ;;  %v301_v40 = vrot.slane %v2842_v35, 1  ;;  %v2861_v42 = vsel %vm270_vm0, %v296_v25, %v297_v30  ;;  %v2864_v43 = vsel %vm270_vm0, %v277_v24, %v279_v31  ;;  %v2871_v46 = vld [vmem:[%s2763_s26 + $0xa0] sm:$0x3]  ;;  %v2874_v47 = vld [vmem:[%s2763_s26 + $0x48] sm:$0xff] }
  0x18   : > { %2489 = vmatpush3.msra.mxu1 %v245_v1  ;;  %2467 = vmatprep.mubr.msk.f32.mxu0 %vm313_vm1, %v2847_v36  ;;  %v2867_v44 = vsel %vm270_vm0, %v297_v30, %v299_v32  ;;  %v302_v45 = vrot.slane %v2852_v39, 1  ;;  %v2877_v48 = vld [vmem:[%s2763_s26 + $0x50] sm:$0xff]  ;;  %v284_v50 = vrot.slane %v2856_v41, 1  ;;  %v304_v51 = vrot.slane %v2871_v46, 1  ;;  %v2888_v53 = vld [vmem:[%s2763_s26 + $0xa8] sm:$0xff]  ;;  %v2952_v18 = vld [vmem:[%s2763_s26 + $0xc0] sm:$0xff] }
  0x19   : > { %2479 = vmatprep.mubr.msk.f32.mxu1 %vm313_vm1, %v2861_v42  ;;  %v2882_v49 = vsel %vm270_vm0, %v281_v37, %v282_v38  ;;  %v286_v52 = vrot.slane %v2874_v47, 1  ;;  %v2891_v54 = vld [vmem:[%s2763_s26 + $0xb0] sm:$0xff]  ;;  %2540 = vmatprep.subr.mxu1 %v2806_v21  ;;  %v287_v56 = vrot.slane %v2877_v48, 1  ;;  %v306_v57 = vrot.slane %v2888_v53, 1  ;;  %v2903_v59 = vld [vmem:[%s2763_s26 + $0x58] sm:$0x3] }
  0x1a   : > { %2468 = vmatmul.mubr.msk.f32.gmra.mxu0 %vm313_vm1, %v2864_v43  ;;  %v2897_v55 = vsel %vm270_vm0, %v301_v40, %v302_v45  ;;  %v307_v58 = vrot.slane %v2891_v54, 1  ;;  %2566 = vmatprep.subr.mxu0 %v2824_v28  ;;  %v2911_v60 = vsel %vm270_vm0, %v282_v38, %v284_v50  ;;  %v289_v61 = vrot.slane %v2903_v59, 1  ;;  %v2915_v62 = vld [vmem:[%s2763_s26 + $0xb8] sm:$0x3]  ;;  %v2962_v31 = vld [vmem:[%s2763_s26 + $0xc8] sm:$0xff] }
  0x1b   : > { %2480 = vmatmul.mubr.msk.f32.gmra.mxu1 %vm313_vm1, %v2867_v44  ;;  %2470 = vmatprep.mubr.msk.f32.mxu0 %vm313_vm1, %v2882_v49  ;;  %v669_v63 = vrot.slane %v2766_v3, 2  ;;  %v2921_v0 = vsel %vm270_vm0, %v302_v45, %v304_v51  ;;  %v2924_v1 = vsel %vm270_vm0, %v286_v52, %v287_v56  ;;  %v309_v2 = vrot.slane %v2915_v62, 1  ;;  %v241_v32 = vld [vmem:[%s2763_s26 + $0xd0] sm:$0x3]  ;;  %v2979_v50 = vld [vmem:[%s2763_s26 + $0xd8] sm:$0xff] }
  0x1c   : > { %2482 = vmatprep.mubr.msk.f32.mxu1 %vm313_vm1, %v2897_v55  ;;  %v670_v6 = vrot.slane %v2769_v4, 2  ;;  %v2929_v7 = vsel %vm270_vm0, %v306_v57, %v307_v58  ;;  %v672_v9 = vrot.slane %v2781_v10, 2  ;;  %v2939_v11 = vsel %vm270_vm0, %v287_v56, %v289_v61  ;;  %v244_v56 = vld [vmem:[%s2763_s26 + $0xe8] sm:$0x3]  ;;  %v2998_v61 = vld [vmem:[%s3605_s1 + $0x30] sm:$0xff] }
  0x1d   : > { %v2944_v12 = vsel %vm270_vm0, %v307_v58, %v309_v2  ;;  %v674_v10 = vrot.slane %v2789_v14, 2  ;;  %v675_v16 = vrot.slane %v2794_v17, 2  ;;  %v677_v24 = vrot.slane %v2816_v26, 2  ;;  %v2975_v26 = vld [vmem:[%s3605_s1 + $0x28] sm:$0xff] }
  0x1e   : > { %2471 = vmatmul.mubr.msk.f32.gmra.mxu0 %vm313_vm1, %v2911_v60  ;;  %v671_v15 = vsel %vm668_vm2, %v669_v63, %v670_v6  ;;  %v673_v23 = vsel %vm668_vm2, %v670_v6, %v672_v9  ;;  %v679_v25 = vrot.slane %v2836_v33, 2  ;;  %v680_v30 = vrot.slane %v2839_v34, 2 }
  0x1f   : > { %2483 = vmatmul.mubr.msk.f32.gmra.mxu1 %vm313_vm1, %v2921_v0  ;;  %2473 = vmatprep.mubr.msk.f32.mxu0 %vm313_vm1, %v2924_v1  ;;  %v2968_v37 = vsel %vm668_vm2, %v674_v10, %v675_v16  ;;  %v682_v38 = vrot.slane %v2856_v41, 2  ;;  %v684_v40 = vrot.slane %v2874_v47, 2  ;;  %v1074_v45 = vrot.slane %v2952_v18, 1 }
  0x20   : > { %2485 = vmatprep.mubr.msk.f32.mxu1 %vm313_vm1, %v2929_v7  ;;  %v1246_v51 = vrot.slane %v2952_v18, 2  ;;  %v1075_v52 = vrot.slane %v2962_v31, 1  ;;  %v1077_v41 = vrot.slane %v241_v32, 1  ;;  %v2990_v57 = vsel %vm668_vm2, %v675_v16, %v677_v24 }
  0x21   : > { %v2993_v58 = vsel %vm668_vm2, %v679_v25, %v680_v30  ;;  %v1247_v63 = vrot.slane %v2962_v31, 2  ;;  %v1588_v2 = vrot.slane %v2979_v50, 1  ;;  %v1760_v6 = vrot.slane %v2979_v50, 2 }
  0x22   : > { %2474 = vmatmul.mubr.msk.f32.gmra.mxu0 %vm313_vm1, %v2939_v11  ;;  %v1249_v9 = vrot.slane %v241_v32, 2  ;;  %v3026_v24 = vsel %vm668_vm2, %v680_v30, %v682_v38  ;;  %v1763_v32 = vrot.slane %v244_v56, 2 }
  0x23   : > { %2486 = vmatmul.mubr.msk.f32.gmra.mxu1 %vm313_vm1, %v2944_v12  ;;  %2516 = vmatprep.mubr.msk.f32.mxu0 %vm313_vm1, %v671_v15  ;;  %v3013_v15 = vld [vmem:[%s2763_s26 + $0xe0] sm:$0xff] }
  0x24   : > { %2490 = vmatprep.mubr.msk.f32.mxu1 %vm313_vm1, %v2766_v3  ;;  %v685_v3 = vrot.slane %v2877_v48, 2  ;;  %v1589_v10 = vrot.slane %v3013_v15, 1  ;;  %v1761_v16 = vrot.slane %v3013_v15, 2  ;;  %v3030_v25 = vsel %vm668_vm2, %v1247_v63, %v1249_v9 }
  0x25   : > { %v695_v9 = vrot.slane %v2801_v20, 2 }
  0x26   : > { %2517 = vmatmul.mubr.msk.f32.vlgmr.msra.gmra.mxu0 %vm313_vm1, %v673_v23  ;;  %v1591_v23 = vrot.slane %v244_v56, 1  ;;  %v3041_v30 = vsel %vm668_vm2, %v1760_v6, %v1761_v16  ;;  %v690_v56 = vrot.slane %v2777_v8, 2  ;;  %v694_v6 = vrot.slane %v2798_v19, 2 }
  0x27   : > { %2491 = vmatmul.mubr.msk.f32.vlgmr.msra.gmra.mxu1 %vm313_vm1, %v2769_v4  ;;  %2567 = vmatpush3.msra.mxu0 %v2824_v28  ;;  %v3006_v4 = vsel %vm270_vm0, %v1074_v45, %v1075_v52  ;;  %v3009_v28 = vsel %vm270_vm0, %v1075_v52, %v1077_v41  ;;  %v687_v45 = vrot.slane %v2903_v59, 2  ;;  %v3049_v52 = vsel %vm668_vm2, %v684_v40, %v685_v3 }
  0x28   : > { %2541 = vmatpush3.msra.mxu1 %v2806_v21  ;;  %2493 = vmatprep.mubr.msk.f32.mxu1 %vm313_vm1, %v2789_v14  ;;  %v3019_v21 = vsel %vm668_vm2, %v1246_v51, %v1247_v63  ;;  %v3038_v51 = vsel %vm270_vm0, %v1588_v2, %v1589_v10  ;;  %v3044_v38 = vsel %vm270_vm0, %v1589_v10, %v1591_v23  ;;  %v689_v41 = vrot.slane %v2772_v5, 2 }
  0x29   : > { %2519 = vmatprep.mubr.msk.f32.mxu0 %vm313_vm1, %v2968_v37  ;;  %2592 = vmatprep.subr.mxu1 %v2975_v26  ;;  %v3054_v59 = vsel %vm668_vm2, %v1761_v16, %v1763_v32  ;;  %v3063_v63 = vsel %vm668_vm2, %v685_v3, %v687_v45  ;;  %v692_v40 = vrot.slane %v2786_v13, 2  ;;  %v697_v3 = vrot.slane %v2819_v27, 2 }
  0x2a   : > { %2520 = vmatmul.mubr.msk.f32.gmra.mxu0 %vm313_vm1, %v2990_v57  ;;  %2618 = vmatprep.subr.mxu0 %v2998_v61  ;;  %v3069_v2 = vsel %vm668_vm2, %v689_v41, %v690_v56  ;;  %v3086_v10 = vsel %vm668_vm2, %v694_v6, %v695_v9  ;;  %v699_v16 = vrot.slane %v2842_v35, 2  ;;  %v700_v23 = vrot.slane %v2852_v39, 2 }
  0x2b   : > { %2494 = vmatmul.mubr.msk.f32.gmra.mxu1 %vm313_vm1, %v2794_v17  ;;  %2522 = vmatprep.mubr.msk.f32.mxu0 %vm313_vm1, %v2993_v58  ;;  %v3080_v13 = vsel %vm668_vm2, %v690_v56, %v692_v40  ;;  %v3097_v27 = vsel %vm668_vm2, %v695_v9, %v697_v3  ;;  %v702_v32 = vrot.slane %v2871_v46, 2  ;;  %v704_v41 = vrot.slane %v2888_v53, 2  ;;  %v2289_v3 = vld [vmem:[%s3605_s1 + $0x40] sm:$0xff] }
  0x2c   : > { %2496 = vmatprep.mubr.msk.f32.mxu1 %vm313_vm1, %v2836_v33  ;;  %v3103_v45 = vsel %vm668_vm2, %v699_v16, %v700_v23  ;;  %v705_v56 = vrot.slane %v2891_v54, 2  ;;  %v707_v40 = vrot.slane %v2915_v62, 2  ;;  %v2272_v62 = vld [vmem:[%s3605_s1 + $0x38] sm:$0xff] }
  0x2d   : > { %v3114_v46 = vsel %vm668_vm2, %v700_v23, %v702_v32 }
  0x2e   : > { %2523 = vmatmul.mubr.msk.f32.gmra.mxu0 %vm313_vm1, %v3026_v24  ;;  %v3120_v6 = vsel %vm668_vm2, %v704_v41, %v705_v56  ;;  %v3129_v9 = vsel %vm668_vm2, %v705_v56, %v707_v40 }
  0x2f   : > { %2497 = vmatmul.mubr.msk.f32.gmra.mxu1 %vm313_vm1, %v2839_v34  ;;  %2525 = vmatprep.mubr.msk.f32.mxu0 %vm313_vm1, %v3049_v52 }
  0x30   : > { %2499 = vmatprep.mubr.msk.f32.mxu1 %vm313_vm1, %v2874_v47 }
  0x32   : > { %2526 = vmatmul.mubr.msk.f32.gmra.mxu0 %vm313_vm1, %v3063_v63 }
  0x33   : > { %2500 = vmatmul.mubr.msk.f32.gmra.mxu1 %vm313_vm1, %v2877_v48  ;;  %2528 = vmatprep.mubr.msk.f32.mxu0 %vm313_vm1, %v3069_v2 }
  0x34   : > { %2502 = vmatprep.mubr.msk.f32.mxu1 %vm313_vm1, %v2772_v5 }
  0x36   : > { %2529 = vmatmul.mubr.msk.f32.gmra.mxu0 %vm313_vm1, %v3080_v13 }
  0x37   : > { %2503 = vmatmul.mubr.msk.f32.gmra.mxu1 %vm313_vm1, %v2777_v8  ;;  %2531 = vmatprep.mubr.msk.f32.mxu0 %vm313_vm1, %v3086_v10 }
  0x38   : > { %2505 = vmatprep.mubr.msk.f32.mxu1 %vm313_vm1, %v2798_v19 }
  0x3a   : > { %2532 = vmatmul.mubr.msk.f32.gmra.mxu0 %vm313_vm1, %v3097_v27 }
  0x3b   : > { %2506 = vmatmul.mubr.msk.f32.gmra.mxu1 %vm313_vm1, %v2801_v20  ;;  %2534 = vmatprep.mubr.msk.f32.mxu0 %vm313_vm1, %v3103_v45 }
  0x3c   : > { %2508 = vmatprep.mubr.msk.f32.mxu1 %vm313_vm1, %v2842_v35 }
  0x3e   : > { %2535 = vmatmul.mubr.msk.f32.gmra.mxu0 %vm313_vm1, %v3114_v46 }
  0x3f   : > { %2509 = vmatmul.mubr.msk.f32.gmra.mxu1 %vm313_vm1, %v2852_v39  ;;  %2537 = vmatprep.mubr.msk.f32.mxu0 %vm313_vm1, %v3120_v6 }
  0x40   : > { %2511 = vmatprep.mubr.msk.f32.mxu1 %vm313_vm1, %v2888_v53 }
  0x42   : > { %2538 = vmatmul.mubr.msk.f32.gmra.mxu0 %vm313_vm1, %v3129_v9 }
  0x43   : > { %2512 = vmatmul.mubr.msk.f32.gmra.mxu1 %vm313_vm1, %v2891_v54  ;;  %2568 = vmatprep.mubr.msk.f32.mxu0 %vm313_vm1, %v2847_v36 }
  0x44   : > { %2542 = vmatprep.mubr.msk.f32.mxu1 %vm313_vm1, %v2789_v14 }
  0x46   : > { %2569 = vmatmul.mubr.msk.f32.vlgmr.msra.gmra.mxu0 %vm313_vm1, %v2864_v43 }
  0x47   : > { %2543 = vmatmul.mubr.msk.f32.vlgmr.msra.gmra.mxu1 %vm313_vm1, %v2794_v17  ;;  %2619 = vmatpush3.msra.mxu0 %v2998_v61 }
  0x48   : > { %2593 = vmatpush3.msra.mxu1 %v2975_v26  ;;  %2545 = vmatprep.mubr.msk.f32.mxu1 %vm313_vm1, %v2836_v33 }
  0x49   : > { %2571 = vmatprep.mubr.msk.f32.mxu0 %vm313_vm1, %v2882_v49  ;;  %2644 = vmatprep.subr.mxu1 %v2272_v62 }
  0x4a   : > { %2572 = vmatmul.mubr.msk.f32.gmra.mxu0 %vm313_vm1, %v2911_v60  ;;  %2670 = vmatprep.subr.mxu0 %v2289_v3 }
  0x4b   : > { %2546 = vmatmul.mubr.msk.f32.gmra.mxu1 %vm313_vm1, %v2839_v34  ;;  %2574 = vmatprep.mubr.msk.f32.mxu0 %vm313_vm1, %v2924_v1 }
  0x4c   : > { %2548 = vmatprep.mubr.msk.f32.mxu1 %vm313_vm1, %v2874_v47 }
  0x4e   : > { %2575 = vmatmul.mubr.msk.f32.gmra.mxu0 %vm313_vm1, %v2939_v11 }
  0x4f   : > { %2549 = vmatmul.mubr.msk.f32.gmra.mxu1 %vm313_vm1, %v2877_v48  ;;  %2577 = vmatprep.mubr.msk.f32.mxu0 %vm313_vm1, %v2810_v22 }
  0x50   : > { %2551 = vmatprep.mubr.msk.f32.mxu1 %vm313_vm1, %v2772_v5 }
  0x52   : > { %2578 = vmatmul.mubr.msk.f32.gmra.mxu0 %vm313_vm1, %v2830_v29 }
  0x53   : > { %2552 = vmatmul.mubr.msk.f32.gmra.mxu1 %vm313_vm1, %v2777_v8  ;;  %2580 = vmatprep.mubr.msk.f32.mxu0 %vm313_vm1, %v2861_v42 }
  0x54   : > { %2554 = vmatprep.mubr.msk.f32.mxu1 %vm313_vm1, %v2798_v19 }
  0x56   : > { %2581 = vmatmul.mubr.msk.f32.gmra.mxu0 %vm313_vm1, %v2867_v44 }
  0x57   : > { %2555 = vmatmul.mubr.msk.f32.gmra.mxu1 %vm313_vm1, %v2801_v20  ;;  %2583 = vmatprep.mubr.msk.f32.mxu0 %vm313_vm1, %v2897_v55 }
  0x58   : > { %2557 = vmatprep.mubr.msk.f32.mxu1 %vm313_vm1, %v2842_v35 }
  0x5a   : > { %2584 = vmatmul.mubr.msk.f32.gmra.mxu0 %vm313_vm1, %v2921_v0 }
  0x5b   : > { %2558 = vmatmul.mubr.msk.f32.gmra.mxu1 %vm313_vm1, %v2852_v39  ;;  %2586 = vmatprep.mubr.msk.f32.mxu0 %vm313_vm1, %v2929_v7 }
  0x5c   : > { %2560 = vmatprep.mubr.msk.f32.mxu1 %vm313_vm1, %v2888_v53 }
  0x5e   : > { %2587 = vmatmul.mubr.msk.f32.gmra.mxu0 %vm313_vm1, %v2944_v12 }
  0x5f   : > { %2561 = vmatmul.mubr.msk.f32.gmra.mxu1 %vm313_vm1, %v2891_v54  ;;  %2589 = vmatprep.mubr.msk.f32.mxu0 %vm313_vm1, %v3006_v4 }
  0x60   : > { %2563 = vmatprep.mubr.msk.f32.mxu1 %vm313_vm1, %v2952_v18 }
  0x62   : > { %2590 = vmatmul.mubr.msk.f32.gmra.mxu0 %vm313_vm1, %v3009_v28 }
  0x63   : > { %2564 = vmatmul.mubr.msk.f32.gmra.mxu1 %vm313_vm1, %v2962_v31  ;;  %2620 = vmatprep.mubr.msk.f32.mxu0 %vm313_vm1, %v2836_v33 }
  0x64   : > { %2594 = vmatprep.mubr.msk.f32.mxu1 %vm313_vm1, %v2968_v37 }
  0x66   : > { %2621 = vmatmul.mubr.msk.f32.vlgmr.msra.gmra.mxu0 %vm313_vm1, %v2839_v34 }
  0x67   : > { %2595 = vmatmul.mubr.msk.f32.vlgmr.msra.gmra.mxu1 %vm313_vm1, %v2990_v57  ;;  %2671 = vmatpush3.msra.mxu0 %v2289_v3 }
  0x68   : > { %2645 = vmatpush3.msra.mxu1 %v2272_v62  ;;  %2597 = vmatprep.mubr.msk.f32.mxu1 %vm313_vm1, %v2993_v58 }
  0x69   : > { %2623 = vmatprep.mubr.msk.f32.mxu0 %vm313_vm1, %v2874_v47 }
  0x6a   : > { %2624 = vmatmul.mubr.msk.f32.gmra.mxu0 %vm313_vm1, %v2877_v48 }
  0x6b   : > { %2598 = vmatmul.mubr.msk.f32.gmra.mxu1 %vm313_vm1, %v3026_v24  ;;  %2626 = vmatprep.mubr.msk.f32.mxu0 %vm313_vm1, %v2772_v5 }
  0x6c   : > { %2600 = vmatprep.mubr.msk.f32.mxu1 %vm313_vm1, %v3049_v52 }
  0x6e   : > { %2627 = vmatmul.mubr.msk.f32.gmra.mxu0 %vm313_vm1, %v2777_v8 }
  0x6f   : > { %2601 = vmatmul.mubr.msk.f32.gmra.mxu1 %vm313_vm1, %v3063_v63  ;;  %2629 = vmatprep.mubr.msk.f32.mxu0 %vm313_vm1, %v2798_v19 }
  0x70   : > { %2603 = vmatprep.mubr.msk.f32.mxu1 %vm313_vm1, %v3069_v2 }
  0x72   : > { %2630 = vmatmul.mubr.msk.f32.gmra.mxu0 %vm313_vm1, %v2801_v20 }
  0x73   : > { %2604 = vmatmul.mubr.msk.f32.gmra.mxu1 %vm313_vm1, %v3080_v13  ;;  %2632 = vmatprep.mubr.msk.f32.mxu0 %vm313_vm1, %v2842_v35 }
  0x74   : > { %2606 = vmatprep.mubr.msk.f32.mxu1 %vm313_vm1, %v3086_v10 }
  0x76   : > { %2633 = vmatmul.mubr.msk.f32.gmra.mxu0 %vm313_vm1, %v2852_v39 }
  0x77   : > { %2607 = vmatmul.mubr.msk.f32.gmra.mxu1 %vm313_vm1, %v3097_v27  ;;  %2635 = vmatprep.mubr.msk.f32.mxu0 %vm313_vm1, %v2888_v53 }
  0x78   : > { %2609 = vmatprep.mubr.msk.f32.mxu1 %vm313_vm1, %v3103_v45 }
  0x7a   : > { %2636 = vmatmul.mubr.msk.f32.gmra.mxu0 %vm313_vm1, %v2891_v54 }
  0x7b   : > { %2610 = vmatmul.mubr.msk.f32.gmra.mxu1 %vm313_vm1, %v3114_v46  ;;  %2638 = vmatprep.mubr.msk.f32.mxu0 %vm313_vm1, %v2952_v18 }
  0x7c   : > { %2612 = vmatprep.mubr.msk.f32.mxu1 %vm313_vm1, %v3120_v6 }
  0x7e   : > { %2639 = vmatmul.mubr.msk.f32.gmra.mxu0 %vm313_vm1, %v2962_v31 }
  0x7f   : > { %2613 = vmatmul.mubr.msk.f32.gmra.mxu1 %vm313_vm1, %v3129_v9  ;;  %2641 = vmatprep.mubr.msk.f32.mxu0 %vm313_vm1, %v2979_v50 }
  0x80   : > { %2615 = vmatprep.mubr.msk.f32.mxu1 %vm313_vm1, %v3019_v21 }
  0x82   : > { %2642 = vmatmul.mubr.msk.f32.gmra.mxu0 %vm313_vm1, %v3013_v15 }
  0x83   : > { %2616 = vmatmul.mubr.msk.f32.gmra.mxu1 %vm313_vm1, %v3030_v25  ;;  %2672 = vmatprep.mubr.msk.f32.mxu0 %vm313_vm1, %v2993_v58 }
  0x84   : > { %2646 = vmatprep.mubr.msk.f32.mxu1 %vm313_vm1, %v2882_v49 }
  0x86   : > { %2673 = vmatmul.mubr.msk.f32.vlgmr.msra.gmra.mxu0 %vm313_vm1, %v3026_v24 }
  0x87   : > { %2647 = vmatmul.mubr.msk.f32.vlgmr.msra.gmra.mxu1 %vm313_vm1, %v2911_v60  ;;  %2675 = vmatprep.mubr.msk.f32.mxu0 %vm313_vm1, %v3049_v52 }
  0x88   : > { %2649 = vmatprep.mubr.msk.f32.mxu1 %vm313_vm1, %v2924_v1 }
  0x8a   : > { %2676 = vmatmul.mubr.msk.f32.gmra.mxu0 %vm313_vm1, %v3063_v63 }
  0x8b   : > { %2650 = vmatmul.mubr.msk.f32.gmra.mxu1 %vm313_vm1, %v2939_v11  ;;  %2678 = vmatprep.mubr.msk.f32.mxu0 %vm313_vm1, %v3069_v2 }
  0x8c   : > { %2652 = vmatprep.mubr.msk.f32.mxu1 %vm313_vm1, %v2810_v22 }
  0x8e   : > { %2679 = vmatmul.mubr.msk.f32.gmra.mxu0 %vm313_vm1, %v3080_v13 }
  0x8f   : > { %2653 = vmatmul.mubr.msk.f32.gmra.mxu1 %vm313_vm1, %v2830_v29  ;;  %2681 = vmatprep.mubr.msk.f32.mxu0 %vm313_vm1, %v3086_v10 }
  0x90   : > { %2655 = vmatprep.mubr.msk.f32.mxu1 %vm313_vm1, %v2861_v42 }
  0x92   : > { %2682 = vmatmul.mubr.msk.f32.gmra.mxu0 %vm313_vm1, %v3097_v27 }
  0x93   : > { %2656 = vmatmul.mubr.msk.f32.gmra.mxu1 %vm313_vm1, %v2867_v44  ;;  %2684 = vmatprep.mubr.msk.f32.mxu0 %vm313_vm1, %v3103_v45 }
  0x94   : > { %2658 = vmatprep.mubr.msk.f32.mxu1 %vm313_vm1, %v2897_v55 }
  0x96   : > { %2685 = vmatmul.mubr.msk.f32.gmra.mxu0 %vm313_vm1, %v3114_v46 }
  0x97   : > { %2659 = vmatmul.mubr.msk.f32.gmra.mxu1 %vm313_vm1, %v2921_v0  ;;  %2687 = vmatprep.mubr.msk.f32.mxu0 %vm313_vm1, %v3120_v6 }
  0x98   : > { %2661 = vmatprep.mubr.msk.f32.mxu1 %vm313_vm1, %v2929_v7 }
  0x9a   : > { %2688 = vmatmul.mubr.msk.f32.gmra.mxu0 %vm313_vm1, %v3129_v9 }
  0x9b   : > { %2662 = vmatmul.mubr.msk.f32.gmra.mxu1 %vm313_vm1, %v2944_v12  ;;  %2690 = vmatprep.mubr.msk.f32.mxu0 %vm313_vm1, %v3019_v21 }
  0x9c   : > { %2664 = vmatprep.mubr.msk.f32.mxu1 %vm313_vm1, %v3006_v4 }
  0x9e   : > { %2691 = vmatmul.mubr.msk.f32.gmra.mxu0 %vm313_vm1, %v3030_v25 }
  0x9f   : > { %2665 = vmatmul.mubr.msk.f32.gmra.mxu1 %vm313_vm1, %v3009_v28  ;;  %2693 = vmatprep.mubr.msk.f32.mxu0 %vm313_vm1, %v3041_v30 }
  0xa0   : > { %2667 = vmatprep.mubr.msk.f32.mxu1 %vm313_vm1, %v3038_v51 }
  0xa2   : > { %2694 = vmatmul.mubr.msk.f32.gmra.mxu0 %vm313_vm1, %v3054_v59 }
  0xa3   : > { %2668 = vmatmul.mubr.msk.f32.gmra.mxu1 %vm313_vm1, %v3044_v38 }
  0xd6   : > { %v2466_v5 = vpop.f32.mrf.mxu0 }
  0xd7   : > { %v2478_v8 = vpop.f32.mrf.mxu1 }
  0xd8   : > { %v412_v14 = vpop.f32.mrf.mxu0 }
  0xd9   : > { %v452_v17 = vpop.f32.mrf.mxu1 }
  0xda   : > { %v2469_v19 = vpop.f32.mrf.mxu0 }
  0xdb   : > { %v2481_v20 = vpop.f32.mrf.mxu1 }
  0xdc   : > { %v422_v22 = vpop.f32.mrf.mxu0 }
  0xdd   : > { %v462_v29 = vpop.f32.mrf.mxu1 }
  0xde   : > { %v2472_v33 = vpop.f32.mrf.mxu0 }
  0xdf   : > { %v2484_v34 = vpop.f32.mrf.mxu1 }
  0xe0   : > { %v432_v35 = vpop.f32.mrf.mxu0 }
  0xe1   : > { %v472_v36 = vpop.f32.mrf.mxu1 }
  0xe2   : > { %v2475_v39 = vpop.f32.mrf.mxu0 }
  0xe3   : > { %v2487_v42 = vpop.f32.mrf.mxu1 }
  0xe4   : > { %v442_v43 = vpop.f32.mrf.mxu0 }
  0xe5   : > { %v3337_v44 = vpop.f32.mrf.mxu1 }
  0xe6   : > { %v2518_v47 = vpop.f32.mrf.mxu0 }
  0xe7   : > { %v2492_v48 = vpop.f32.mrf.mxu1 }
  0xe8   : > { %v595_v49 = vadd.f32 %v2492_v48, %v2466_v5  ;;  %v809_v53 = vpop.f32.mrf.mxu0 }
  0xe9   : > { %v589_v54 = vpop.f32.mrf.mxu1 }
  0xea   : > { %v3339_v55 = vadd.f32 %v2518_v47, %v595_v49  ;;  %v590_v60 = vadd.f32 %v589_v54, %v412_v14  ;;  %v2521_v0 = vpop.f32.mrf.mxu0 }
  0xeb   : > { %v2495_v1 = vpop.f32.mrf.mxu1 }
  0xec   : > { %v3341_v7 = vadd.f32 %v809_v53, %v590_v60  ;;  %v605_v11 = vadd.f32 %v2495_v1, %v2469_v19  ;;  %v819_v12 = vpop.f32.mrf.mxu0 }
  0xed   : > { %v599_v18 = vpop.f32.mrf.mxu1 }
  0xee   : > { %v3343_v31 = vadd.f32 %v2521_v0, %v605_v11  ;;  %v600_v37 = vadd.f32 %v599_v18, %v422_v22  ;;  %v2524_v26 = vpop.f32.mrf.mxu0 }
  0xef   : > { %v2498_v50 = vpop.f32.mrf.mxu1 }
  0xf0   : > { %v3345_v57 = vadd.f32 %v819_v12, %v600_v37  ;;  %v615_v58 = vadd.f32 %v2498_v50, %v2472_v33  ;;  %v829_v61 = vpop.f32.mrf.mxu0 }
  0xf1   : > { %v609_v4 = vpop.f32.mrf.mxu1 }
  0xf2   : > { %v3347_v28 = vadd.f32 %v2524_v26, %v615_v58  ;;  %v610_v15 = vadd.f32 %v609_v4, %v432_v35  ;;  %v2527_v21 = vpop.f32.mrf.mxu0 }
  0xf3   : > { %v2501_v24 = vpop.f32.mrf.mxu1 }
  0xf4   : > { %v3349_v25 = vadd.f32 %v829_v61, %v610_v15  ;;  %v625_v51 = vadd.f32 %v2501_v24, %v2475_v39  ;;  %v839_v30 = vpop.f32.mrf.mxu0 }
  0xf5   : > { %v619_v38 = vpop.f32.mrf.mxu1 }
  0xf6   : > { %v3351_v52 = vadd.f32 %v2527_v21, %v625_v51  ;;  %v620_v59 = vadd.f32 %v619_v38, %v442_v43  ;;  %v2530_v63 = vpop.f32.mrf.mxu0 }
  0xf7   : > { %v2504_v2 = vpop.f32.mrf.mxu1 }
  0xf8   : > { %v3353_v13 = vadd.f32 %v839_v30, %v620_v59  ;;  %v635_v10 = vadd.f32 %v2504_v2, %v2478_v8  ;;  %v849_v16 = vpop.f32.mrf.mxu0 }
  0xf9   : > { %v629_v23 = vpop.f32.mrf.mxu1 }
  0xfa   : > { %v3355_v27 = vadd.f32 %v2530_v63, %v635_v10  ;;  %v630_v32 = vadd.f32 %v629_v23, %v452_v17  ;;  %v2533_v45 = vpop.f32.mrf.mxu0 }
  0xfb   : > { %v2507_v41 = vpop.f32.mrf.mxu1 }
  0xfc   : > { %v3357_v56 = vadd.f32 %v849_v16, %v630_v32  ;;  %v645_v46 = vadd.f32 %v2507_v41, %v2481_v20  ;;  %v859_v40 = vpop.f32.mrf.mxu0 }
  0xfd   : > { %v639_v6 = vpop.f32.mrf.mxu1 }
  0xfe   : > { %v3359_v9 = vadd.f32 %v2533_v45, %v645_v46  ;;  %v640_v62 = vadd.f32 %v639_v6, %v462_v29  ;;  %v2536_v3 = vpop.f32.mrf.mxu0 }
  0xff   : > { %v2510_v5 = vpop.f32.mrf.mxu1 }
 0x100   : > { %v3361_v14 = vadd.f32 %v859_v40, %v640_v62  ;;  %v655_v8 = vadd.f32 %v2510_v5, %v2484_v34  ;;  %v869_v19 = vpop.f32.mrf.mxu0 }
 0x101   : > { %v649_v22 = vpop.f32.mrf.mxu1 }
 0x102   : > { %v3363_v33 = vadd.f32 %v2536_v3, %v655_v8  ;;  %v650_v17 = vadd.f32 %v649_v22, %v472_v36  ;;  %v2539_v35 = vpop.f32.mrf.mxu0 }
 0x103   : > { %v2513_v39 = vpop.f32.mrf.mxu1 }
 0x104   : > { %v3365_v43 = vadd.f32 %v869_v19, %v650_v17  ;;  %v665_v20 = vadd.f32 %v2513_v39, %v2487_v42  ;;  %v879_v47 = vpop.f32.mrf.mxu0 }
 0x105   : > { %v659_v48 = vpop.f32.mrf.mxu1 }
 0x106   : > { %v3367_v49 = vadd.f32 %v2539_v35, %v665_v20  ;;  %v660_v29 = vadd.f32 %v659_v48, %v3337_v44  ;;  %v3370_v53 = vpop.f32.mrf.mxu0 }
 0x107   : > { %v2544_v54 = vpop.f32.mrf.mxu1 }
 0x108   : > { %v3372_v34 = vadd.f32 %v879_v47, %v660_v29  ;;  %v3374_v60 = vpop.f32.mrf.mxu0 }
 0x109   : > { %v978_v0 = vpop.f32.mrf.mxu1 }
 0x10a   : > { %v3376_v36 = vpop.f32.mrf.mxu0 }
 0x10b   : > { %v2547_v1 = vpop.f32.mrf.mxu1 }
 0x10c   : > { %v3378_v11 = vpop.f32.mrf.mxu0 }
 0x10d   : > { %v988_v42 = vpop.f32.mrf.mxu1 }
 0x10e   : > { %v3380_v12 = vpop.f32.mrf.mxu0 }
 0x10f   : > { %v2550_v18 = vpop.f32.mrf.mxu1 }
 0x110   : > { %v3382_v37 = vpop.f32.mrf.mxu0 }
 0x111   : > { %v998_v44 = vpop.f32.mrf.mxu1 }
 0x112   : > { %v3384_v26 = vpop.f32.mrf.mxu0 }
 0x113   : > { %v2553_v50 = vpop.f32.mrf.mxu1 }
 0x114   : > { %v3386_v58 = vpop.f32.mrf.mxu0 }
 0x115   : > { %v1008_v61 = vpop.f32.mrf.mxu1 }
 0x116   : > { %v3388_v4 = vpop.f32.mrf.mxu0 }
 0x117   : > { %v2556_v15 = vpop.f32.mrf.mxu1 }
 0x118   : > { %v3390_v21 = vpop.f32.mrf.mxu0 }
 0x119   : > { %v1018_v24 = vpop.f32.mrf.mxu1 }
 0x11a   : > { %v3392_v51 = vpop.f32.mrf.mxu0 }
 0x11b   : > { %v2559_v30 = vpop.f32.mrf.mxu1 }
 0x11c   : > { %v3394_v38 = vpop.f32.mrf.mxu0 }
 0x11d   : > { %v1028_v59 = vpop.f32.mrf.mxu1 }
 0x11e   : > { %v3396_v63 = vpop.f32.mrf.mxu0 }
 0x11f   : > { %v2562_v2 = vpop.f32.mrf.mxu1 }
 0x120   : > { %v3398_v10 = vpop.f32.mrf.mxu0 }
 0x121   : > { %3609 = vst [vmem:[#allocation2_spill] sm:$0xff] %v3398_v10  ;;  %v3400_v16 = vpop.f32.mrf.mxu1 }
 0x122   : > { %v3402_v23 = vpop.f32.mrf.mxu0 }
 0x123   : > { %3610 = vst [vmem:[#allocation3_spill] sm:$0xff] %v3402_v23  ;;  %v3404_v32 = vpop.f32.mrf.mxu1 }
 0x124   : > { %v3406_v45 = vpop.f32.mrf.mxu0 }
 0x125   : > { %3611 = vst [vmem:[#allocation4_spill] sm:$0xff] %v3406_v45  ;;  %v1048_v41 = vpop.f32.mrf.mxu1 }
 0x126   : > { %v2622_v46 = vpop.f32.mrf.mxu0 }
 0x127   : > { %v2596_v40 = vpop.f32.mrf.mxu1 }
 0x128   : > { %v3408_v6 = vpop.f32.mrf.mxu0 }
 0x129   : > { %v1323_v62 = vpop.f32.mrf.mxu1 }
 0x12a   : > { %v3410_v3 = vpop.f32.mrf.mxu0 }
 0x12b   : > { %3612 = vst [vmem:[#allocation5_spill] sm:$0xff] %v3410_v3  ;;  %v2599_v5 = vpop.f32.mrf.mxu1 }
 0x12c   : > { %v3412_v8 = vpop.f32.mrf.mxu0 }
 0x12d   : > { %3613 = vst [vmem:[#allocation6_spill] sm:$0xff] %v3412_v8  ;;  %v1333_v19 = vpop.f32.mrf.mxu1 }
 0x12e   : > { %v3414_v22 = vpop.f32.mrf.mxu0 }
 0x12f   : > { %3614 = vst [vmem:[#allocation7_spill] sm:$0xff] %v3414_v22  ;;  %v2602_v17 = vpop.f32.mrf.mxu1 }
 0x130   : > { %v3416_v35 = vpop.f32.mrf.mxu0 }
 0x131   : > { %3615 = vst [vmem:[#allocation8_spill] sm:$0xff] %v3416_v35  ;;  %v1343_v39 = vpop.f32.mrf.mxu1 }
 0x132   : > { %v3418_v20 = vpop.f32.mrf.mxu0 }
 0x133   : > { %3616 = vst [vmem:[#allocation9_spill] sm:$0xff] %v3418_v20  ;;  %v3420_v47 = vpop.f32.mrf.mxu1  ;;  %v1058_v20 = vadd.f32 %v2544_v54, %v3339_v55  ;;  %v1061_v55 = vadd.f32 %v998_v44, %v3349_v25  ;;  %v1065_v44 = vadd.f32 %v1018_v24, %v3357_v56  ;;  %v1072_v56 = vadd.f32 %v3404_v32, %v3367_v49 }
 0x134   : > { %3617 = vst [vmem:[#allocation10_spill] sm:$0xff] %v3420_v47  ;;  %v3422_v48 = vpop.f32.mrf.mxu0 }
 0x135   : > { %3618 = vst [vmem:[#allocation11_spill] sm:$0xff] %v3422_v48  ;;  %v3424_v29 = vpop.f32.mrf.mxu1  ;;  %v1057_v48 = vadd.f32 %v978_v0, %v3341_v7 }
 0x136   : > { %3619 = vst [vmem:[#allocation12_spill] sm:$0xff] %v3424_v29  ;;  %v3426_v45 = vpop.f32.mrf.mxu0 }
 0x137   : > { %3620 = vst [vmem:[#allocation13_spill] sm:$0xff] %v3426_v45  ;;  %v3428_v23 = vpop.f32.mrf.mxu1  ;;  %v1060_v45 = vadd.f32 %v2547_v1, %v3343_v31  ;;  %v1230_v7 = vadd.f32 %v3374_v60, %v1057_v48  ;;  %v1063_v31 = vadd.f32 %v1008_v61, %v3353_v13 }
 0x138   : > { %3621 = vst [vmem:[#allocation14_spill] sm:$0xff] %v3428_v23  ;;  %v3430_v8 = vpop.f32.mrf.mxu0 }
 0x139   : > { %3622 = vst [vmem:[#allocation15_spill] sm:$0xff] %v3430_v8  ;;  %v3432_v10 = vpop.f32.mrf.mxu1  ;;  %v1059_v8 = vadd.f32 %v988_v42, %v3345_v57  ;;  %v1233_v1 = vadd.f32 %v3376_v36, %v1060_v45  ;;  %v1066_v42 = vadd.f32 %v2556_v15, %v3355_v27  ;;  %v1068_v36 = vadd.f32 %v2559_v30, %v3359_v9 }
 0x13a   : > { %v3434_v22 = vpop.f32.mrf.mxu0  ;;  %v1236_v61 = vadd.f32 %v3386_v58, %v1063_v31  ;;  %v1069_v15 = vadd.f32 %v3400_v16, %v3365_v43  ;;  %v1071_v9 = vadd.f32 %v1048_v41, %v3372_v34 }
 0x13b   : > { %3623 = vst [vmem:[#allocation16_spill] sm:$0xff] %v3434_v22  ;;  %v3436_v35 = vpop.f32.mrf.mxu1  ;;  %v1231_v22 = vadd.f32 %v3370_v53, %v1058_v20  ;;  %v1232_v53 = vadd.f32 %v3378_v11, %v1059_v8  ;;  %v1067_v11 = vadd.f32 %v1028_v59, %v3361_v14  ;;  %v1405_v45 = vadd.f32 %v2599_v5, %v1233_v1  ;;  %v3631_v8 = vld [vmem:[#allocation6_spill] sm:$0xff] }
 0x13c   : > { %3624 = vst [vmem:[#allocation17_spill] sm:$0xff] %v3436_v35  ;;  %v3439_v3 = vpop.f32.mrf.mxu0  ;;  %v1062_v35 = vadd.f32 %v2550_v18, %v3347_v28  ;;  %v1402_v18 = vadd.f32 %v1323_v62, %v1230_v7  ;;  %v1239_v24 = vadd.f32 %v3388_v4, %v1066_v42  ;;  %v3627_v4 = vld [vmem:[#allocation5_spill] sm:$0xff]  ;;  %v3634_v31 = vld [vmem:[#allocation10_spill] sm:$0xff] }
 0x13d   : > { %3625 = vst [vmem:[#allocation18_spill] sm:$0xff] %v3439_v3  ;;  %v3441_v47 = vpop.f32.mrf.mxu1  ;;  %v1064_v3 = vadd.f32 %v2553_v50, %v3351_v52  ;;  %v1403_v0 = vadd.f32 %v2596_v40, %v1231_v22  ;;  %v1234_v52 = vadd.f32 %v3382_v37, %v1061_v55  ;;  %v1240_v43 = vadd.f32 %v3394_v38, %v1067_v11  ;;  %v3630_v38 = vld [vmem:[#allocation4_spill] sm:$0xff] }
 0x13e   : > { %3626 = vst [vmem:[#allocation19_spill] sm:$0xff] %v3441_v47  ;;  %v3444_v29 = vpop.f32.mrf.mxu0  ;;  %v1235_v25 = vadd.f32 %v3380_v12, %v1062_v35  ;;  %v1070_v12 = vadd.f32 %v2562_v2, %v3363_v33  ;;  %v1571_v58 = vadd.f32 %v3408_v6, %v1402_v18  ;;  %v1238_v2 = vadd.f32 %v3390_v21, %v1065_v44  ;;  %v3628_v21 = vld [vmem:[#allocation2_spill] sm:$0xff]  ;;  %v3633_v55 = vld [vmem:[#allocation8_spill] sm:$0xff] }
 0x13f   : > { %v3448_v23 = vpop.f32.mrf.mxu1  ;;  %v1237_v13 = vadd.f32 %v3384_v26, %v1064_v3  ;;  %v1572_v37 = vadd.f32 %v2622_v46, %v1403_v0  ;;  %v1404_v26 = vadd.f32 %v1333_v19, %v1232_v53  ;;  %v1241_v46 = vadd.f32 %v3392_v51, %v1068_v36  ;;  %v3629_v51 = vld [vmem:[#allocation3_spill] sm:$0xff]  ;;  %v3635_v1 = vld [vmem:[#allocation12_spill] sm:$0xff] }
 0x140   : > { %v3453_v54 = vpop.f32.mrf.mxu0  ;;  %v1407_v30 = vadd.f32 %v2602_v17, %v1235_v25  ;;  %v1406_v16 = vadd.f32 %v1343_v39, %v1234_v52  ;;  %v1243_v34 = vadd.f32 %v3396_v63, %v1070_v12  ;;  %v1574_v32 = vadd.f32 %v3627_v4, %v1405_v45  ;;  %v3632_v17 = vld [vmem:[#allocation7_spill] sm:$0xff]  ;;  %v3636_v25 = vld [vmem:[#allocation14_spill] sm:$0xff] }
 0x141   : > { %v3456_v47 = vpop.f32.mrf.mxu1  ;;  %v1242_v62 = vadd.f32 %v3628_v21, %v1069_v15  ;;  %v3499_v3 = vadd.f32 %v3629_v51, %v1072_v56  ;;  %v3502_v5 = vadd.f32 %v3630_v38, %v1071_v9  ;;  %v1573_v19 = vadd.f32 %v3631_v8, %v1404_v26 }
 0x142   : > { %v3460_v57 = vpop.f32.mrf.mxu0  ;;  %v1576_v35 = vadd.f32 %v3632_v17, %v1407_v30  ;;  %v1575_v7 = vadd.f32 %v3633_v55, %v1406_v16  ;;  %v1409_v0 = vadd.f32 %v3634_v31, %v1237_v13  ;;  %v1408_v53 = vadd.f32 %v3635_v1, %v1236_v61  ;;  %v3639_v30 = vld [vmem:[#allocation9_spill] sm:$0xff]  ;;  %v3643_v51 = vld [vmem:[#allocation16_spill] sm:$0xff] }
 0x143   : > { %v3464_v28 = vpop.f32.mrf.mxu1  ;;  %v1411_v52 = vadd.f32 %v3636_v25, %v1239_v24  ;;  %v3637_v45 = vld [vmem:[#allocation17_spill] sm:$0xff]  ;;  %v1414_v55 = vadd.f32 %v3456_v47, %v1242_v62 }
 0x144   : > { %v3469_v60 = vpop.f32.mrf.mxu0  ;;  %v3644_v17 = vld [vmem:[#allocation18_spill] sm:$0xff] }
 0x145   : > { %v3475_v50 = vpop.f32.mrf.mxu1  ;;  %v3638_v56 = vld [vmem:[#allocation19_spill] sm:$0xff] }
 0x146   : > { %v2674_v27 = vpop.f32.mrf.mxu0  ;;  %v1412_v9 = vadd.f32 %v3638_v56, %v1240_v43 }
 0x147   : > { %v2648_v14 = vpop.f32.mrf.mxu1 }
 0x148   : > { %v1745_v33 = vadd.f32 %v2648_v14, %v1572_v37  ;;  %v1837_v59 = vpop.f32.mrf.mxu0  ;;  %v1410_v37 = vadd.f32 %v3432_v10, %v1238_v2 }
 0x149   : > { %v1665_v49 = vpop.f32.mrf.mxu1 }
 0x14a   : > { %v1917_v41 = vadd.f32 %v2674_v27, %v1745_v33  ;;  %v1744_v40 = vadd.f32 %v1665_v49, %v1571_v58  ;;  %v2677_v6 = vpop.f32.mrf.mxu0  ;;  %v1413_v27 = vadd.f32 %v3637_v45, %v1241_v46  ;;  %v1578_v33 = vadd.f32 %v3639_v30, %v1409_v0  ;;  %v3641_v49 = vld [vmem:[#allocation13_spill] sm:$0xff] }
 0x14b   : > { %v2651_v22 = vpop.f32.mrf.mxu1  ;;  %v1580_v4 = vadd.f32 %v3641_v49, %v1411_v52 }
 0x14c   : > { %1933 = vst.msk [vmem:[%s3493_s18 + $0x8] sm:$0xff] %vm313_vm1, %v1917_v41  ;;  %v1988_v63 = vmul.f32 %v1917_v41, %v1917_v41  ;;  %v1916_v39 = vadd.f32 %v1837_v59, %v1744_v40  ;;  %v1747_v20 = vadd.f32 %v2651_v22, %v1574_v32  ;;  %v1847_v48 = vpop.f32.mrf.mxu0  ;;  %v1949_v18 = vsel %vm313_vm1, %v1917_v41, 0.0  ;;  %v3640_v59 = vld [vmem:[#allocation11_spill] sm:$0xff] }
 0x14d   : > { %v1675_v42 = vpop.f32.mrf.mxu1  ;;  %v1577_v10 = vadd.f32 %v3640_v59, %v1408_v53  ;;  %v1582_v38 = vadd.f32 %v3643_v51, %v1413_v27 }
 0x14e   : > { %1932 = vst.msk [vmem:[%s3493_s18] sm:$0xff] %vm313_vm1, %v1916_v39  ;;  %v1948_v44 = vsel %vm313_vm1, %v1916_v39, 0.0  ;;  %v1987_v36 = vmul.f32 %v1916_v39, %v1916_v39  ;;  %v1919_v11 = vadd.f32 %v2677_v6, %v1747_v20  ;;  %v2680_v12 = vpop.f32.mrf.mxu0  ;;  %v1746_v15 = vadd.f32 %v1675_v42, %v1573_v19  ;;  %v3642_v6 = vld [vmem:[#allocation15_spill] sm:$0xff] }
 0x14f   : > { %v1950_v13 = vadd.f32 %v1949_v18, %v1948_v44  ;;  %v2654_v61 = vpop.f32.mrf.mxu1  ;;  %v2004_v26 = vsel %vm313_vm1, %v1988_v63, 0.0  ;;  %v1579_v21 = vadd.f32 %v3642_v6, %v1410_v37  ;;  %v1415_v63 = vadd.f32 %v3448_v23, %v1243_v34 }
 0x150   : > { %v2003_v14 = vsel %vm313_vm1, %v1987_v36, 0.0  ;;  %1935 = vst.msk [vmem:[%s3493_s18 + $0x18] sm:$0xff] %vm313_vm1, %v1919_v11  ;;  %v1749_v24 = vadd.f32 %v2654_v61, %v1576_v35  ;;  %v1857_v58 = vpop.f32.mrf.mxu0  ;;  %v1918_v46 = vadd.f32 %v1847_v48, %v1746_v15  ;;  %v1990_v43 = vmul.f32 %v1919_v11, %v1919_v11 }
 0x151   : > { %v2005_v2 = vadd.f32 %v2004_v26, %v2003_v14  ;;  %v1685_v16 = vpop.f32.mrf.mxu1  ;;  %v1581_v35 = vadd.f32 %v3644_v17, %v1412_v9  ;;  %v1584_v36 = vadd.f32 %v3444_v29, %v1415_v63 }
 0x152   : > { %v1921_v32 = vadd.f32 %v2680_v12, %v1749_v24  ;;  %v1748_v41 = vadd.f32 %v1685_v16, %v1575_v7  ;;  %v2683_v40 = vpop.f32.mrf.mxu0  ;;  %1934 = vst.msk [vmem:[%s3493_s18 + $0x10] sm:$0xff] %vm313_vm1, %v1918_v46  ;;  %v1951_v8 = vsel %vm313_vm1, %v1918_v46, 0.0  ;;  %v1989_v19 = vmul.f32 %v1918_v46, %v1918_v46 }
 0x153   : > { %v2657_v22 = vpop.f32.mrf.mxu1  ;;  %v1952_v39 = vadd.f32 %v1951_v8, %v1950_v13  ;;  %v1953_v7 = vsel %vm313_vm1, %v1919_v11, 0.0  ;;  %v2008_v53 = vsel %vm313_vm1, %v1990_v43, 0.0  ;;  %v1416_v46 = vadd.f32 %v3475_v50, %v3502_v5 }
 0x154   : > { %1937 = vst.msk [vmem:[%s3493_s18 + $0x28] sm:$0xff] %vm313_vm1, %v1921_v32  ;;  %v1920_v20 = vadd.f32 %v1857_v58, %v1748_v41  ;;  %v1867_v48 = vpop.f32.mrf.mxu0  ;;  %v2006_v31 = vsel %vm313_vm1, %v1989_v19, 0.0  ;;  %v1751_v0 = vadd.f32 %v2657_v22, %v1578_v33  ;;  %v1992_v42 = vmul.f32 %v1921_v32, %v1921_v32 }
 0x155   : > { %v1695_v1 = vpop.f32.mrf.mxu1  ;;  %v2007_v25 = vadd.f32 %v2006_v31, %v2005_v2  ;;  %v1954_v23 = vadd.f32 %v1953_v7, %v1952_v39  ;;  %v1957_v27 = vsel %vm313_vm1, %v1921_v32, 0.0  ;;  %v1583_v58 = vadd.f32 %v3453_v54, %v1414_v55 }
 0x156   : > { %1936 = vst.msk [vmem:[%s3493_s18 + $0x20] sm:$0xff] %vm313_vm1, %v1920_v20  ;;  %v1955_v34 = vsel %vm313_vm1, %v1920_v20, 0.0  ;;  %v2686_v52 = vpop.f32.mrf.mxu0  ;;  %v1991_v18 = vmul.f32 %v1920_v20, %v1920_v20  ;;  %v1923_v44 = vadd.f32 %v2683_v40, %v1751_v0  ;;  %v1750_v47 = vadd.f32 %v1695_v1, %v1577_v10 }
 0x157   : > { %v2660_v62 = vpop.f32.mrf.mxu1  ;;  %v1956_v11 = vadd.f32 %v1955_v34, %v1954_v23  ;;  %v2009_v12 = vadd.f32 %v2008_v53, %v2007_v25  ;;  %v2012_v30 = vsel %vm313_vm1, %v1992_v42, 0.0  ;;  %v1417_v2 = vadd.f32 %v3464_v28, %v3499_v3 }
 0x158   : > { %v1753_v37 = vadd.f32 %v2660_v62, %v1580_v4  ;;  %v1877_v45 = vpop.f32.mrf.mxu0  ;;  %v2010_v13 = vsel %vm313_vm1, %v1991_v18, 0.0  ;;  %1939 = vst.msk [vmem:[%s3493_s18 + $0x38] sm:$0xff] %vm313_vm1, %v1923_v44  ;;  %v1994_v15 = vmul.f32 %v1923_v44, %v1923_v44  ;;  %v1922_v61 = vadd.f32 %v1867_v48, %v1750_v47 }
 0x159   : > { %v1705_v56 = vpop.f32.mrf.mxu1  ;;  %v2011_v9 = vadd.f32 %v2010_v13, %v2009_v12  ;;  %v1958_v26 = vadd.f32 %v1957_v27, %v1956_v11  ;;  %v1961_v4 = vsel %vm313_vm1, %v1923_v44, 0.0  ;;  %v1586_v48 = vadd.f32 %v3460_v57, %v1417_v2 }
 0x15a   : > { %v1925_v14 = vadd.f32 %v2686_v52, %v1753_v37  ;;  %v1752_v24 = vadd.f32 %v1705_v56, %v1579_v21  ;;  %v2689_v29 = vpop.f32.mrf.mxu0  ;;  %1938 = vst.msk [vmem:[%s3493_s18 + $0x30] sm:$0xff] %vm313_vm1, %v1922_v61  ;;  %v1959_v33 = vsel %vm313_vm1, %v1922_v61, 0.0  ;;  %v1993_v59 = vmul.f32 %v1922_v61, %v1922_v61 }
 0x15b   : > { %v2663_v10 = vpop.f32.mrf.mxu1  ;;  %v1960_v16 = vadd.f32 %v1959_v33, %v1958_v26  ;;  %v2013_v49 = vadd.f32 %v2012_v30, %v2011_v9  ;;  %v2016_v6 = vsel %vm313_vm1, %v1994_v15, 0.0 }
 0x15c   : > { %1941 = vst.msk [vmem:[%s3493_s18 + $0x48] sm:$0xff] %vm313_vm1, %v1925_v14  ;;  %v1887_v54 = vpop.f32.mrf.mxu0  ;;  %v2014_v43 = vsel %vm313_vm1, %v1993_v59, 0.0  ;;  %v1924_v32 = vadd.f32 %v1877_v45, %v1752_v24  ;;  %v1755_v41 = vadd.f32 %v2663_v10, %v1582_v38  ;;  %v1996_v50 = vmul.f32 %v1925_v14, %v1925_v14 }
 0x15d   : > { %v1715_v40 = vpop.f32.mrf.mxu1  ;;  %v2015_v21 = vadd.f32 %v2014_v43, %v2013_v49  ;;  %v1962_v28 = vadd.f32 %v1961_v4, %v1960_v16  ;;  %v1965_v55 = vsel %vm313_vm1, %v1925_v14, 0.0 }
 0x15e   : > { %v1754_v3 = vadd.f32 %v1715_v40, %v1581_v35  ;;  %v2692_v51 = vpop.f32.mrf.mxu0  ;;  %1940 = vst.msk [vmem:[%s3493_s18 + $0x40] sm:$0xff] %vm313_vm1, %v1924_v32  ;;  %v1963_v5 = vsel %vm313_vm1, %v1924_v32, 0.0  ;;  %v1995_v8 = vmul.f32 %v1924_v32, %v1924_v32  ;;  %v1927_v19 = vadd.f32 %v2689_v29, %v1755_v41 }
 0x15f   : > { %v2666_v22 = vpop.f32.mrf.mxu1  ;;  %v1964_v17 = vadd.f32 %v1963_v5, %v1962_v28  ;;  %v2017_v63 = vadd.f32 %v2016_v6, %v2015_v21  ;;  %v1585_v35 = vadd.f32 %v3469_v60, %v1416_v46  ;;  %v2020_v23 = vsel %vm313_vm1, %v1996_v50, 0.0 }
 0x160   : > { %v1926_v38 = vadd.f32 %v1887_v54, %v1754_v3  ;;  %v1757_v39 = vadd.f32 %v2666_v22, %v1584_v36  ;;  %v1897_v20 = vpop.f32.mrf.mxu0  ;;  %v2018_v7 = vsel %vm313_vm1, %v1995_v8, 0.0  ;;  %1943 = vst.msk [vmem:[%s3493_s18 + $0x58] sm:$0xff] %vm313_vm1, %v1927_v19  ;;  %v1998_v57 = vmul.f32 %v1927_v19, %v1927_v19 }
 0x161   : > { %v1725_v31 = vpop.f32.mrf.mxu1  ;;  %v2019_v0 = vadd.f32 %v2018_v7, %v2017_v63  ;;  %v1966_v1 = vadd.f32 %v1965_v55, %v1964_v17  ;;  %v1969_v36 = vsel %vm313_vm1, %v1927_v19, 0.0 }
 0x162   : > { %1942 = vst.msk [vmem:[%s3493_s18 + $0x50] sm:$0xff] %vm313_vm1, %v1926_v38  ;;  %v1967_v53 = vsel %vm313_vm1, %v1926_v38, 0.0  ;;  %v1997_v25 = vmul.f32 %v1926_v38, %v1926_v38  ;;  %v1929_v34 = vadd.f32 %v2692_v51, %v1757_v39  ;;  %v1756_v60 = vadd.f32 %v1725_v31, %v1583_v58  ;;  %v2695_v62 = vpop.f32.mrf.mxu0 }
 0x163   : > { %v2669_v52 = vpop.f32.mrf.mxu1  ;;  %v1968_v42 = vadd.f32 %v1967_v53, %v1966_v1  ;;  %v2021_v18 = vadd.f32 %v2020_v23, %v2019_v0  ;;  %v2024_v15 = vsel %vm313_vm1, %v1998_v57, 0.0 }
 0x164   : > { %v2022_v44 = vsel %vm313_vm1, %v1997_v25, 0.0  ;;  %v1759_v47 = vadd.f32 %v2669_v52, %v1586_v48  ;;  %1945 = vst.msk [vmem:[%s3493_s18 + $0x68] sm:$0xff] %vm313_vm1, %v1929_v34  ;;  %v1928_v11 = vadd.f32 %v1897_v20, %v1756_v60  ;;  %v2000_v61 = vmul.f32 %v1929_v34, %v1929_v34  ;;  %v1907_v24 = vpop.f32.mrf.mxu0 }
 0x165   : > { %v1735_v12 = vpop.f32.mrf.mxu1  ;;  %v2023_v37 = vadd.f32 %v2022_v44, %v2021_v18  ;;  %v1970_v45 = vadd.f32 %v1969_v36, %v1968_v42  ;;  %v1973_v29 = vsel %vm313_vm1, %v1929_v34, 0.0 }
 0x166   : > { %v1931_v27 = vadd.f32 %v2695_v62, %v1759_v47  ;;  %v1758_v13 = vadd.f32 %v1735_v12, %v1585_v35  ;;  %1944 = vst.msk [vmem:[%s3493_s18 + $0x60] sm:$0xff] %vm313_vm1, %v1928_v11  ;;  %v1971_v56 = vsel %vm313_vm1, %v1928_v11, 0.0  ;;  %v1999_v9 = vmul.f32 %v1928_v11, %v1928_v11 }
 0x167   : > { %v1972_v26 = vadd.f32 %v1971_v56, %v1970_v45  ;;  %v2025_v14 = vadd.f32 %v2024_v15, %v2023_v37  ;;  %v2028_v10 = vsel %vm313_vm1, %v2000_v61, 0.0 }
 0x168   : > { %1947 = vst.msk [vmem:[%s3493_s18 + $0x78] sm:$0xff] %vm313_vm1, %v1931_v27  ;;  %v2026_v58 = vsel %vm313_vm1, %v1999_v9, 0.0  ;;  %v1930_v30 = vadd.f32 %v1907_v24, %v1758_v13  ;;  %v2002_v2 = vmul.f32 %v1931_v27, %v1931_v27  ;;  %v1977_v4 = vsel %vm313_vm1, %v1931_v27, 0.0 }
 0x169   : > { %v2027_v33 = vadd.f32 %v2026_v58, %v2025_v14  ;;  %v1974_v59 = vadd.f32 %v1973_v29, %v1972_v26 }
 0x16a   : > { %1946 = vst.msk [vmem:[%s3493_s18 + $0x70] sm:$0xff] %vm313_vm1, %v1930_v30  ;;  %v1975_v46 = vsel %vm313_vm1, %v1930_v30, 0.0  ;;  %v2001_v16 = vmul.f32 %v1930_v30, %v1930_v30  ;;  %v2032_v40 = vsel %vm313_vm1, %v2002_v2, 0.0 }
 0x16b   : > { %v1976_v49 = vadd.f32 %v1975_v46, %v1974_v59  ;;  %v2029_v54 = vadd.f32 %v2028_v10, %v2027_v33 }
 0x16c   : > { %v2030_v43 = vsel %vm313_vm1, %v2001_v16, 0.0 }
 0x16d   : > { %v1978_v32 = vadd.f32 %v1977_v4, %v1976_v49  ;;  %v2031_v41 = vadd.f32 %v2030_v43, %v2029_v54 }
 0x16f   : > { %v1979_v6 = vrot.slane %v1978_v32, 4  ;;  %v2033_v21 = vadd.f32 %v2032_v40, %v2031_v41 }
 0x171   : > { %v1980_v28 = vadd.f32 %v1979_v6, %v1978_v32  ;;  %v2034_v3 = vrot.slane %v2033_v21, 4 }
 0x173   : > { %v1981_v51 = vrot.slane %v1980_v28, 2  ;;  %v2035_v50 = vadd.f32 %v2034_v3, %v2033_v21 }
 0x175   : > { %v1982_v5 = vadd.f32 %v1981_v51, %v1980_v28  ;;  %v2036_v8 = vrot.slane %v2035_v50, 2 }
 0x177   : > { %v1983_v19 = vrot.slane %v1982_v5, 1  ;;  %v2037_v22 = vadd.f32 %v2036_v8, %v2035_v50 }
 0x179   : > { %v1984_v17 = vadd.f32 %v1983_v19, %v1982_v5  ;;  %v2038_v63 = vrot.slane %v2037_v22, 1 }
 0x17b   : > { %1986 = vst.msk [vmem:[%s211_s21] sm:$0x1] %vm1985_vm3, %v1984_v17  ;;  %v2039_v38 = vadd.f32 %v2038_v63, %v2037_v22 }
 0x17d   : > { %2040 = vst.msk [vmem:[%s214_s24] sm:$0x1] %vm1985_vm3, %v2039_v38 }
 0x17e PF: > { %s15_s15 = sadd.s32 1, %s2713_s15  }
 0x17f   : > { %p12_p4 = scmp.ge.s32.totalorder %s15_s15, 6  }
 0x181   :  { %14 = sbr.rel (!%p12_p4) target bundleno = 1 (0x1), region = 90 }

</bundles_post_ra>
